<compile_context>
chip_gen: v6e
topology: v6e:2x2x1
jax: 0.10.0
libtpu: 0.0.40
codegen_flags: <defaults>
</compile_context>

<pallas_src>
import functools

import jax
import jax.numpy as jnp
from jax import lax
from jax.experimental import pallas as pl
from jax.experimental.pallas import tpu as pltpu


def _convlstm_kernel(comb_ref, wct_ref, bias_ref, c_ref,
                     h_out_ref, c_out_ref,
                     patches_ref, pre_ref,
                     *, H, W, C, C_hid, kh, kw, dil, Bt):
    """One grid step == `Bt` batch elements.

    comb_ref    : (Bt, Hp, Wp, C)        padded concat([x, h_cur]), NHWC, matmul dtype
    wct_ref     : (4*C_hid, kh*kw*C)     fused (depthwise x pointwise) weight, transposed
    bias_ref    : (4*C_hid, 1)           pointwise bias, f32
    c_ref       : (Bt, C_hid, H*W)       current cell state, channel-major (lane-dense)
    h_out_ref, c_out_ref : (Bt, C_hid, H*W)
    patches_ref : (Bt*H*W, kh*kw*C)      im2col scratch, matmul dtype
    pre_ref     : (4*C_hid, Bt*H*W)      conv pre-activations, f32
    """
    HW = H * W
    n_tap = kh * kw

    # ---- Phase 1: im2col into VMEM scratch ---------------------------------
    # Column layout is tap*C + c, matching the fused weight columns.  The
    # padded window is sliced per tap directly from the ref (never loaded
    # whole); the fori_loop over images bounds vreg live ranges.
    def im2col_body(bi, carry):
        row0 = pl.multiple_of(bi * HW, HW)          # HW is a multiple of 128
        img = comb_ref.at[bi]                       # (Hp, Wp, C) ref view, no load
        for t in range(n_tap):
            di, dj = divmod(t, kw)
            piece = img[di * dil:di * dil + H, dj * dil:dj * dil + W, :]
            # (H, W, C) -> (H*W, C): layout-preserving merge (W % 8 == 0).
            patches_ref[pl.ds(row0, HW), t * C:(t + 1) * C] = piece.reshape(HW, C)
        return carry

    lax.fori_loop(0, Bt, im2col_body, 0)

    # ---- Phase 2: fused depthwise+pointwise conv, ONE MXU matmul -----------
    # result[m, n] = sum_k wct[m, k] * patches[n, k]  -> (4*C_hid, Bt*H*W),
    # i.e. already channel-major / lane-dense; no result transpose needed.
    conv = lax.dot_general(
        wct_ref[...], patches_ref[...],
        dimension_numbers=(((1,), (1,)), ((), ())),
        preferred_element_type=jnp.float32)
    pre_ref[...] = conv + bias_ref[...].astype(jnp.float32)   # lane-broadcast bias

    # ---- Phase 3: LSTM gates + cell update, per image ----------------------
    def gate_body(bi, carry):
        off = pl.multiple_of(bi * HW, HW)
        # i, f, o share one EUP tanh pass: sigmoid(x) = 0.5*tanh(0.5*x) + 0.5
        sig = 0.5 * jnp.tanh(0.5 * pre_ref[0:3 * C_hid, pl.ds(off, HW)]) + 0.5
        g = jnp.tanh(pre_ref[3 * C_hid:4 * C_hid, pl.ds(off, HW)])
        i_g = sig[0:C_hid]
        f_g = sig[C_hid:2 * C_hid]
        o_g = sig[2 * C_hid:3 * C_hid]

        c_cur = c_ref[bi].astype(jnp.float32)                 # (C_hid, H*W)
        c_next = f_g * c_cur + i_g * g
        h_next = o_g * jnp.tanh(c_next)

        c_out_ref[bi] = c_next.astype(c_out_ref.dtype)
        h_out_ref[bi] = h_next.astype(h_out_ref.dtype)
        return carry

    lax.fori_loop(0, Bt, gate_body, 0)


def _auto_batch_block(B, max_bt=8, min_steps=2):
    """Largest divisor of B (<= max_bt) that keeps >= min(min_steps, B) grid steps."""
    best = 1
    for bt in range(1, min(B, max_bt) + 1):
        if B % bt == 0 and (B // bt) >= min(min_steps, B):
            best = bt
    return best


def convlstm2d_cell(x_nchw, h_nchw, c_nchw, dw_weight, pw_weight, pw_bias,
                    kernel_size=(3, 3), dilation=1,
                    matmul_dtype=jnp.bfloat16, batch_block=None):
    """ConvLSTM2dCell.forward.  Tensors in NCHW (PyTorch convention).

    Returns (h_next, (h_next, c_next)) like the PyTorch module.
    """
    B, C_in, H, W = x_nchw.shape
    C_hid = h_nchw.shape[1]
    C = C_in + C_hid
    kh, kw = kernel_size
    # TODO(synk): even kernel sizes would need PyTorch's asymmetric padding;
    # only the standard odd-kernel 'same' case is implemented.
    assert kh % 2 == 1 and kw % 2 == 1, "odd kernel sizes only"
    # Note: W % 8 == 0 keeps the in-kernel (H, W, C)->(H*W, C) merge layout-free.

    if batch_block is None:
        batch_block = _auto_batch_block(B)
    assert B % batch_block == 0, "batch_block must divide batch"
    Bt = batch_block
    ph, pw_ = dilation * (kh // 2), dilation * (kw // 2)
    Hp, Wp = H + 2 * ph, W + 2 * pw_
    K = kh * kw * C
    HW = H * W

    # ---- XLA-side glue (fuses into one producer feeding pallas_call) -------
    # concat along channels, NCHW -> NHWC (channels on lanes for the
    # conv-as-matmul), spatial 'same' padding, cast to the matmul dtype.
    comb = jnp.concatenate([x_nchw, h_nchw], axis=1)           # (B, C, H, W)
    comb = jnp.transpose(comb, (0, 2, 3, 1))                   # (B, H, W, C)
    comb = jnp.pad(comb, ((0, 0), (ph, ph), (pw_, pw_), (0, 0)))
    comb = comb.astype(matmul_dtype)

    # cell state in channel-major layout (lane-dense last dim = H*W)
    c_in = c_nchw.reshape(B, C_hid, HW)

    # fold the depthwise conv into the pointwise one (trace-time, free):
    #   wct[m, tap*C + c] = pw[m, c] * dw[c, tap]
    dw_taps = jnp.transpose(dw_weight, (1, 2, 0)).reshape(kh * kw, C)   # [t, c]
    wct = (pw_weight[:, None, :] * dw_taps[None, :, :]).reshape(4 * C_hid, K)
    wct = wct.astype(matmul_dtype)
    bias_col = pw_bias.reshape(4 * C_hid, 1).astype(jnp.float32)

    kernel = functools.partial(_convlstm_kernel, H=H, W=W, C=C, C_hid=C_hid,
                               kh=kh, kw=kw, dil=dilation, Bt=Bt)

    h_next, c_next = pl.pallas_call(
        kernel,
        out_shape=(
            jax.ShapeDtypeStruct((B, C_hid, HW), x_nchw.dtype),
            # keep cell state in its own dtype (don't truncate f32 c to bf16)
            jax.ShapeDtypeStruct((B, C_hid, HW), c_nchw.dtype),
        ),
        grid_spec=pltpu.PrefetchScalarGridSpec(
            num_scalar_prefetch=0,
            grid=(B // Bt,),
            in_specs=[
                pl.BlockSpec((Bt, Hp, Wp, C), lambda b: (b, 0, 0, 0)),
                pl.BlockSpec((4 * C_hid, K), lambda b: (0, 0)),
                pl.BlockSpec((4 * C_hid, 1), lambda b: (0, 0)),
                pl.BlockSpec((Bt, C_hid, HW), lambda b: (b, 0, 0)),
            ],
            out_specs=[
                pl.BlockSpec((Bt, C_hid, HW), lambda b: (b, 0, 0)),
                pl.BlockSpec((Bt, C_hid, HW), lambda b: (b, 0, 0)),
            ],
            scratch_shapes=[
                pltpu.VMEM((Bt * HW, K), matmul_dtype),      # im2col patches
                pltpu.VMEM((4 * C_hid, Bt * HW), jnp.float32),  # pre-activations
            ],
        ),
        compiler_params=pltpu.CompilerParams(
            dimension_semantics=("parallel",)),
    )(comb, wct, bias_col, c_in)

    # back to NCHW: pure reshapes, no output transposes.
    h_next = h_next.reshape(B, C_hid, H, W)
    c_next = c_next.reshape(B, C_hid, H, W)
    return h_next, (h_next, c_next)


def _reference(x, h, c, dw_weight, pw_weight, pw_bias, kernel_size, dilation):
    """Pure-JAX reference (mirrors the PyTorch module) for correctness check."""
    kh, kw = kernel_size
    ph, pw_ = dilation * (kh // 2), dilation * (kw // 2)
    C = x.shape[1] + h.shape[1]
    comb = jnp.concatenate([x, h], axis=1)
    dw = lax.conv_general_dilated(
        comb, dw_weight[:, None, :, :], (1, 1),
        ((ph, ph), (pw_, pw_)), rhs_dilation=(dilation, dilation),
        feature_group_count=C, dimension_numbers=("NCHW", "OIHW", "NCHW"))
    pw = lax.conv_general_dilated(
        dw, pw_weight[:, :, None, None], (1, 1), "VALID",
        dimension_numbers=("NCHW", "OIHW", "NCHW"))
    pw = pw + pw_bias[None, :, None, None]
    cc_i, cc_f, cc_o, cc_g = jnp.split(pw, 4, axis=1)
    i, f, o = jax.nn.sigmoid(cc_i), jax.nn.sigmoid(cc_f), jax.nn.sigmoid(cc_o)
    g = jnp.tanh(cc_g)
    c_next = f * c + i * g
    h_next = o * jnp.tanh(c_next)
    return h_next, c_next


if __name__ == "__main__":
    # small shapes consistent with the module
    B, C_in, C_hid = 2, 4, 32
    H, W = 16, 16
    kernel_size = (3, 3)
    dilation = 1
    C = C_in + C_hid

    key = jax.random.PRNGKey(0)
    kx, khk, kck, kdw, kpw, kpb, kx4, kh4, kc4 = jax.random.split(key, 9)

    x = jax.random.normal(kx, (B, C_in, H, W), jnp.float32)
    h_cur = jax.random.normal(khk, (B, C_hid, H, W), jnp.float32)
    c_cur = jax.random.normal(kck, (B, C_hid, H, W), jnp.float32)

    # SeparableConv2d params: depthwise (C, kh, kw) + pointwise (4*C_hid, C) + bias
    dw_weight = 0.1 * jax.random.normal(kdw, (C, kernel_size[0], kernel_size[1]), jnp.float32)
    pw_weight = 0.1 * jax.random.normal(kpw, (4 * C_hid, C), jnp.float32)
    pw_bias = 0.1 * jax.random.normal(kpb, (4 * C_hid,), jnp.float32)

    h_expect, c_expect = _reference(x, h_cur, c_cur, dw_weight, pw_weight,
                                    pw_bias, kernel_size, dilation)

    # exact-precision path (f32 MXU operands): tight correctness check
    h32, (_, c32) = convlstm2d_cell(
        x, h_cur, c_cur, dw_weight, pw_weight, pw_bias,
        kernel_size=kernel_size, dilation=dilation, matmul_dtype=jnp.float32)
    jax.block_until_ready((h32, c32))
    assert h32.shape == (B, C_hid, H, W) and c32.shape == (B, C_hid, H, W)
    assert jnp.allclose(h32, h_expect, rtol=1e-4, atol=1e-4)
    assert jnp.allclose(c32, c_expect, rtol=1e-4, atol=1e-4)

    # default fast path (bf16 comb + MXU operands, f32 accumulation / gate math)
    h_next, (h2, c_next) = convlstm2d_cell(
        x, h_cur, c_cur, dw_weight, pw_weight, pw_bias,
        kernel_size=kernel_size, dilation=dilation)
    jax.block_until_ready((h_next, c_next))
    assert jnp.allclose(h_next, h_expect, rtol=5e-2, atol=5e-2)
    assert jnp.allclose(c_next, c_expect, rtol=5e-2, atol=5e-2)

    # batched path: B=4 with batch_block=2 (Bt>1, grid of 2 "parallel" steps)
    B4 = 4
    x4 = jax.random.normal(kx4, (B4, C_in, H, W), jnp.float32)
    h4 = jax.random.normal(kh4, (B4, C_hid, H, W), jnp.float32)
    c4 = jax.random.normal(kc4, (B4, C_hid, H, W), jnp.float32)
    h4_expect, c4_expect = _reference(x4, h4, c4, dw_weight, pw_weight,
                                      pw_bias, kernel_size, dilation)
    h4o, (_, c4o) = convlstm2d_cell(
        x4, h4, c4, dw_weight, pw_weight, pw_bias,
        kernel_size=kernel_size, dilation=dilation,
        matmul_dtype=jnp.float32, batch_block=2)
    jax.block_until_ready((h4o, c4o))
    assert jnp.allclose(h4o, h4_expect, rtol=1e-4, atol=1e-4)
    assert jnp.allclose(c4o, c4_expect, rtol=1e-4, atol=1e-4)

    print("KERNEL_OK")
</pallas_src>

<mosaic_0001>
module attributes {stable_mosaic.version = 11 : i64} {
  func.func @_convlstm_kernel(%arg0: i32, %arg1: memref<1x18x18x36xf32, #tpu.memory_space<vmem>>, %arg2: memref<128x324xf32, #tpu.memory_space<vmem>>, %arg3: memref<128x1xf32, #tpu.memory_space<vmem>>, %arg4: memref<1x32x256xf32, #tpu.memory_space<vmem>>, %arg5: memref<1x32x256xf32, #tpu.memory_space<vmem>>, %arg6: memref<1x32x256xf32, #tpu.memory_space<vmem>>, %arg7: memref<256x324xf32, #tpu.memory_space<vmem>>, %arg8: memref<128x256xf32, #tpu.memory_space<vmem>>) attributes {dimension_semantics = [#tpu.dimension_semantics<parallel>], iteration_bounds = array<i64: 2>, scalar_prefetch = 0 : i64, scratch_operands = 2 : i64, tpu.core_type = #tpu.core_type<tc>, window_params = [{transform_indices = @transform_0, window_bounds = array<i64: 1, 18, 18, 36>}, {pipeline_mode = #tpu.pipeline_mode<synchronous>, transform_indices = @transform_1, window_bounds = array<i64: 128, 324>}, {pipeline_mode = #tpu.pipeline_mode<synchronous>, transform_indices = @transform_2, window_bounds = array<i64: 128, 1>}, {transform_indices = @transform_3, window_bounds = array<i64: 1, 32, 256>}, {transform_indices = @transform_4, window_bounds = array<i64: 1, 32, 256>}, {transform_indices = @transform_5, window_bounds = array<i64: 1, 32, 256>}]} {
    %c0_i32 = arith.constant 0 : i32
    %c256_i32 = arith.constant 256 : i32
    %0 = arith.muli %c0_i32, %c256_i32 : i32
    %1 = tpu.assume_multiple %0, 256 : i32
    %c0_i32_0 = arith.constant 0 : i32
    %c0_i32_1 = arith.constant 0 : i32
    %c0_i32_2 = arith.constant 0 : i32
    %2 = tpu.memref_slice %arg1[%c0_i32, %c0_i32_0, %c0_i32_1, %c0_i32_2] : memref<1x18x18x36xf32, #tpu.memory_space<vmem>> -> memref<1x18x18x36xf32, #tpu.memory_space<vmem>>
    %3 = tpu.memref_squeeze %2 : memref<1x18x18x36xf32, #tpu.memory_space<vmem>> -> memref<18x18x36xf32, #tpu.memory_space<vmem>>
    %c0 = arith.constant 0 : index
    %c0_3 = arith.constant 0 : index
    %c0_4 = arith.constant 0 : index
    %4 = vector.load %3[%c0, %c0_3, %c0_4] : memref<18x18x36xf32, #tpu.memory_space<vmem>>, vector<16x16x36xf32>
    %5 = vector.shape_cast %4 : vector<16x16x36xf32> to vector<256x36xf32>
    %6 = arith.index_cast %1 : i32 to index
    %c0_5 = arith.constant 0 : index
    %7 = vector.load %arg7[%6, %c0_5] : memref<256x324xf32, #tpu.memory_space<vmem>>, vector<256x36xf32>
    tpu.vector_store %arg7[%6, %c0_5], %5 {strides = array<i32>} : memref<256x324xf32, #tpu.memory_space<vmem>>, vector<256x36xf32>,
    %c0_i32_6 = arith.constant 0 : i32
    %c0_i32_7 = arith.constant 0 : i32
    %c0_i32_8 = arith.constant 0 : i32
    %8 = tpu.memref_slice %arg1[%c0_i32, %c0_i32_6, %c0_i32_7, %c0_i32_8] : memref<1x18x18x36xf32, #tpu.memory_space<vmem>> -> memref<1x18x18x36xf32, #tpu.memory_space<vmem>>
    %9 = tpu.memref_squeeze %8 : memref<1x18x18x36xf32, #tpu.memory_space<vmem>> -> memref<18x18x36xf32, #tpu.memory_space<vmem>>
    %c0_9 = arith.constant 0 : index
    %c1 = arith.constant 1 : index
    %c0_10 = arith.constant 0 : index
    %10 = vector.load %9[%c0_9, %c1, %c0_10] : memref<18x18x36xf32, #tpu.memory_space<vmem>>, vector<16x16x36xf32>
    %11 = vector.shape_cast %10 : vector<16x16x36xf32> to vector<256x36xf32>
    %12 = arith.index_cast %1 : i32 to index
    %c36 = arith.constant 36 : index
    %13 = vector.load %arg7[%12, %c36] : memref<256x324xf32, #tpu.memory_space<vmem>>, vector<256x36xf32>
    tpu.vector_store %arg7[%12, %c36], %11 {strides = array<i32>} : memref<256x324xf32, #tpu.memory_space<vmem>>, vector<256x36xf32>,
    %c0_i32_11 = arith.constant 0 : i32
    %c0_i32_12 = arith.constant 0 : i32
    %c0_i32_13 = arith.constant 0 : i32
    %14 = tpu.memref_slice %arg1[%c0_i32, %c0_i32_11, %c0_i32_12, %c0_i32_13] : memref<1x18x18x36xf32, #tpu.memory_space<vmem>> -> memref<1x18x18x36xf32, #tpu.memory_space<vmem>>
    %15 = tpu.memref_squeeze %14 : memref<1x18x18x36xf32, #tpu.memory_space<vmem>> -> memref<18x18x36xf32, #tpu.memory_space<vmem>>
    %c0_14 = arith.constant 0 : index
    %c2 = arith.constant 2 : index
    %c0_15 = arith.constant 0 : index
    %16 = vector.load %15[%c0_14, %c2, %c0_15] : memref<18x18x36xf32, #tpu.memory_space<vmem>>, vector<16x16x36xf32>
    %17 = vector.shape_cast %16 : vector<16x16x36xf32> to vector<256x36xf32>
    %18 = arith.index_cast %1 : i32 to index
    %c72 = arith.constant 72 : index
    %19 = vector.load %arg7[%18, %c72] : memref<256x324xf32, #tpu.memory_space<vmem>>, vector<256x36xf32>
    tpu.vector_store %arg7[%18, %c72], %17 {strides = array<i32>} : memref<256x324xf32, #tpu.memory_space<vmem>>, vector<256x36xf32>,
    %c0_i32_16 = arith.constant 0 : i32
    %c0_i32_17 = arith.constant 0 : i32
    %c0_i32_18 = arith.constant 0 : i32
    %20 = tpu.memref_slice %arg1[%c0_i32, %c0_i32_16, %c0_i32_17, %c0_i32_18] : memref<1x18x18x36xf32, #tpu.memory_space<vmem>> -> memref<1x18x18x36xf32, #tpu.memory_space<vmem>>
    %21 = tpu.memref_squeeze %20 : memref<1x18x18x36xf32, #tpu.memory_space<vmem>> -> memref<18x18x36xf32, #tpu.memory_space<vmem>>
    %c1_19 = arith.constant 1 : index
    %c0_20 = arith.constant 0 : index
    %c0_21 = arith.constant 0 : index
    %22 = vector.load %21[%c1_19, %c0_20, %c0_21] : memref<18x18x36xf32, #tpu.memory_space<vmem>>, vector<16x16x36xf32>
    %23 = vector.shape_cast %22 : vector<16x16x36xf32> to vector<256x36xf32>
    %24 = arith.index_cast %1 : i32 to index
    %c108 = arith.constant 108 : index
    %25 = vector.load %arg7[%24, %c108] : memref<256x324xf32, #tpu.memory_space<vmem>>, vector<256x36xf32>
    tpu.vector_store %arg7[%24, %c108], %23 {strides = array<i32>} : memref<256x324xf32, #tpu.memory_space<vmem>>, vector<256x36xf32>,
    %c0_i32_22 = arith.constant 0 : i32
    %c0_i32_23 = arith.constant 0 : i32
    %c0_i32_24 = arith.constant 0 : i32
    %26 = tpu.memref_slice %arg1[%c0_i32, %c0_i32_22, %c0_i32_23, %c0_i32_24] : memref<1x18x18x36xf32, #tpu.memory_space<vmem>> -> memref<1x18x18x36xf32, #tpu.memory_space<vmem>>
    %27 = tpu.memref_squeeze %26 : memref<1x18x18x36xf32, #tpu.memory_space<vmem>> -> memref<18x18x36xf32, #tpu.memory_space<vmem>>
    %c1_25 = arith.constant 1 : index
    %c1_26 = arith.constant 1 : index
    %c0_27 = arith.constant 0 : index
    %28 = vector.load %27[%c1_25, %c1_26, %c0_27] : memref<18x18x36xf32, #tpu.memory_space<vmem>>, vector<16x16x36xf32>
    %29 = vector.shape_cast %28 : vector<16x16x36xf32> to vector<256x36xf32>
    %30 = arith.index_cast %1 : i32 to index
    %c144 = arith.constant 144 : index
    %31 = vector.load %arg7[%30, %c144] : memref<256x324xf32, #tpu.memory_space<vmem>>, vector<256x36xf32>
    tpu.vector_store %arg7[%30, %c144], %29 {strides = array<i32>} : memref<256x324xf32, #tpu.memory_space<vmem>>, vector<256x36xf32>,
    %c0_i32_28 = arith.constant 0 : i32
    %c0_i32_29 = arith.constant 0 : i32
    %c0_i32_30 = arith.constant 0 : i32
    %32 = tpu.memref_slice %arg1[%c0_i32, %c0_i32_28, %c0_i32_29, %c0_i32_30] : memref<1x18x18x36xf32, #tpu.memory_space<vmem>> -> memref<1x18x18x36xf32, #tpu.memory_space<vmem>>
    %33 = tpu.memref_squeeze %32 : memref<1x18x18x36xf32, #tpu.memory_space<vmem>> -> memref<18x18x36xf32, #tpu.memory_space<vmem>>
    %c1_31 = arith.constant 1 : index
    %c2_32 = arith.constant 2 : index
    %c0_33 = arith.constant 0 : index
    %34 = vector.load %33[%c1_31, %c2_32, %c0_33] : memref<18x18x36xf32, #tpu.memory_space<vmem>>, vector<16x16x36xf32>
    %35 = vector.shape_cast %34 : vector<16x16x36xf32> to vector<256x36xf32>
    %36 = arith.index_cast %1 : i32 to index
    %c180 = arith.constant 180 : index
    %37 = vector.load %arg7[%36, %c180] : memref<256x324xf32, #tpu.memory_space<vmem>>, vector<256x36xf32>
    tpu.vector_store %arg7[%36, %c180], %35 {strides = array<i32>} : memref<256x324xf32, #tpu.memory_space<vmem>>, vector<256x36xf32>,
    %c0_i32_34 = arith.constant 0 : i32
    %c0_i32_35 = arith.constant 0 : i32
    %c0_i32_36 = arith.constant 0 : i32
    %38 = tpu.memref_slice %arg1[%c0_i32, %c0_i32_34, %c0_i32_35, %c0_i32_36] : memref<1x18x18x36xf32, #tpu.memory_space<vmem>> -> memref<1x18x18x36xf32, #tpu.memory_space<vmem>>
    %39 = tpu.memref_squeeze %38 : memref<1x18x18x36xf32, #tpu.memory_space<vmem>> -> memref<18x18x36xf32, #tpu.memory_space<vmem>>
    %c2_37 = arith.constant 2 : index
    %c0_38 = arith.constant 0 : index
    %c0_39 = arith.constant 0 : index
    %40 = vector.load %39[%c2_37, %c0_38, %c0_39] : memref<18x18x36xf32, #tpu.memory_space<vmem>>, vector<16x16x36xf32>
    %41 = vector.shape_cast %40 : vector<16x16x36xf32> to vector<256x36xf32>
    %42 = arith.index_cast %1 : i32 to index
    %c216 = arith.constant 216 : index
    %43 = vector.load %arg7[%42, %c216] : memref<256x324xf32, #tpu.memory_space<vmem>>, vector<256x36xf32>
    tpu.vector_store %arg7[%42, %c216], %41 {strides = array<i32>} : memref<256x324xf32, #tpu.memory_space<vmem>>, vector<256x36xf32>,
    %c0_i32_40 = arith.constant 0 : i32
    %c0_i32_41 = arith.constant 0 : i32
    %c0_i32_42 = arith.constant 0 : i32
    %44 = tpu.memref_slice %arg1[%c0_i32, %c0_i32_40, %c0_i32_41, %c0_i32_42] : memref<1x18x18x36xf32, #tpu.memory_space<vmem>> -> memref<1x18x18x36xf32, #tpu.memory_space<vmem>>
    %45 = tpu.memref_squeeze %44 : memref<1x18x18x36xf32, #tpu.memory_space<vmem>> -> memref<18x18x36xf32, #tpu.memory_space<vmem>>
    %c2_43 = arith.constant 2 : index
    %c1_44 = arith.constant 1 : index
    %c0_45 = arith.constant 0 : index
    %46 = vector.load %45[%c2_43, %c1_44, %c0_45] : memref<18x18x36xf32, #tpu.memory_space<vmem>>, vector<16x16x36xf32>
    %47 = vector.shape_cast %46 : vector<16x16x36xf32> to vector<256x36xf32>
    %48 = arith.index_cast %1 : i32 to index
    %c252 = arith.constant 252 : index
    %49 = vector.load %arg7[%48, %c252] : memref<256x324xf32, #tpu.memory_space<vmem>>, vector<256x36xf32>
    tpu.vector_store %arg7[%48, %c252], %47 {strides = array<i32>} : memref<256x324xf32, #tpu.memory_space<vmem>>, vector<256x36xf32>,
    %c0_i32_46 = arith.constant 0 : i32
    %c0_i32_47 = arith.constant 0 : i32
    %c0_i32_48 = arith.constant 0 : i32
    %50 = tpu.memref_slice %arg1[%c0_i32, %c0_i32_46, %c0_i32_47, %c0_i32_48] : memref<1x18x18x36xf32, #tpu.memory_space<vmem>> -> memref<1x18x18x36xf32, #tpu.memory_space<vmem>>
    %51 = tpu.memref_squeeze %50 : memref<1x18x18x36xf32, #tpu.memory_space<vmem>> -> memref<18x18x36xf32, #tpu.memory_space<vmem>>
    %c2_49 = arith.constant 2 : index
    %c2_50 = arith.constant 2 : index
    %c0_51 = arith.constant 0 : index
    %52 = vector.load %51[%c2_49, %c2_50, %c0_51] : memref<18x18x36xf32, #tpu.memory_space<vmem>>, vector<16x16x36xf32>
    %53 = vector.shape_cast %52 : vector<16x16x36xf32> to vector<256x36xf32>
    %54 = arith.index_cast %1 : i32 to index
    %c288 = arith.constant 288 : index
    %55 = vector.load %arg7[%54, %c288] : memref<256x324xf32, #tpu.memory_space<vmem>>, vector<256x36xf32>
    tpu.vector_store %arg7[%54, %c288], %53 {strides = array<i32>} : memref<256x324xf32, #tpu.memory_space<vmem>>, vector<256x36xf32>,
    %c1_i32 = arith.constant 1 : i32
    %c0_52 = arith.constant 0 : index
    %c0_53 = arith.constant 0 : index
    %56 = vector.load %arg2[%c0_52, %c0_53] : memref<128x324xf32, #tpu.memory_space<vmem>>, vector<128x324xf32>
    %c0_54 = arith.constant 0 : index
    %c0_55 = arith.constant 0 : index
    %57 = vector.load %arg7[%c0_54, %c0_55] : memref<256x324xf32, #tpu.memory_space<vmem>>, vector<256x324xf32>
    %cst = arith.constant dense<0.000000e+00> : vector<128x256xf32>
    %58 = tpu.matmul %56, %57, %cst {dimension_numbers = #tpu.dot_dimension_numbers<[1], [1], [0], [0], [0, 0, 1, 0], [], []>} : vector<128x324xf32>, vector<256x324xf32>, vector<128x256xf32> -> vector<128x256xf32>
    %c0_56 = arith.constant 0 : index
    %c0_57 = arith.constant 0 : index
    %59 = vector.load %arg3[%c0_56, %c0_57] : memref<128x1xf32, #tpu.memory_space<vmem>>, vector<128x1xf32>
    %60 = vector.broadcast %59 : vector<128x1xf32> to vector<128x256xf32>
    %61 = arith.addf %58, %60 : vector<128x256xf32>
    %c0_58 = arith.constant 0 : index
    %c0_59 = arith.constant 0 : index
    %62 = vector.load %arg8[%c0_58, %c0_59] : memref<128x256xf32, #tpu.memory_space<vmem>>, vector<128x256xf32>
    tpu.vector_store %arg8[%c0_58, %c0_59], %61 {strides = array<i32>} : memref<128x256xf32, #tpu.memory_space<vmem>>, vector<128x256xf32>,
    %c0_i32_60 = arith.constant 0 : i32
    %c256_i32_61 = arith.constant 256 : i32
    %63 = arith.muli %c0_i32_60, %c256_i32_61 : i32
    %64 = tpu.assume_multiple %63, 256 : i32
    %c0_62 = arith.constant 0 : index
    %65 = arith.index_cast %64 : i32 to index
    %66 = vector.load %arg8[%c0_62, %65] : memref<128x256xf32, #tpu.memory_space<vmem>>, vector<96x256xf32>
    %cst_63 = arith.constant 5.000000e-01 : f32
    %67 = vector.broadcast %cst_63 : f32 to vector<96x256xf32>
    %68 = arith.mulf %67, %66 : vector<96x256xf32>
    %69 = math.tanh %68 : vector<96x256xf32>
    %cst_64 = arith.constant 5.000000e-01 : f32
    %70 = vector.broadcast %cst_64 : f32 to vector<96x256xf32>
    %71 = arith.mulf %70, %69 : vector<96x256xf32>
    %cst_65 = arith.constant 5.000000e-01 : f32
    %72 = vector.broadcast %cst_65 : f32 to vector<96x256xf32>
    %73 = arith.addf %71, %72 : vector<96x256xf32>
    %c96 = arith.constant 96 : index
    %74 = arith.index_cast %64 : i32 to index
    %75 = vector.load %arg8[%c96, %74] : memref<128x256xf32, #tpu.memory_space<vmem>>, vector<32x256xf32>
    %76 = math.tanh %75 : vector<32x256xf32>
    %77 = vector.extract_strided_slice %73 {offsets = [0, 0], sizes = [32, 256], strides = [1, 1]} : vector<96x256xf32> to vector<32x256xf32>
    %78 = vector.extract_strided_slice %73 {offsets = [32, 0], sizes = [32, 256], strides = [1, 1]} : vector<96x256xf32> to vector<32x256xf32>
    %79 = vector.extract_strided_slice %73 {offsets = [64, 0], sizes = [32, 256], strides = [1, 1]} : vector<96x256xf32> to vector<32x256xf32>
    %80 = arith.index_cast %c0_i32_60 : i32 to index
    %c0_66 = arith.constant 0 : index
    %c0_67 = arith.constant 0 : index
    %81 = vector.load %arg4[%80, %c0_66, %c0_67] : memref<1x32x256xf32, #tpu.memory_space<vmem>>, vector<1x32x256xf32>
    %82 = vector.shape_cast %81 : vector<1x32x256xf32> to vector<32x256xf32>
    %83 = arith.mulf %78, %82 : vector<32x256xf32>
    %84 = arith.mulf %77, %76 : vector<32x256xf32>
    %85 = arith.addf %83, %84 : vector<32x256xf32>
    %86 = math.tanh %85 : vector<32x256xf32>
    %87 = arith.mulf %79, %86 : vector<32x256xf32>
    %88 = arith.index_cast %c0_i32_60 : i32 to index
    %c0_68 = arith.constant 0 : index
    %c0_69 = arith.constant 0 : index
    %89 = vector.load %arg6[%88, %c0_68, %c0_69] : memref<1x32x256xf32, #tpu.memory_space<vmem>>, vector<1x32x256xf32>
    %90 = vector.shape_cast %89 : vector<1x32x256xf32> to vector<32x256xf32>
    %91 = vector.shape_cast %85 : vector<32x256xf32> to vector<1x32x256xf32>
    tpu.vector_store %arg6[%88, %c0_68, %c0_69], %91 {strides = array<i32>} : memref<1x32x256xf32, #tpu.memory_space<vmem>>, vector<1x32x256xf32>,
    %92 = arith.index_cast %c0_i32_60 : i32 to index
    %c0_70 = arith.constant 0 : index
    %c0_71 = arith.constant 0 : index
    %93 = vector.load %arg5[%92, %c0_70, %c0_71] : memref<1x32x256xf32, #tpu.memory_space<vmem>>, vector<1x32x256xf32>
    %94 = vector.shape_cast %93 : vector<1x32x256xf32> to vector<32x256xf32>
    %95 = vector.shape_cast %87 : vector<32x256xf32> to vector<1x32x256xf32>
    tpu.vector_store %arg5[%92, %c0_70, %c0_71], %95 {strides = array<i32>} : memref<1x32x256xf32, #tpu.memory_space<vmem>>, vector<1x32x256xf32>,
    %c1_i32_72 = arith.constant 1 : i32
    return
  }
  func.func @transform_0(%arg0: i32) -> (i32, i32, i32, i32) {
    %c0_i32 = arith.constant 0 : i32
    %c0_i32_0 = arith.constant 0 : i32
    %c0_i32_1 = arith.constant 0 : i32
    %c0_i32_2 = arith.constant 0 : i32
    return %arg0, %c0_i32, %c0_i32_0, %c0_i32_1 : i32, i32, i32, i32
  }
  func.func @transform_1(%arg0: i32) -> (i32, i32) {
    %c0_i32 = arith.constant 0 : i32
    %c0_i32_0 = arith.constant 0 : i32
    %c0_i32_1 = arith.constant 0 : i32
    return %c0_i32, %c0_i32_0 : i32, i32
  }
  func.func @transform_2(%arg0: i32) -> (i32, i32) {
    %c0_i32 = arith.constant 0 : i32
    %c0_i32_0 = arith.constant 0 : i32
    %c0_i32_1 = arith.constant 0 : i32
    return %c0_i32, %c0_i32_0 : i32, i32
  }
  func.func @transform_3(%arg0: i32) -> (i32, i32, i32) {
    %c0_i32 = arith.constant 0 : i32
    %c0_i32_0 = arith.constant 0 : i32
    %c0_i32_1 = arith.constant 0 : i32
    return %arg0, %c0_i32, %c0_i32_0 : i32, i32, i32
  }
  func.func @transform_4(%arg0: i32) -> (i32, i32, i32) {
    %c0_i32 = arith.constant 0 : i32
    %c0_i32_0 = arith.constant 0 : i32
    %c0_i32_1 = arith.constant 0 : i32
    return %arg0, %c0_i32, %c0_i32_0 : i32, i32, i32
  }
  func.func @transform_5(%arg0: i32) -> (i32, i32, i32) {
    %c0_i32 = arith.constant 0 : i32
    %c0_i32_0 = arith.constant 0 : i32
    %c0_i32_1 = arith.constant 0 : i32
    return %arg0, %c0_i32, %c0_i32_0 : i32, i32, i32
  }
}

</mosaic_0001>

<bundles_post_ra>
// kernel: tpu_custom_call.1
= control target key start
LH: loop header
LB: loop body
LE: loop exit
PB: predicated region body
PF: predicated region fallthrough
CT: control target
= control target key end

     0   :  { %11 = vsyncpa [#allocation5], 0  ;;  %s5314_s0 = inlined_call_operand.vmem [shape: f32[2,18,18,36], index: 0, kind: input, shape index: {}]   ;;  %s5315_s1 = inlined_call_operand.vmem [shape: f32[128,324], index: 1, kind: input, shape index: {}]   ;;  %s5316_s2 = inlined_call_operand.vmem [shape: f32[128,1], index: 2, kind: input, shape index: {}]   ;;  %s5317_s3 = inlined_call_operand.vmem [shape: f32[2,32,256], index: 3, kind: input, shape index: {}]   ;;  %s5318_s4 = inlined_call_operand.hbm [shape: f32[2,32,256], index: 4, kind: output, shape index: {0}]   ;;  %s5319_s5 = inlined_call_operand.hbm [shape: f32[2,32,256], index: 5, kind: output, shape index: {1}]  }
   0x1   :  { %13 = vsyncpa [#allocation5 + $0x1], 0 }
   0x2   :  { %14 = vsyncpa [#allocation7], 0 }
   0x3   :  { %16 = vsyncpa [#allocation7 + $0x1], 0  ;;  %s3609_s18 = smov 0   ;;  %s3611_s19 = smov 0  }
   0x4   :  { %s3613_s20 = smov 0   ;;  %s3615_s21 = smov 0  }
   0x5 LB: > { %s3630_s22 = sadd.s32 4294967295, %s3565_s21   ;;  %s3014_s23 = sadd.s32 4294967294, %s3565_s21   ;;  %s3565_s21 = sphi %s3615_s21, %s5325_s21   ;;  %s3561_s20 = sphi %s3613_s20, %s5324_s20   ;;  %s3557_s19 = sphi %s3611_s19, %s5323_s19   ;;  %s3553_s18 = sphi %s3609_s18, %s5322_s18  }
   0x6   : > { %s3634_s24 = sadd.s32 1, %s3565_s21   ;;  %s123_s25 = sadd.s32 1, %s3561_s20 }
   0x7   : > { %s120_s26 = ssub.s32 %s3565_s21, %s3634_s24  ;;  %p133_p0 = scmp.ne.s32.totalorder %s3561_s20, %s3557_s19 }
   0x8   : > { %p121_p1 = scmp.eq.s32.totalorder %s120_s26, 0  ;;  %p134_p2 = scmp.eq.s32.totalorder %s3630_s22, 1 }
   0x9   : > { %p139_p3 = scmp.ne.s32.totalorder %s3557_s19, %s3553_s18  ;;  %p140_p4 = scmp.eq.s32.totalorder %s3014_s23, 1 }
   0xa   : > { %s3645_s27 = scalar_select %p121_p1, %s3561_s20, %s123_s25  }
   0xb   : > { %p3647_p5 = por %p134_p2, %p133_p0  ;;  %p3651_p6 = por %p140_p4, %p139_p3 }
   0xc   : > { %p3017_p7 = scmp.ge.s32.totalorder %s3565_s21, 1  ;;  %p206_p8 = scmp.lt.s32.totalorder %s3565_s21, 3 }
   0xe   : > { %p207_p9 = pnand %p3017_p7, %p206_p8 }
   0xf   : > { %p244_p10 = scmp.lt.s32.totalorder (!%p207_p9), %s3630_s22, 1  ;;  %s3567_s10 = smov (!%p207_p9), 36  }
  0x10   : > { %210 = sbr.rel (%p207_p9) target bundleno = 976 (0x3d0), region = 36  ;;  %s3568_s11 = smov (!%p207_p9), 72  }
  0x11   : > { %s3569_s12 = smov (!%p207_p9), 16   ;;  %s3570_s13 = smov (!%p207_p9), 108  }
  0x12   : > { %s3571_s14 = smov (!%p207_p9), 88   ;;  %s3572_s15 = smov (!%p207_p9), 52  }
  0x13   : > { %s3573_s16 = smov (!%p207_p9), 124   ;;  %s3574_s17 = smov (!%p207_p9), 32  }
  0x14   : > { %s5177_s8 = sand.u32 (!%p207_p9), 1, %s3557_s19   ;;  %s3576_s25 = smov (!%p207_p9), [#allocation6]  }
  0x15   : > { %s3659_s30 = scalar_select %p244_p10, %s3630_s22, 1  ;;  %vm289_vm0 = vcmask 293888   ;;  %vm482_vm1 = vcmask 589088   ;;  %vm675_vm2 = vcmask 884288   ;;  %vm871_vm3 = vcmask 130048  }
  0x16   : > { %vm1095_vm4 = vcmask 425088   ;;  %vm1288_vm5 = vcmask 720288   ;;  %vm1482_vm6 = vcmask 1015488   ;;  %vm869_vm7 = vcmask 1048416  }
  0x17   : > { %s3338_s6 = smul.u32 432, %s3659_s30  ;;  %vm1675_vm8 = vcmask 1048544   ;;  %vm1677_vm9 = vcmask 261120   ;;  %vm1901_vm10 = vcmask 556288   ;;  %vm2174_vm11 = vcmask 556032   ;;  %s3271_s26 = sshll.u32 %s3659_s30, 6 }
  0x18   : > { %s5165_s7 = scalar_lea.vmem %s5317_s3, %s3271_s26  ;;  %s3479_s26 = sshll.u32 %s3576_s25, 4  ;;  %s3480_s26 = int_to_ptr.vmem [resolvable:$false] %s3479_s26 }
  0x19   : > { %s3665_s9 = scalar_lea.vmem %s5314_s0, %s3338_s6  ;;  %s3481_s30 = scalar_lea.vmem %s3480_s26, 2048 }
  0x1a   : > { %v3668_v0 = vld [vmem:[%s3665_s9 + $0x19] sm:$0xff]  ;;  %v322_v1 = vld [vmem:[%s3665_s9 + $0x1] sm:$0xff]  ;;  %v323_v3 = vld [vmem:[%s3665_s9 + $0x9] sm:$0xff] }
  0x1b   : > { %390 = vrot.lane.b32.xlu1 %v3668_v0, %s3567_s10  ;;  %386 = vrot.lane.b32.xlu0 %v322_v1, %s3567_s10  ;;  %v3675_v2 = vld [vmem:[%s3665_s9 + $0x21] sm:$0xff]  ;;  %v3682_v4 = vld [vmem:[%s3665_s9 + $0x39] sm:$0xff] }
  0x1c   : > { %v3685_v5 = vld [vmem:[%s3665_s9 + $0x31] sm:$0xff]  ;;  %v3695_v7 = vld [vmem:[%s3665_s9 + $0x49] sm:$0xff]  ;;  %v3705_v9 = vld [vmem:[%s3665_s9 + $0x61] sm:$0xff] }
  0x1d   : > { %v3692_v6 = vld [vmem:[%s3665_s9 + $0x51] sm:$0xff]  ;;  %v3702_v8 = vld [vmem:[%s3665_s9 + $0x69] sm:$0xff]  ;;  %v3711_v11 = vld [vmem:[%s3665_s9 + $0xe0] sm:$0xff] }
  0x1e   : > { %v3708_v10 = vld [vmem:[%s3665_s9 + $0xc8] sm:$0xff]  ;;  %v3714_v12 = vld [vmem:[%s3665_s9 + $0xc0] sm:$0xff]  ;;  %309 = vst.msk [vmem:[#allocation2 + $0x1c8] sm:$0xff] %vm289_vm0, %v3711_v11  ;;  %v3728_v14 = vld [vmem:[%s3665_s9 + $0xd8] sm:$0xff] }
  0x1f   : > { %392 = vrot.lane.b32.xlu1 %v3675_v2, %s3567_s10  ;;  %388 = vrot.lane.b32.xlu0 %v323_v3, %s3567_s10  ;;  %307 = vst.msk [vmem:[#allocation2 + $0x198] sm:$0xff] %vm289_vm0, %v3708_v10  ;;  %v3725_v13 = vld [vmem:[%s3665_s9 + $0x81] sm:$0xff]  ;;  %306 = vst.msk [vmem:[#allocation2 + $0x180] sm:$0xff] %vm289_vm0, %v3714_v12  ;;  %v3733_v15 = vld [vmem:[%s3665_s9 + $0x79] sm:$0xff] }
  0x20   : > { %v3736_v16 = vld [vmem:[%s3665_s9 + $0xb0] sm:$0xff]  ;;  %v3739_v17 = vld [vmem:[%s3665_s9 + $0x18] sm:$0xff]  ;;  %308 = vst.msk [vmem:[#allocation2 + $0x1b0] sm:$0xff] %vm289_vm0, %v3728_v14  ;;  %v254_v18 = vld [vmem:[%s3665_s9] sm:$0xff] }
  0x21   : > { %292 = vst.msk [vmem:[#allocation2 + $0x30] sm:$0xff] %vm289_vm0, %v3739_v17  ;;  %v3747_v19 = vld [vmem:[%s3665_s9 + $0xa8] sm:$0xff]  ;;  %305 = vst.msk [vmem:[#allocation2 + $0x168] sm:$0xff] %vm289_vm0, %v3736_v16  ;;  %v3752_v20 = vld [vmem:[%s3665_s9 + $0x99] sm:$0xff] }
  0x22   : > { %290 = vst.msk [vmem:[#allocation2] sm:$0xff] %vm289_vm0, %v254_v18  ;;  %v3756_v21 = vld [vmem:[%s3665_s9 + $0x20] sm:$0xff]  ;;  %v255_v22 = vld [vmem:[%s3665_s9 + $0x8] sm:$0xff]  ;;  %v3760_v23 = vld [vmem:[%s3665_s9 + $0x38] sm:$0xff] }
  0x23   : > { %396 = vrot.lane.b32.xlu1 %v3682_v4, %s3567_s10  ;;  %394 = vrot.lane.b32.xlu0 %v3685_v5, %s3567_s10  ;;  %304 = vst.msk [vmem:[#allocation2 + $0x150] sm:$0xff] %vm289_vm0, %v3747_v19  ;;  %293 = vst.msk [vmem:[#allocation2 + $0x48] sm:$0xff] %vm289_vm0, %v3756_v21  ;;  %v3774_v24 = vld [vmem:[%s3665_s9 + $0x30] sm:$0xff]  ;;  %v3787_v27 = vld [vmem:[%s3665_s9 + $0x48] sm:$0xff] }
  0x24   : > { %291 = vst.msk [vmem:[#allocation2 + $0x18] sm:$0xff] %vm289_vm0, %v255_v22  ;;  %295 = vst.msk [vmem:[#allocation2 + $0x78] sm:$0xff] %vm289_vm0, %v3760_v23  ;;  %v3777_v25 = vld [vmem:[%s3665_s9 + $0x50] sm:$0xff]  ;;  %v3790_v28 = vld [vmem:[%s3665_s9 + $0x98] sm:$0xff] }
  0x25   : > { %v3780_v26 = vld [vmem:[%s3665_s9 + $0x91] sm:$0xff]  ;;  %294 = vst.msk [vmem:[#allocation2 + $0x60] sm:$0xff] %vm289_vm0, %v3774_v24  ;;  %297 = vst.msk [vmem:[#allocation2 + $0xa8] sm:$0xff] %vm289_vm0, %v3777_v25  ;;  %v3795_v29 = vld [vmem:[%s3665_s9 + $0x68] sm:$0xff] }
  0x26   : > { %296 = vst.msk [vmem:[#allocation2 + $0x90] sm:$0xff] %vm289_vm0, %v3787_v27  ;;  %v3798_v30 = vld [vmem:[%s3665_s9 + $0x60] sm:$0xff]  ;;  %303 = vst.msk [vmem:[#allocation2 + $0x138] sm:$0xff] %vm289_vm0, %v3790_v28  ;;  %v3812_v32 = vld [vmem:[%s3665_s9 + $0x78] sm:$0xff] }
  0x27   : > { %400 = vrot.lane.b32.xlu1 %v3692_v6, %s3567_s10  ;;  %398 = vrot.lane.b32.xlu0 %v3695_v7, %s3567_s10  ;;  %v3801_v31 = vld [vmem:[%s3665_s9 + $0x80] sm:$0xff]  ;;  %299 = vst.msk [vmem:[#allocation2 + $0xd8] sm:$0xff] %vm289_vm0, %v3795_v29  ;;  %298 = vst.msk [vmem:[#allocation2 + $0xc0] sm:$0xff] %vm289_vm0, %v3798_v30  ;;  %v3815_v33 = vld [vmem:[%s3665_s9 + $0x90] sm:$0xff] }
  0x28   : > { %301 = vst.msk [vmem:[#allocation2 + $0x108] sm:$0xff] %vm289_vm0, %v3801_v31  ;;  %300 = vst.msk [vmem:[#allocation2 + $0xf0] sm:$0xff] %vm289_vm0, %v3812_v32  ;;  %v3826_v34 = vld [vmem:[%s3665_s9 + $0xb1] sm:$0xff]  ;;  %v3829_v35 = vld [vmem:[%s3665_s9 + $0xa9] sm:$0xff] }
  0x29   : > { %302 = vst.msk [vmem:[#allocation2 + $0x120] sm:$0xff] %vm289_vm0, %v3815_v33  ;;  %v274_v36 = vld [vmem:[%s3665_s9 + $0xf0] sm:$0xff]  ;;  %v275_v37 = vld [vmem:[%s3665_s9 + $0xf8] sm:$0xff]  ;;  %v3843_v39 = vld [vmem:[%s3665_s9 + $0xc1] sm:$0xff] }
  0x2a   : > { %310 = vst.msk [vmem:[#allocation2 + $0x1e0] sm:$0xff] %vm289_vm0, %v274_v36  ;;  %311 = vst.msk [vmem:[#allocation2 + $0x1f8] sm:$0xff] %vm289_vm0, %v275_v37  ;;  %v3840_v38 = vld [vmem:[%s3665_s9 + $0xc9] sm:$0xff]  ;;  %v3854_v42 = vld [vmem:[%s3665_s9 + $0xe1] sm:$0xff] }
  0x2b   : > { %404 = vrot.lane.b32.xlu1 %v3702_v8, %s3567_s10  ;;  %402 = vrot.lane.b32.xlu0 %v3705_v9, %s3567_s10  ;;  %v276_v40 = vld [vmem:[%s3665_s9 + $0x108] sm:$0xff]  ;;  %v277_v41 = vld [vmem:[%s3665_s9 + $0x110] sm:$0xff] }
  0x2c   : > { %312 = vst.msk [vmem:[#allocation2 + $0x210] sm:$0xff] %vm289_vm0, %v276_v40  ;;  %313 = vst.msk [vmem:[#allocation2 + $0x228] sm:$0xff] %vm289_vm0, %v277_v41  ;;  %v3857_v43 = vld [vmem:[%s3665_s9 + $0xd9] sm:$0xff]  ;;  %v279_v45 = vld [vmem:[%s3665_s9 + $0x128] sm:$0xff] }
  0x2d   : > { %v278_v44 = vld [vmem:[%s3665_s9 + $0x120] sm:$0xff]  ;;  %315 = vst.msk [vmem:[#allocation2 + $0x258] sm:$0xff] %vm289_vm0, %v279_v45  ;;  %v342_v47 = vld [vmem:[%s3665_s9 + $0xf1] sm:$0xff]  ;;  %v344_v51 = vld [vmem:[%s3665_s9 + $0x109] sm:$0xff] }
  0x2e   : > { %314 = vst.msk [vmem:[#allocation2 + $0x240] sm:$0xff] %vm289_vm0, %v278_v44  ;;  %v343_v46 = vld [vmem:[%s3665_s9 + $0xf9] sm:$0xff]  ;;  %v345_v50 = vld [vmem:[%s3665_s9 + $0x111] sm:$0xff]  ;;  %v347_v54 = vld [vmem:[%s3665_s9 + $0x129] sm:$0xff] }
  0x2f   : > { %408 = vrot.lane.b32.xlu1 %v3725_v13, %s3567_s10  ;;  %406 = vrot.lane.b32.xlu0 %v3733_v15, %s3567_s10  ;;  %v3870_v48 = vld [vmem:[%s3665_s9 + $0x138] sm:$0xff]  ;;  %v3873_v49 = vld [vmem:[%s3665_s9 + $0x140] sm:$0xff] }
  0x30   : > { %316 = vst.msk [vmem:[#allocation2 + $0x270] sm:$0xff] %vm289_vm0, %v3870_v48  ;;  %317 = vst.msk [vmem:[#allocation2 + $0x288] sm:$0xff] %vm289_vm0, %v3873_v49  ;;  %v3884_v52 = vld [vmem:[%s3665_s9 + $0x150] sm:$0xff]  ;;  %v3887_v53 = vld [vmem:[%s3665_s9 + $0x158] sm:$0xff] }
  0x31   : > { %318 = vst.msk [vmem:[#allocation2 + $0x2a0] sm:$0xff] %vm289_vm0, %v3884_v52  ;;  %319 = vst.msk [vmem:[#allocation2 + $0x2b8] sm:$0xff] %vm289_vm0, %v3887_v53  ;;  %v346_v55 = vld [vmem:[%s3665_s9 + $0x121] sm:$0xff]  ;;  %v3901_v57 = vld [vmem:[%s3665_s9 + $0x170] sm:$0xff] }
  0x32   : > { %v3898_v56 = vld [vmem:[%s3665_s9 + $0x168] sm:$0xff]  ;;  %321 = vst.msk [vmem:[#allocation2 + $0x2e8] sm:$0xff] %vm289_vm0, %v3901_v57  ;;  %v348_v59 = vld [vmem:[%s3665_s9 + $0x139] sm:$0xff]  ;;  %v350_v61 = vld [vmem:[%s3665_s9 + $0x151] sm:$0xff] }
  0x33   : > { %412 = vrot.lane.b32.xlu1 %v3752_v20, %s3567_s10  ;;  %410 = vrot.lane.b32.xlu0 %v3780_v26, %s3567_s10  ;;  %320 = vst.msk [vmem:[#allocation2 + $0x2d0] sm:$0xff] %vm289_vm0, %v3898_v56  ;;  %v349_v58 = vld [vmem:[%s3665_s9 + $0x141] sm:$0xff]  ;;  %v351_v60 = vld [vmem:[%s3665_s9 + $0x159] sm:$0xff] }
  0x34   : > { %v353_v62 = vld [vmem:[%s3665_s9 + $0x171] sm:$0xff]  ;;  %v352_v63 = vld [vmem:[%s3665_s9 + $0x169] sm:$0xff]  ;;  %v3929_v22 = vld [vmem:[%s3665_s9 + $0x1a] sm:$0xff] }
  0x35   : > { %v516_v1 = vld [vmem:[%s3665_s9 + $0xa] sm:$0xff]  ;;  %v515_v3 = vld [vmem:[%s3665_s9 + $0x2] sm:$0xff]  ;;  %v3936_v36 = vld [vmem:[%s3665_s9 + $0x3a] sm:$0xff] }
  0x36   : > { %v3926_v18 = vld [vmem:[%s3665_s9 + $0x22] sm:$0xff]  ;;  %v3939_v37 = vld [vmem:[%s3665_s9 + $0x32] sm:$0xff]  ;;  %v3949_v41 = vld [vmem:[%s3665_s9 + $0x4a] sm:$0xff] }
  0x37   : > { %416 = vrot.lane.b32.xlu1 %v3826_v34, %s3567_s10  ;;  %414 = vrot.lane.b32.xlu0 %v3829_v35, %s3567_s10  ;;  %v3946_v40 = vld [vmem:[%s3665_s9 + $0x52] sm:$0xff]  ;;  %v3956_v44 = vld [vmem:[%s3665_s9 + $0x6a] sm:$0xff] }
  0x38   : > { %v3959_v45 = vld [vmem:[%s3665_s9 + $0x62] sm:$0xff] }
  0x3b   : > { %420 = vrot.lane.b32.xlu1 %v3840_v38, %s3567_s10  ;;  %418 = vrot.lane.b32.xlu0 %v3843_v39, %s3567_s10 }
  0x3f   : > { %424 = vrot.lane.b32.xlu1 %v3854_v42, %s3567_s10  ;;  %422 = vrot.lane.b32.xlu0 %v3857_v43, %s3567_s10 }
  0x43   : > { %428 = vrot.lane.b32.xlu1 %v343_v46, %s3567_s10  ;;  %426 = vrot.lane.b32.xlu0 %v342_v47, %s3567_s10  ;;  %v3102_v46 = vld [vmem:[%s3665_s9 + $0xca] sm:$0xff]  ;;  %v530_v47 = vld [vmem:[%s3665_s9 + $0xb2] sm:$0xff] }
  0x47   : > { %432 = vrot.lane.b32.xlu1 %v345_v50, %s3567_s10  ;;  %430 = vrot.lane.b32.xlu0 %v344_v51, %s3567_s10  ;;  %v3101_v50 = vld [vmem:[%s3665_s9 + $0xc2] sm:$0xff] }
  0x4b   : > { %436 = vrot.lane.b32.xlu1 %v347_v54, %s3567_s10  ;;  %434 = vrot.lane.b32.xlu0 %v346_v55, %s3567_s10 }
  0x4f   : > { %440 = vrot.lane.b32.xlu1 %v349_v58, %s3567_s10  ;;  %438 = vrot.lane.b32.xlu0 %v348_v59, %s3567_s10  ;;  %v527_v58 = vld [vmem:[%s3665_s9 + $0x92] sm:$0xff] }
  0x53   : > { %444 = vrot.lane.b32.xlu1 %v351_v60, %s3567_s10  ;;  %442 = vrot.lane.b32.xlu0 %v350_v61, %s3567_s10 }
  0x57   : > { %448 = vrot.lane.b32.xlu1 %v353_v62, %s3567_s10  ;;  %446 = vrot.lane.b32.xlu0 %v352_v63, %s3567_s10  ;;  %v526_v63 = vld [vmem:[%s3665_s9 + $0x82] sm:$0xff] }
  0x5b   : > { %581 = vrot.lane.b32.xlu1 %v516_v1, %s3568_s11  ;;  %579 = vrot.lane.b32.xlu0 %v515_v3, %s3568_s11 }
  0x5f   : > { %585 = vrot.lane.b32.xlu1 %v3926_v18, %s3568_s11  ;;  %583 = vrot.lane.b32.xlu0 %v3929_v22, %s3568_s11 }
  0x63   : > { %589 = vrot.lane.b32.xlu1 %v3936_v36, %s3568_s11  ;;  %587 = vrot.lane.b32.xlu0 %v3939_v37, %s3568_s11 }
  0x67   : > { %593 = vrot.lane.b32.xlu1 %v3946_v40, %s3568_s11  ;;  %591 = vrot.lane.b32.xlu0 %v3949_v41, %s3568_s11 }
  0x6b   : > { %597 = vrot.lane.b32.xlu1 %v3956_v44, %s3568_s11  ;;  %595 = vrot.lane.b32.xlu0 %v3959_v45, %s3568_s11 }
  0x6f   : > { %1029 = vrot.lane.b32.xlu1 %v3840_v38, %s3569_s12  ;;  %803 = vrot.lane.b32.xlu0 %v3708_v10, %s3570_s13 }
  0x73   : > { %1416 = vrot.lane.b32.xlu1 %v3711_v11, %s3571_s14  ;;  %1222 = vrot.lane.b32.xlu0 %v3102_v46, %s3572_s15  ;;  %v529_v11 = vld [vmem:[%s3665_s9 + $0xaa] sm:$0xff] }
  0x77   : > { %801 = vrot.lane.b32.xlu1 %v3714_v12, %s3570_s13  ;;  %609 = vrot.lane.b32.xlu0 %v530_v47, %s3568_s11 }
  0x7b   : > { %1027 = vrot.lane.b32.xlu1 %v3843_v39, %s3569_s12  ;;  %1609 = vrot.lane.b32.xlu0 %v3854_v42, %s3573_s16 }
  0x7f   : > { %1414 = vrot.lane.b32.xlu1 %v3728_v14, %s3571_s14  ;;  %1220 = vrot.lane.b32.xlu0 %v3101_v50, %s3572_s15  ;;  %v528_v14 = vld [vmem:[%s3665_s9 + $0x9a] sm:$0xff] }
  0x80   : > { %v525_v50 = vld [vmem:[%s3665_s9 + $0x7a] sm:$0xff] }
  0x83   : > { %799 = vrot.lane.b32.xlu1 %v3736_v16, %s3570_s13  ;;  %607 = vrot.lane.b32.xlu0 %v529_v11, %s3568_s11 }
  0x87   : > { %1025 = vrot.lane.b32.xlu1 %v3826_v34, %s3569_s12  ;;  %1607 = vrot.lane.b32.xlu0 %v3857_v43, %s3573_s16 }
  0x8b   : > { %1412 = vrot.lane.b32.xlu1 %v3708_v10, %s3571_s14  ;;  %1218 = vrot.lane.b32.xlu0 %v530_v47, %s3572_s15 }
  0x8d   : > { %v391_v42 = vpop.permute.xlu1 %390  ;;  %v387_v51 = vpop.permute.xlu0 %386 }
  0x8e   : > { %485 = vst.msk [vmem:[#allocation2 + $0x30] sm:$0xff] %vm482_vm1, %v391_v42  ;;  %483 = vst.msk [vmem:[#allocation2] sm:$0xff] %vm482_vm1, %v387_v51 }
  0x8f   : > { %797 = vrot.lane.b32.xlu1 %v3747_v19, %s3570_s13  ;;  %605 = vrot.lane.b32.xlu0 %v528_v14, %s3568_s11 }
  0x91   : > { %v393_v43 = vpop.permute.xlu1 %392  ;;  %v389_v54 = vpop.permute.xlu0 %388 }
  0x92   : > { %486 = vst.msk [vmem:[#allocation2 + $0x48] sm:$0xff] %vm482_vm1, %v393_v43  ;;  %484 = vst.msk [vmem:[#allocation2 + $0x18] sm:$0xff] %vm482_vm1, %v389_v54 }
  0x93   : > { %1023 = vrot.lane.b32.xlu1 %v3829_v35, %s3569_s12  ;;  %1605 = vrot.lane.b32.xlu0 %v3840_v38, %s3573_s16 }
  0x95   : > { %v397_v10 = vpop.permute.xlu1 %396  ;;  %v395_v55 = vpop.permute.xlu0 %394 }
  0x96   : > { %488 = vst.msk [vmem:[#allocation2 + $0x78] sm:$0xff] %vm482_vm1, %v397_v10  ;;  %487 = vst.msk [vmem:[#allocation2 + $0x60] sm:$0xff] %vm482_vm1, %v395_v55 }
  0x97   : > { %1410 = vrot.lane.b32.xlu1 %v3714_v12, %s3571_s14  ;;  %1216 = vrot.lane.b32.xlu0 %v529_v11, %s3572_s15 }
  0x99   : > { %v401_v59 = vpop.permute.xlu1 %400  ;;  %v399_v60 = vpop.permute.xlu0 %398 }
  0x9a   : > { %490 = vst.msk [vmem:[#allocation2 + $0xa8] sm:$0xff] %vm482_vm1, %v401_v59  ;;  %489 = vst.msk [vmem:[#allocation2 + $0x90] sm:$0xff] %vm482_vm1, %v399_v60 }
  0x9b   : > { %795 = vrot.lane.b32.xlu1 %v3790_v28, %s3570_s13  ;;  %603 = vrot.lane.b32.xlu0 %v527_v58, %s3568_s11 }
  0x9d   : > { %v405_v38 = vpop.permute.xlu1 %404  ;;  %v403_v61 = vpop.permute.xlu0 %402 }
  0x9e   : > { %492 = vst.msk [vmem:[#allocation2 + $0xd8] sm:$0xff] %vm482_vm1, %v405_v38  ;;  %491 = vst.msk [vmem:[#allocation2 + $0xc0] sm:$0xff] %vm482_vm1, %v403_v61 }
  0x9f   : > { %1021 = vrot.lane.b32.xlu1 %v3752_v20, %s3569_s12  ;;  %1603 = vrot.lane.b32.xlu0 %v3843_v39, %s3573_s16 }
  0xa1   : > { %v409_v12 = vpop.permute.xlu1 %408  ;;  %v407_v62 = vpop.permute.xlu0 %406 }
  0xa2   : > { %494 = vst.msk [vmem:[#allocation2 + $0x108] sm:$0xff] %vm482_vm1, %v409_v12  ;;  %493 = vst.msk [vmem:[#allocation2 + $0xf0] sm:$0xff] %vm482_vm1, %v407_v62 }
  0xa3   : > { %1408 = vrot.lane.b32.xlu1 %v3736_v16, %s3571_s14  ;;  %1214 = vrot.lane.b32.xlu0 %v528_v14, %s3572_s15 }
  0xa5   : > { %v413_v1 = vpop.permute.xlu1 %412  ;;  %v411_v3 = vpop.permute.xlu0 %410 }
  0xa6   : > { %496 = vst.msk [vmem:[#allocation2 + $0x138] sm:$0xff] %vm482_vm1, %v413_v1  ;;  %495 = vst.msk [vmem:[#allocation2 + $0x120] sm:$0xff] %vm482_vm1, %v411_v3 }
  0xa7   : > { %793 = vrot.lane.b32.xlu1 %v3815_v33, %s3570_s13  ;;  %601 = vrot.lane.b32.xlu0 %v526_v63, %s3568_s11 }
  0xa9   : > { %v417_v39 = vpop.permute.xlu1 %416  ;;  %v415_v46 = vpop.permute.xlu0 %414 }
  0xaa   : > { %498 = vst.msk [vmem:[#allocation2 + $0x168] sm:$0xff] %vm482_vm1, %v417_v39  ;;  %497 = vst.msk [vmem:[#allocation2 + $0x150] sm:$0xff] %vm482_vm1, %v415_v46 }
  0xab   : > { %1019 = vrot.lane.b32.xlu1 %v3780_v26, %s3569_s12  ;;  %1601 = vrot.lane.b32.xlu0 %v3826_v34, %s3573_s16 }
  0xad   : > { %v421_v16 = vpop.permute.xlu1 %420  ;;  %v419_v47 = vpop.permute.xlu0 %418 }
  0xae   : > { %500 = vst.msk [vmem:[#allocation2 + $0x198] sm:$0xff] %vm482_vm1, %v421_v16  ;;  %499 = vst.msk [vmem:[#allocation2 + $0x180] sm:$0xff] %vm482_vm1, %v419_v47 }
  0xaf   : > { %1406 = vrot.lane.b32.xlu1 %v3747_v19, %s3571_s14  ;;  %1212 = vrot.lane.b32.xlu0 %v527_v58, %s3572_s15 }
  0xb1   : > { %v425_v11 = vpop.permute.xlu1 %424  ;;  %v423_v14 = vpop.permute.xlu0 %422 }
  0xb2   : > { %502 = vst.msk [vmem:[#allocation2 + $0x1c8] sm:$0xff] %vm482_vm1, %v425_v11  ;;  %501 = vst.msk [vmem:[#allocation2 + $0x1b0] sm:$0xff] %vm482_vm1, %v423_v14 }
  0xb3   : > { %791 = vrot.lane.b32.xlu1 %v3801_v31, %s3570_s13  ;;  %599 = vrot.lane.b32.xlu0 %v525_v50, %s3568_s11 }
  0xb5   : > { %v429_v34 = vpop.permute.xlu1 %428  ;;  %v427_v42 = vpop.permute.xlu0 %426 }
  0xb6   : > { %504 = vst.msk [vmem:[#allocation2 + $0x1f8] sm:$0xff] %vm482_vm1, %v429_v34  ;;  %503 = vst.msk [vmem:[#allocation2 + $0x1e0] sm:$0xff] %vm482_vm1, %v427_v42 }
  0xb7   : > { %1017 = vrot.lane.b32.xlu1 %v3725_v13, %s3569_s12  ;;  %1599 = vrot.lane.b32.xlu0 %v3829_v35, %s3573_s16 }
  0xb9   : > { %v433_v19 = vpop.permute.xlu1 %432  ;;  %v431_v51 = vpop.permute.xlu0 %430 }
  0xba   : > { %506 = vst.msk [vmem:[#allocation2 + $0x228] sm:$0xff] %vm482_vm1, %v433_v19  ;;  %505 = vst.msk [vmem:[#allocation2 + $0x210] sm:$0xff] %vm482_vm1, %v431_v51 }
  0xbb   : > { %1404 = vrot.lane.b32.xlu1 %v3790_v28, %s3571_s14  ;;  %1210 = vrot.lane.b32.xlu0 %v526_v63, %s3572_s15 }
  0xbd   : > { %v437_v43 = vpop.permute.xlu1 %436  ;;  %v435_v54 = vpop.permute.xlu0 %434 }
  0xbe   : > { %508 = vst.msk [vmem:[#allocation2 + $0x258] sm:$0xff] %vm482_vm1, %v437_v43  ;;  %507 = vst.msk [vmem:[#allocation2 + $0x240] sm:$0xff] %vm482_vm1, %v435_v54  ;;  %v3150_v54 = vld [vmem:[%s3665_s9 + $0x1a0] sm:$0xff] }
  0xbf   : > { %1597 = vrot.lane.b32.xlu1 %v3752_v20, %s3573_s16  ;;  %789 = vrot.lane.b32.xlu0 %v3812_v32, %s3570_s13 }
  0xc1   : > { %v441_v35 = vpop.permute.xlu1 %440  ;;  %v439_v10 = vpop.permute.xlu0 %438 }
  0xc2   : > { %510 = vst.msk [vmem:[#allocation2 + $0x288] sm:$0xff] %vm482_vm1, %v441_v35  ;;  %509 = vst.msk [vmem:[#allocation2 + $0x270] sm:$0xff] %vm482_vm1, %v439_v10  ;;  %v4224_v35 = vld [vmem:[%s3665_s9 + $0x18a] sm:$0xff] }
  0xc3   : > { %1208 = vrot.lane.b32.xlu1 %v525_v50, %s3572_s15  ;;  %1015 = vrot.lane.b32.xlu0 %v3733_v15, %s3569_s12 }
  0xc5   : > { %v445_v28 = vpop.permute.xlu1 %444  ;;  %v443_v55 = vpop.permute.xlu0 %442 }
  0xc6   : > { %512 = vst.msk [vmem:[#allocation2 + $0x2b8] sm:$0xff] %vm482_vm1, %v445_v28  ;;  %511 = vst.msk [vmem:[#allocation2 + $0x2a0] sm:$0xff] %vm482_vm1, %v443_v55  ;;  %v4236_v55 = vld [vmem:[%s3665_s9 + $0x172] sm:$0xff] }
  0xc7   : > { %787 = vrot.lane.b32.xlu1 %v3795_v29, %s3570_s13  ;;  %1402 = vrot.lane.b32.xlu0 %v3815_v33, %s3571_s14 }
  0xc9   : > { %v449_v20 = vpop.permute.xlu1 %448  ;;  %v447_v58 = vpop.permute.xlu0 %446 }
  0xca   : > { %514 = vst.msk [vmem:[#allocation2 + $0x2e8] sm:$0xff] %vm482_vm1, %v449_v20  ;;  %513 = vst.msk [vmem:[#allocation2 + $0x2d0] sm:$0xff] %vm482_vm1, %v447_v58 }
  0xcb   : > { %1013 = vrot.lane.b32.xlu1 %v3702_v8, %s3569_s12  ;;  %1595 = vrot.lane.b32.xlu0 %v3780_v26, %s3573_s16 }
  0xcd   : > { %v582_v59 = vpop.permute.xlu1 %581  ;;  %v580_v60 = vpop.permute.xlu0 %579 }
  0xce   : > { %677 = vst.msk [vmem:[#allocation2 + $0x18] sm:$0xff] %vm675_vm2, %v582_v59  ;;  %676 = vst.msk [vmem:[#allocation2] sm:$0xff] %vm675_vm2, %v580_v60  ;;  %v4245_v59 = vld [vmem:[%s3665_s9 + $0x181] sm:$0xff] }
  0xcf   : > { %1400 = vrot.lane.b32.xlu1 %v3801_v31, %s3571_s14  ;;  %1206 = vrot.lane.b32.xlu0 %v3956_v44, %s3572_s15  ;;  %v3182_v60 = vld [vmem:[%s3665_s9 + $0x1a1] sm:$0xff] }
  0xd1   : > { %v586_v33 = vpop.permute.xlu1 %585  ;;  %v584_v38 = vpop.permute.xlu0 %583 }
  0xd2   : > { %679 = vst.msk [vmem:[#allocation2 + $0x48] sm:$0xff] %vm675_vm2, %v586_v33  ;;  %678 = vst.msk [vmem:[#allocation2 + $0x30] sm:$0xff] %vm675_vm2, %v584_v38 }
  0xd3   : > { %1593 = vrot.lane.b32.xlu1 %v3725_v13, %s3573_s16  ;;  %785 = vrot.lane.b32.xlu0 %v3798_v30, %s3570_s13 }
  0xd5   : > { %v590_v26 = vpop.permute.xlu1 %589  ;;  %v588_v61 = vpop.permute.xlu0 %587 }
  0xd6   : > { %681 = vst.msk [vmem:[#allocation2 + $0x78] sm:$0xff] %vm675_vm2, %v590_v26  ;;  %680 = vst.msk [vmem:[#allocation2 + $0x60] sm:$0xff] %vm675_vm2, %v588_v61 }
  0xd7   : > { %1204 = vrot.lane.b32.xlu1 %v3959_v45, %s3572_s15  ;;  %1011 = vrot.lane.b32.xlu0 %v3705_v9, %s3569_s12 }
  0xd9   : > { %v594_v31 = vpop.permute.xlu1 %593  ;;  %v592_v44 = vpop.permute.xlu0 %591 }
  0xda   : > { %683 = vst.msk [vmem:[#allocation2 + $0xa8] sm:$0xff] %vm675_vm2, %v594_v31  ;;  %682 = vst.msk [vmem:[#allocation2 + $0x90] sm:$0xff] %vm675_vm2, %v592_v44  ;;  %v3214_v31 = vld [vmem:[%s3665_s9 + $0x1a2] sm:$0xff] }
  0xdb   : > { %783 = vrot.lane.b32.xlu1 %v3777_v25, %s3570_s13  ;;  %1398 = vrot.lane.b32.xlu0 %v3812_v32, %s3571_s14  ;;  %v4257_v44 = vld [vmem:[%s3665_s9 + $0x182] sm:$0xff] }
  0xdd   : > { %v598_v13 = vpop.permute.xlu1 %597  ;;  %v596_v12 = vpop.permute.xlu0 %595 }
  0xde   : > { %685 = vst.msk [vmem:[#allocation2 + $0xd8] sm:$0xff] %vm675_vm2, %v598_v13  ;;  %684 = vst.msk [vmem:[#allocation2 + $0xc0] sm:$0xff] %vm675_vm2, %v596_v12 }
  0xdf   : > { %1009 = vrot.lane.b32.xlu1 %v3692_v6, %s3569_s12  ;;  %1591 = vrot.lane.b32.xlu0 %v3733_v15, %s3573_s16 }
  0xe1   : > { %v1030_v45 = vpop.permute.xlu1 %1029  ;;  %v804_v62 = vpop.permute.xlu0 %803 }
  0xe2   : > { %902 = vst.msk [vmem:[#allocation2 + $0x170] sm:$0xff] %vm871_vm3, %v804_v62 }
  0xe3   : > { %1396 = vrot.lane.b32.xlu1 %v3795_v29, %s3571_s14  ;;  %1202 = vrot.lane.b32.xlu0 %v3946_v40, %s3572_s15  ;;  %1111 = vst.msk [vmem:[#allocation2 + $0x170] sm:$0xff] %vm1095_vm4, %v1030_v45  ;;  %v4266_v45 = vld [vmem:[%s3665_s9 + $0xe2] sm:$0xff] }
  0xe5   : > { %v1417_v32 = vpop.permute.xlu1 %1416  ;;  %v1223_v63 = vpop.permute.xlu0 %1222 }
  0xe6   : > { %1304 = vst.msk [vmem:[#allocation2 + $0x170] sm:$0xff] %vm1288_vm5, %v1223_v63 }
  0xe7   : > { %1498 = vst.msk [vmem:[#allocation2 + $0x170] sm:$0xff] %vm1482_vm6, %v1417_v32  ;;  %1589 = vrot.lane.b32.xlu1 %v3702_v8, %s3573_s16  ;;  %781 = vrot.lane.b32.xlu0 %v3787_v27, %s3570_s13 }
  0xe9   : > { %v802_v15 = vpop.permute.xlu1 %801  ;;  %v610_v29 = vpop.permute.xlu0 %609 }
  0xea   : > { %900 = vst.msk [vmem:[#allocation2 + $0x158] sm:$0xff] %vm871_vm3, %v802_v15 }
  0xeb   : > { %691 = vst.msk [vmem:[#allocation2 + $0x168] sm:$0xff] %vm675_vm2, %v610_v29  ;;  %1200 = vrot.lane.b32.xlu1 %v3949_v41, %s3572_s15  ;;  %1007 = vrot.lane.b32.xlu0 %v3695_v7, %s3569_s12 }
  0xec   : > { %901 = vst.msk [vmem:[#allocation2 + $0x168] sm:$0xff] %vm869_vm7, %v804_v62  ;;  %v3149_v62 = vld [vmem:[%s3665_s9 + $0x198] sm:$0xff] }
  0xed   : > { %v1028_v8 = vpop.permute.xlu1 %1027  ;;  %v1610_v40 = vpop.permute.xlu0 %1609 }
  0xee   : > { %1110 = vst.msk [vmem:[#allocation2 + $0x158] sm:$0xff] %vm1095_vm4, %v1028_v8 }
  0xef   : > { %1707 = vst.msk [vmem:[#allocation2 + $0x170] sm:$0xff] %vm1675_vm8, %v1610_v40  ;;  %779 = vrot.lane.b32.xlu1 %v3760_v23, %s3570_s13  ;;  %1394 = vrot.lane.b32.xlu0 %v3798_v30, %s3571_s14 }
  0xf0   : > { %1708 = vst.msk [vmem:[#allocation2 + $0x178] sm:$0xff] %vm1677_vm9, %v1610_v40 }
  0xf1   : > { %v1415_v41 = vpop.permute.xlu1 %1414  ;;  %v1221_v1 = vpop.permute.xlu0 %1220 }
  0xf2   : > { %1303 = vst.msk [vmem:[#allocation2 + $0x158] sm:$0xff] %vm1288_vm5, %v1221_v1  ;;  %v4286_v1 = vld [vmem:[%s3665_s9 + $0x171] sm:$0xff] }
  0xf3   : > { %1497 = vst.msk [vmem:[#allocation2 + $0x158] sm:$0xff] %vm1482_vm6, %v1415_v41  ;;  %1005 = vrot.lane.b32.xlu1 %v3682_v4, %s3569_s12  ;;  %1587 = vrot.lane.b32.xlu0 %v3705_v9, %s3573_s16  ;;  %v2027_v30 = vld [vmem:[#allocation2 + $0x168] sm:$0xff] }
  0xf5   : > { %v800_v3 = vpop.permute.xlu1 %799  ;;  %v608_v39 = vpop.permute.xlu0 %607 }
  0xf6   : > { %v2028_v46 = vld [vmem:[#allocation2 + $0x170] sm:$0xff]  ;;  %898 = vst.msk [vmem:[#allocation2 + $0x140] sm:$0xff] %vm871_vm3, %v800_v3 }
  0xf7   : > { %690 = vst.msk [vmem:[#allocation2 + $0x150] sm:$0xff] %vm675_vm2, %v608_v39  ;;  %2319 = vmatprep.subr.mxu0 %v2028_v46  ;;  %1392 = vrot.lane.b32.xlu1 %v3777_v25, %s3571_s14 }
  0xf8   : > { %899 = vst.msk [vmem:[#allocation2 + $0x150] sm:$0xff] %vm869_vm7, %v802_v15  ;;  %1198 = vrot.lane.b32.xlu0 %v3936_v36, %s3572_s15  ;;  %2320 = vmatpush1.xpose.msra.mxu0 %v2027_v30  ;;  %v4275_v15 = vld [vmem:[%s3665_s9 + $0x16a] sm:$0xff]  ;;  %v3213_v30 = vld [vmem:[%s3665_s9 + $0x19a] sm:$0xff] }
  0xf9   : > { %v1026_v16 = vpop.permute.xlu1 %1025  ;;  %v1608_v9 = vpop.permute.xlu0 %1607 }
  0xfa   : > { %1109 = vst.msk [vmem:[#allocation2 + $0x140] sm:$0xff] %vm1095_vm4, %v1026_v16 }
  0xfb   : > { %1705 = vst.msk [vmem:[#allocation2 + $0x158] sm:$0xff] %vm1675_vm8, %v1608_v9  ;;  %1585 = vrot.lane.b32.xlu1 %v3692_v6, %s3573_s16 }
  0xfc   : > { %1706 = vst.msk [vmem:[#allocation2 + $0x160] sm:$0xff] %vm1677_vm9, %v1608_v9  ;;  %777 = vrot.lane.b32.xlu0 %v3774_v24, %s3570_s13 }
  0xfd   : > { %v1413_v25 = vpop.permute.xlu1 %1412  ;;  %v1219_v47 = vpop.permute.xlu0 %1218 }
  0xfe   : > { %1302 = vst.msk [vmem:[#allocation2 + $0x140] sm:$0xff] %vm1288_vm5, %v1219_v47 }
  0xff   : > { %1496 = vst.msk [vmem:[#allocation2 + $0x140] sm:$0xff] %vm1482_vm6, %v1413_v25  ;;  %1196 = vrot.lane.b32.xlu1 %v3939_v37, %s3572_s15  ;;  %v2024_v6 = vld [vmem:[#allocation2 + $0x150] sm:$0xff] }
 0x100   : > { %1003 = vrot.lane.b32.xlu0 %v3685_v5, %s3569_s12 }
 0x101   : > { %v798_v36 = vpop.permute.xlu1 %797  ;;  %v606_v50 = vpop.permute.xlu0 %605 }
 0x102   : > { %v2025_v11 = vld [vmem:[#allocation2 + $0x158] sm:$0xff]  ;;  %896 = vst.msk [vmem:[#allocation2 + $0x128] sm:$0xff] %vm871_vm3, %v798_v36 }
 0x103   : > { %689 = vst.msk [vmem:[#allocation2 + $0x138] sm:$0xff] %vm675_vm2, %v606_v50  ;;  %2321 = vmatprep.subr.mxu0 %v2025_v11  ;;  %775 = vrot.lane.b32.xlu1 %v3756_v21, %s3570_s13 }
 0x104   : > { %897 = vst.msk [vmem:[#allocation2 + $0x138] sm:$0xff] %vm869_vm7, %v800_v3  ;;  %1390 = vrot.lane.b32.xlu0 %v3787_v27, %s3571_s14  ;;  %2322 = vmatpush1.xpose.msra.mxu0 %v2024_v6  ;;  %v3181_v3 = vld [vmem:[%s3665_s9 + $0x199] sm:$0xff] }
 0x105   : > { %v1024_v37 = vpop.permute.xlu1 %1023  ;;  %v1606_v14 = vpop.permute.xlu0 %1605  ;;  %v4312_v6 = vld [vmem:[%s3665_s9 + $0x15a] sm:$0xff] }
 0x106   : > { %1108 = vst.msk [vmem:[#allocation2 + $0x128] sm:$0xff] %vm1095_vm4, %v1024_v37 }
 0x107   : > { %1703 = vst.msk [vmem:[#allocation2 + $0x140] sm:$0xff] %vm1675_vm8, %v1606_v14  ;;  %1001 = vrot.lane.b32.xlu1 %v3675_v2, %s3569_s12 }
 0x108   : > { %1704 = vst.msk [vmem:[#allocation2 + $0x148] sm:$0xff] %vm1677_vm9, %v1606_v14  ;;  %1583 = vrot.lane.b32.xlu0 %v3695_v7, %s3573_s16 }
 0x109   : > { %v1411_v21 = vpop.permute.xlu1 %1410  ;;  %v1217_v34 = vpop.permute.xlu0 %1216 }
 0x10a   : > { %1301 = vst.msk [vmem:[#allocation2 + $0x128] sm:$0xff] %vm1288_vm5, %v1217_v34 }
 0x10b   : > { %1495 = vst.msk [vmem:[#allocation2 + $0x128] sm:$0xff] %vm1482_vm6, %v1411_v21  ;;  %1388 = vrot.lane.b32.xlu1 %v3760_v23, %s3571_s14  ;;  %v2021_v2 = vld [vmem:[#allocation2 + $0x138] sm:$0xff]  ;;  %v4321_v21 = vld [vmem:[%s3665_s9 + $0x169] sm:$0xff] }
 0x10c   : > { %1194 = vrot.lane.b32.xlu0 %v3926_v18, %s3572_s15 }
 0x10d   : > { %v796_v27 = vpop.permute.xlu1 %795  ;;  %v604_v42 = vpop.permute.xlu0 %603 }
 0x10e   : > { %v2022_v19 = vld [vmem:[#allocation2 + $0x140] sm:$0xff]  ;;  %894 = vst.msk [vmem:[#allocation2 + $0x110] sm:$0xff] %vm871_vm3, %v796_v27 }
 0x10f   : > { %688 = vst.msk [vmem:[#allocation2 + $0x120] sm:$0xff] %vm675_vm2, %v604_v42  ;;  %2323 = vmatprep.subr.mxu0 %v2022_v19  ;;  %1581 = vrot.lane.b32.xlu1 %v3682_v4, %s3573_s16  ;;  %v4204_v4 = vld [vmem:[%s3665_s9 + $0x188] sm:$0xff] }
 0x110   : > { %895 = vst.msk [vmem:[#allocation2 + $0x120] sm:$0xff] %vm869_vm7, %v798_v36  ;;  %773 = vrot.lane.b32.xlu0 %v3739_v17, %s3570_s13  ;;  %2324 = vmatpush1.xpose.msra.mxu0 %v2021_v2  ;;  %v4302_v36 = vld [vmem:[%s3665_s9 + $0xda] sm:$0xff] }
 0x111   : > { %v1022_v7 = vpop.permute.xlu1 %1021  ;;  %v1604_v23 = vpop.permute.xlu0 %1603 }
 0x112   : > { %1107 = vst.msk [vmem:[#allocation2 + $0x110] sm:$0xff] %vm1095_vm4, %v1022_v7 }
 0x113   : > { %1701 = vst.msk [vmem:[#allocation2 + $0x128] sm:$0xff] %vm1675_vm8, %v1604_v23  ;;  %1192 = vrot.lane.b32.xlu1 %v3929_v22, %s3572_s15  ;;  %v4213_v22 = vld [vmem:[%s3665_s9 + $0x189] sm:$0xff] }
 0x114   : > { %1702 = vst.msk [vmem:[#allocation2 + $0x130] sm:$0xff] %vm1677_vm9, %v1604_v23  ;;  %999 = vrot.lane.b32.xlu0 %v3668_v0, %s3569_s12  ;;  %v4338_v23 = vld [vmem:[%s3665_s9 + $0xca] sm:$0xff] }
 0x115   : > { %v1409_v17 = vpop.permute.xlu1 %1408  ;;  %v1215_v18 = vpop.permute.xlu0 %1214 }
 0x116   : > { %1300 = vst.msk [vmem:[#allocation2 + $0x110] sm:$0xff] %vm1288_vm5, %v1215_v18 }
 0x117   : > { %1494 = vst.msk [vmem:[#allocation2 + $0x110] sm:$0xff] %vm1482_vm6, %v1409_v17  ;;  %835 = vrot.lane.b32.xlu1 %v4204_v4, %s3570_s13 }
 0x118   : > { %1386 = vrot.lane.b32.xlu0 %v3774_v24, %s3571_s14  ;;  %v2018_v24 = vld [vmem:[#allocation2 + $0x120] sm:$0xff] }
 0x119   : > { %v794_v51 = vpop.permute.xlu1 %793  ;;  %v602_v0 = vpop.permute.xlu0 %601 }
 0x11a   : > { %v2019_v43 = vld [vmem:[#allocation2 + $0x128] sm:$0xff]  ;;  %892 = vst.msk [vmem:[#allocation2 + $0xf8] sm:$0xff] %vm871_vm3, %v794_v51 }
 0x11b   : > { %687 = vst.msk [vmem:[#allocation2 + $0x108] sm:$0xff] %vm675_vm2, %v602_v0  ;;  %2325 = vmatprep.subr.mxu0 %v2019_v43  ;;  %1061 = vrot.lane.b32.xlu1 %v4213_v22, %s3569_s12 }
 0x11c   : > { %893 = vst.msk [vmem:[#allocation2 + $0x108] sm:$0xff] %vm869_vm7, %v796_v27  ;;  %1579 = vrot.lane.b32.xlu0 %v3685_v5, %s3573_s16  ;;  %2326 = vmatpush1.xpose.msra.mxu0 %v2018_v24  ;;  %v4233_v5 = vld [vmem:[%s3665_s9 + $0x180] sm:$0xff] }
 0x11d   : > { %v1020_v10 = vpop.permute.xlu1 %1019  ;;  %v1602_v28 = vpop.permute.xlu0 %1601  ;;  %v4358_v24 = vld [vmem:[%s3665_s9 + $0x159] sm:$0xff] }
 0x11e   : > { %1106 = vst.msk [vmem:[#allocation2 + $0xf8] sm:$0xff] %vm1095_vm4, %v1020_v10 }
 0x11f   : > { %1699 = vst.msk [vmem:[#allocation2 + $0x110] sm:$0xff] %vm1675_vm8, %v1602_v28  ;;  %1448 = vrot.lane.b32.xlu1 %v3150_v54, %s3571_s14 }
 0x120   : > { %1700 = vst.msk [vmem:[#allocation2 + $0x118] sm:$0xff] %vm1677_vm9, %v1602_v28  ;;  %1254 = vrot.lane.b32.xlu0 %v4224_v35, %s3572_s15 }
 0x121   : > { %v1407_v20 = vpop.permute.xlu1 %1406  ;;  %v1213_v58 = vpop.permute.xlu0 %1212 }
 0x122   : > { %1299 = vst.msk [vmem:[#allocation2 + $0xf8] sm:$0xff] %vm1288_vm5, %v1213_v58  ;;  %v4375_v58 = vld [vmem:[%s3665_s9 + $0xc2] sm:$0xff] }
 0x123   : > { %1493 = vst.msk [vmem:[#allocation2 + $0xf8] sm:$0xff] %vm1482_vm6, %v1407_v20  ;;  %833 = vrot.lane.b32.xlu1 %v4233_v5, %s3570_s13  ;;  %v2015_v61 = vld [vmem:[#allocation2 + $0x108] sm:$0xff] }
 0x124   : > { %641 = vrot.lane.b32.xlu0 %v4236_v55, %s3568_s11 }
 0x125   : > { %v792_v33 = vpop.permute.xlu1 %791  ;;  %v600_v38 = vpop.permute.xlu0 %599 }
 0x126   : > { %v2016_v26 = vld [vmem:[#allocation2 + $0x110] sm:$0xff]  ;;  %889 = vst.msk [vmem:[#allocation2 + $0xd8] sm:$0xff] %vm869_vm7, %v792_v33 }
 0x127   : > { %890 = vst.msk [vmem:[#allocation2 + $0xe0] sm:$0xff] %vm871_vm3, %v792_v33  ;;  %2327 = vmatprep.subr.mxu0 %v2016_v26  ;;  %1059 = vrot.lane.b32.xlu1 %v4245_v59, %s3569_s12  ;;  %v4384_v33 = vld [vmem:[%s3665_s9 + $0x142] sm:$0xff] }
 0x128   : > { %686 = vst.msk [vmem:[#allocation2 + $0xf0] sm:$0xff] %vm675_vm2, %v600_v38  ;;  %1641 = vrot.lane.b32.xlu0 %v3182_v60, %s3573_s16  ;;  %2328 = vmatpush1.xpose.msra.mxu0 %v2015_v61 }
 0x129   : > { %891 = vst.msk [vmem:[#allocation2 + $0xf0] sm:$0xff] %vm869_vm7, %v794_v51  ;;  %v1018_v13 = vpop.permute.xlu1 %1017  ;;  %v1600_v12 = vpop.permute.xlu0 %1599  ;;  %v4348_v51 = vld [vmem:[%s3665_s9 + $0x152] sm:$0xff] }
 0x12a   : > { %1105 = vst.msk [vmem:[#allocation2 + $0xe0] sm:$0xff] %vm1095_vm4, %v1018_v13 }
 0x12b   : > { %1697 = vst.msk [vmem:[#allocation2 + $0xf8] sm:$0xff] %vm1675_vm8, %v1600_v12  ;;  %1867 = vrot.lane.b32.xlu1 %v3214_v31, %s3574_s17 }
 0x12c   : > { %1698 = vst.msk [vmem:[#allocation2 + $0x100] sm:$0xff] %vm1677_vm9, %v1600_v12  ;;  %1252 = vrot.lane.b32.xlu0 %v4257_v44, %s3572_s15 }
 0x12d   : > { %v1405_v32 = vpop.permute.xlu1 %1404  ;;  %v1211_v63 = vpop.permute.xlu0 %1210  ;;  %v2009_v47 = vld [vmem:[#allocation2 + $0xd8] sm:$0xff] }
 0x12e   : > { %1298 = vst.msk [vmem:[#allocation2 + $0xe0] sm:$0xff] %vm1288_vm5, %v1211_v63 }
 0x12f   : > { %1492 = vst.msk [vmem:[#allocation2 + $0xe0] sm:$0xff] %vm1482_vm6, %v1405_v32  ;;  %1835 = vrot.lane.b32.xlu1 %v4266_v45, %s3574_s17  ;;  %v3194_v32 = vld [vmem:[%s3665_s9 + $0xb2] sm:$0xff] }
 0x130   : > { %1446 = vrot.lane.b32.xlu0 %v3149_v62, %s3571_s14  ;;  %v2012_v41 = vld [vmem:[#allocation2 + $0xf0] sm:$0xff] }
 0x131   : > { %v1598_v29 = vpop.permute.xlu1 %1597  ;;  %v790_v8 = vpop.permute.xlu0 %789 }
 0x132   : > { %v2013_v40 = vld [vmem:[#allocation2 + $0xf8] sm:$0xff]  ;;  %1695 = vst.msk [vmem:[#allocation2 + $0xe0] sm:$0xff] %vm1675_vm8, %v1598_v29 }
 0x133   : > { %1696 = vst.msk [vmem:[#allocation2 + $0xe8] sm:$0xff] %vm1677_vm9, %v1598_v29  ;;  %2329 = vmatprep.subr.mxu0 %v2013_v40  ;;  %831 = vrot.lane.b32.xlu1 %v3901_v57, %s3570_s13  ;;  %v4418_v40 = vld [vmem:[%s3665_s9 + $0x13a] sm:$0xff] }
 0x134   : > { %887 = vst.msk [vmem:[#allocation2 + $0xc0] sm:$0xff] %vm869_vm7, %v790_v8  ;;  %639 = vrot.lane.b32.xlu0 %v4275_v15, %s3568_s11  ;;  %2330 = vmatpush1.xpose.msra.mxu0 %v2012_v41 }
 0x135   : > { %888 = vst.msk [vmem:[#allocation2 + $0xc8] sm:$0xff] %vm871_vm3, %v790_v8  ;;  %v1209_v39 = vpop.permute.xlu1 %1208  ;;  %v1016_v46 = vpop.permute.xlu0 %1015 }
 0x136   : > { %1104 = vst.msk [vmem:[#allocation2 + $0xc8] sm:$0xff] %vm1095_vm4, %v1016_v46 }
 0x137   : > { %1297 = vst.msk [vmem:[#allocation2 + $0xc8] sm:$0xff] %vm1288_vm5, %v1209_v39  ;;  %1057 = vrot.lane.b32.xlu1 %v4286_v1, %s3569_s12 }
 0x138   : > { %1639 = vrot.lane.b32.xlu0 %v3181_v3, %s3573_s16  ;;  %v4427_v3 = vld [vmem:[%s3665_s9 + $0x141] sm:$0xff] }
 0x139   : > { %v788_v16 = vpop.permute.xlu1 %787  ;;  %v1403_v9 = vpop.permute.xlu0 %1402  ;;  %v2010_v25 = vld [vmem:[#allocation2 + $0xe0] sm:$0xff] }
 0x13a   : > { %885 = vst.msk [vmem:[#allocation2 + $0xa8] sm:$0xff] %vm869_vm7, %v788_v16  ;;  %2331 = vmatprep.subr.mxu0 %v2010_v25 }
 0x13b   : > { %886 = vst.msk [vmem:[#allocation2 + $0xb0] sm:$0xff] %vm871_vm3, %v788_v16  ;;  %1865 = vrot.lane.b32.xlu1 %v3213_v30, %s3574_s17  ;;  %2332 = vmatpush1.xpose.msra.mxu0 %v2009_v47  ;;  %v2006_v19 = vld [vmem:[#allocation2 + $0xc0] sm:$0xff] }
 0x13c   : > { %1491 = vst.msk [vmem:[#allocation2 + $0xc8] sm:$0xff] %vm1482_vm6, %v1403_v9  ;;  %1250 = vrot.lane.b32.xlu0 %v4236_v55, %s3572_s15  ;;  %v3193_v9 = vld [vmem:[%s3665_s9 + $0xaa] sm:$0xff] }
 0x13d   : > { %v1014_v50 = vpop.permute.xlu1 %1013  ;;  %v1596_v11 = vpop.permute.xlu0 %1595 }
 0x13e   : > { %1103 = vst.msk [vmem:[#allocation2 + $0xb0] sm:$0xff] %vm1095_vm4, %v1014_v50  ;;  %v4450_v50 = vld [vmem:[%s3665_s9 + $0x12a] sm:$0xff] }
 0x13f   : > { %1693 = vst.msk [vmem:[#allocation2 + $0xc8] sm:$0xff] %vm1675_vm8, %v1596_v11  ;;  %1833 = vrot.lane.b32.xlu1 %v4302_v36, %s3574_s17 }
 0x140   : > { %1694 = vst.msk [vmem:[#allocation2 + $0xd0] sm:$0xff] %vm1677_vm9, %v1596_v11  ;;  %1444 = vrot.lane.b32.xlu0 %v4204_v4, %s3571_s14 }
 0x141   : > { %v1401_v37 = vpop.permute.xlu1 %1400  ;;  %v1207_v14 = vpop.permute.xlu0 %1206 }
 0x142   : > { %1296 = vst.msk [vmem:[#allocation2 + $0xb0] sm:$0xff] %vm1288_vm5, %v1207_v14  ;;  %v4461_v14 = vld [vmem:[%s3665_s9 + $0x139] sm:$0xff] }
 0x143   : > { %1490 = vst.msk [vmem:[#allocation2 + $0xb0] sm:$0xff] %vm1482_vm6, %v1401_v37  ;;  %829 = vrot.lane.b32.xlu1 %v3898_v56, %s3570_s13 }
 0x144   : > { %637 = vrot.lane.b32.xlu0 %v4312_v6, %s3568_s11 }
 0x145   : > { %v1594_v34 = vpop.permute.xlu1 %1593  ;;  %v786_v27 = vpop.permute.xlu0 %785 }
 0x146   : > { %v2007_v42 = vld [vmem:[#allocation2 + $0xc8] sm:$0xff]  ;;  %1691 = vst.msk [vmem:[#allocation2 + $0xb0] sm:$0xff] %vm1675_vm8, %v1594_v34 }
 0x147   : > { %1692 = vst.msk [vmem:[#allocation2 + $0xb8] sm:$0xff] %vm1677_vm9, %v1594_v34  ;;  %2333 = vmatprep.subr.mxu0 %v2007_v42  ;;  %1055 = vrot.lane.b32.xlu1 %v4321_v21, %s3569_s12 }
 0x148   : > { %883 = vst.msk [vmem:[#allocation2 + $0x90] sm:$0xff] %vm869_vm7, %v786_v27  ;;  %1637 = vrot.lane.b32.xlu0 %v4213_v22, %s3573_s16  ;;  %2334 = vmatpush1.xpose.msra.mxu0 %v2006_v19  ;;  %v2003_v22 = vld [vmem:[#allocation2 + $0xa8] sm:$0xff] }
 0x149   : > { %884 = vst.msk [vmem:[#allocation2 + $0x98] sm:$0xff] %vm871_vm3, %v786_v27  ;;  %v1205_v2 = vpop.permute.xlu1 %1204  ;;  %v1012_v7 = vpop.permute.xlu0 %1011 }
 0x14a   : > { %1102 = vst.msk [vmem:[#allocation2 + $0x98] sm:$0xff] %vm1095_vm4, %v1012_v7 }
 0x14b   : > { %1295 = vst.msk [vmem:[#allocation2 + $0x98] sm:$0xff] %vm1288_vm5, %v1205_v2  ;;  %1863 = vrot.lane.b32.xlu1 %v4224_v35, %s3574_s17  ;;  %v3192_v2 = vld [vmem:[%s3665_s9 + $0x9a] sm:$0xff] }
 0x14c   : > { %1248 = vrot.lane.b32.xlu0 %v4275_v15, %s3572_s15 }
 0x14d   : > { %v784_v4 = vpop.permute.xlu1 %783  ;;  %v1399_v17 = vpop.permute.xlu0 %1398  ;;  %v2004_v18 = vld [vmem:[#allocation2 + $0xb0] sm:$0xff] }
 0x14e   : > { %881 = vst.msk [vmem:[#allocation2 + $0x78] sm:$0xff] %vm869_vm7, %v784_v4  ;;  %2335 = vmatprep.subr.mxu0 %v2004_v18 }
 0x14f   : > { %882 = vst.msk [vmem:[#allocation2 + $0x80] sm:$0xff] %vm871_vm3, %v784_v4  ;;  %1831 = vrot.lane.b32.xlu1 %v4338_v23, %s3574_s17  ;;  %2336 = vmatpush1.xpose.msra.mxu0 %v2003_v22  ;;  %v2000_v20 = vld [vmem:[#allocation2 + $0x90] sm:$0xff] }
 0x150   : > { %1489 = vst.msk [vmem:[#allocation2 + $0x98] sm:$0xff] %vm1482_vm6, %v1399_v17  ;;  %1442 = vrot.lane.b32.xlu0 %v4233_v5, %s3571_s14  ;;  %v4486_v17 = vld [vmem:[%s3665_s9 + $0x122] sm:$0xff] }
 0x151   : > { %v1010_v0 = vpop.permute.xlu1 %1009  ;;  %v1592_v43 = vpop.permute.xlu0 %1591 }
 0x152   : > { %1101 = vst.msk [vmem:[#allocation2 + $0x80] sm:$0xff] %vm1095_vm4, %v1010_v0  ;;  %v4495_v0 = vld [vmem:[%s3665_s9 + $0x129] sm:$0xff] }
 0x153   : > { %1689 = vst.msk [vmem:[#allocation2 + $0x98] sm:$0xff] %vm1675_vm8, %v1592_v43  ;;  %827 = vrot.lane.b32.xlu1 %v3887_v53, %s3570_s13 }
 0x154   : > { %1690 = vst.msk [vmem:[#allocation2 + $0xa0] sm:$0xff] %vm1677_vm9, %v1592_v43  ;;  %635 = vrot.lane.b32.xlu0 %v4348_v51, %s3568_s11 }
 0x155   : > { %v1397_v54 = vpop.permute.xlu1 %1396  ;;  %v1203_v35 = vpop.permute.xlu0 %1202  ;;  %v1997_v31 = vld [vmem:[#allocation2 + $0x78] sm:$0xff] }
 0x156   : > { %1294 = vst.msk [vmem:[#allocation2 + $0x80] sm:$0xff] %vm1288_vm5, %v1203_v35 }
 0x157   : > { %1488 = vst.msk [vmem:[#allocation2 + $0x80] sm:$0xff] %vm1482_vm6, %v1397_v54  ;;  %1053 = vrot.lane.b32.xlu1 %v4358_v24, %s3569_s12 }
 0x158   : > { %1635 = vrot.lane.b32.xlu0 %v4245_v59, %s3573_s16 }
 0x159   : > { %v1590_v10 = vpop.permute.xlu1 %1589  ;;  %v782_v28 = vpop.permute.xlu0 %781 }
 0x15a   : > { %v2001_v5 = vld [vmem:[#allocation2 + $0x98] sm:$0xff]  ;;  %1687 = vst.msk [vmem:[#allocation2 + $0x80] sm:$0xff] %vm1675_vm8, %v1590_v10 }
 0x15b   : > { %1688 = vst.msk [vmem:[#allocation2 + $0x88] sm:$0xff] %vm1677_vm9, %v1590_v10  ;;  %2337 = vmatprep.subr.mxu0 %v2001_v5  ;;  %1861 = vrot.lane.b32.xlu1 %v4257_v44, %s3574_s17  ;;  %v3142_v5 = vld [vmem:[%s3665_s9 + $0x140] sm:$0xff] }
 0x15c   : > { %879 = vst.msk [vmem:[#allocation2 + $0x60] sm:$0xff] %vm869_vm7, %v782_v28  ;;  %1246 = vrot.lane.b32.xlu0 %v4312_v6, %s3572_s15  ;;  %2338 = vmatpush1.xpose.msra.mxu0 %v2000_v20 }
 0x15d   : > { %880 = vst.msk [vmem:[#allocation2 + $0x68] sm:$0xff] %vm871_vm3, %v782_v28  ;;  %v1201_v59 = vpop.permute.xlu1 %1200  ;;  %v1008_v60 = vpop.permute.xlu0 %1007  ;;  %v3191_v28 = vld [vmem:[%s3665_s9 + $0x92] sm:$0xff] }
 0x15e   : > { %1100 = vst.msk [vmem:[#allocation2 + $0x68] sm:$0xff] %vm1095_vm4, %v1008_v60  ;;  %v4518_v60 = vld [vmem:[%s3665_s9 + $0x120] sm:$0xff] }
 0x15f   : > { %1293 = vst.msk [vmem:[#allocation2 + $0x68] sm:$0xff] %vm1288_vm5, %v1201_v59  ;;  %1829 = vrot.lane.b32.xlu1 %v4375_v58, %s3574_s17 }
 0x160   : > { %1440 = vrot.lane.b32.xlu0 %v3901_v57, %s3571_s14  ;;  %v4394_v57 = vld [vmem:[%s3665_s9 + $0x151] sm:$0xff] }
 0x161   : > { %v780_v38 = vpop.permute.xlu1 %779  ;;  %v1395_v26 = vpop.permute.xlu0 %1394  ;;  %v1998_v61 = vld [vmem:[#allocation2 + $0x80] sm:$0xff] }
 0x162   : > { %877 = vst.msk [vmem:[#allocation2 + $0x48] sm:$0xff] %vm869_vm7, %v780_v38  ;;  %2339 = vmatprep.subr.mxu0 %v1998_v61 }
 0x163   : > { %878 = vst.msk [vmem:[#allocation2 + $0x50] sm:$0xff] %vm871_vm3, %v780_v38  ;;  %825 = vrot.lane.b32.xlu1 %v3884_v52, %s3570_s13  ;;  %2340 = vmatpush1.xpose.msra.mxu0 %v1997_v31 }
 0x164   : > { %1487 = vst.msk [vmem:[#allocation2 + $0x68] sm:$0xff] %vm1482_vm6, %v1395_v26  ;;  %633 = vrot.lane.b32.xlu0 %v4384_v33, %s3568_s11 }
 0x165   : > { %v1006_v44 = vpop.permute.xlu1 %1005  ;;  %v1588_v13 = vpop.permute.xlu0 %1587 }
 0x166   : > { %1099 = vst.msk [vmem:[#allocation2 + $0x50] sm:$0xff] %vm1095_vm4, %v1006_v44 }
 0x167   : > { %1685 = vst.msk [vmem:[#allocation2 + $0x68] sm:$0xff] %vm1675_vm8, %v1588_v13  ;;  %1051 = vrot.lane.b32.xlu1 %v4394_v57, %s3569_s12 }
 0x168   : > { %1686 = vst.msk [vmem:[#allocation2 + $0x70] sm:$0xff] %vm1677_vm9, %v1588_v13  ;;  %1633 = vrot.lane.b32.xlu0 %v4286_v1, %s3573_s16 }
 0x169   : > { %v1393_v12 = vpop.permute.xlu1 %1392 }
 0x16a   : > { %v1199_v62 = vpop.permute.xlu0 %1198 }
 0x16b   : > { %1292 = vst.msk [vmem:[#allocation2 + $0x50] sm:$0xff] %vm1288_vm5, %v1199_v62  ;;  %1859 = vrot.lane.b32.xlu1 %v4236_v55, %s3574_s17  ;;  %v1994_v55 = vld [vmem:[#allocation2 + $0x60] sm:$0xff] }
 0x16c   : > { %1486 = vst.msk [vmem:[#allocation2 + $0x50] sm:$0xff] %vm1482_vm6, %v1393_v12  ;;  %1244 = vrot.lane.b32.xlu0 %v4348_v51, %s3572_s15 }
 0x16d   : > { %v1586_v63 = vpop.permute.xlu1 %1585 }
 0x16e   : > { %v778_v29 = vpop.permute.xlu0 %777  ;;  %v1995_v8 = vld [vmem:[#allocation2 + $0x68] sm:$0xff]  ;;  %1683 = vst.msk [vmem:[#allocation2 + $0x50] sm:$0xff] %vm1675_vm8, %v1586_v63 }
 0x16f   : > { %1684 = vst.msk [vmem:[#allocation2 + $0x58] sm:$0xff] %vm1677_vm9, %v1586_v63  ;;  %2341 = vmatprep.subr.mxu0 %v1995_v8  ;;  %1827 = vrot.lane.b32.xlu1 %v3194_v32, %s3574_s17  ;;  %v3141_v8 = vld [vmem:[%s3665_s9 + $0x138] sm:$0xff] }
 0x170   : > { %875 = vst.msk [vmem:[#allocation2 + $0x30] sm:$0xff] %vm869_vm7, %v778_v29  ;;  %1438 = vrot.lane.b32.xlu0 %v3898_v56, %s3571_s14  ;;  %2342 = vmatpush1.xpose.msra.mxu0 %v1994_v55 }
 0x171   : > { %876 = vst.msk [vmem:[#allocation2 + $0x38] sm:$0xff] %vm871_vm3, %v778_v29  ;;  %v1197_v41 = vpop.permute.xlu1 %1196  ;;  %v3190_v29 = vld [vmem:[%s3665_s9 + $0x82] sm:$0xff] }
 0x172   : > { %v1004_v1 = vpop.permute.xlu0 %1003 }
 0x173   : > { %1098 = vst.msk [vmem:[#allocation2 + $0x38] sm:$0xff] %vm1095_vm4, %v1004_v1  ;;  %823 = vrot.lane.b32.xlu1 %v3873_v49, %s3570_s13  ;;  %v1991_v49 = vld [vmem:[#allocation2 + $0x48] sm:$0xff]  ;;  %v4555_v1 = vld [vmem:[%s3665_s9 + $0x110] sm:$0xff] }
 0x174   : > { %1291 = vst.msk [vmem:[#allocation2 + $0x38] sm:$0xff] %vm1288_vm5, %v1197_v41  ;;  %631 = vrot.lane.b32.xlu0 %v4418_v40, %s3568_s11 }
 0x175   : > { %v776_v39 = vpop.permute.xlu1 %775  ;;  %v1992_v46 = vld [vmem:[#allocation2 + $0x50] sm:$0xff] }
 0x176   : > { %v1391_v56 = vpop.permute.xlu0 %1390  ;;  %873 = vst.msk [vmem:[#allocation2 + $0x18] sm:$0xff] %vm869_vm7, %v776_v39  ;;  %2343 = vmatprep.subr.mxu0 %v1992_v46 }
 0x177   : > { %874 = vst.msk [vmem:[#allocation2 + $0x20] sm:$0xff] %vm871_vm3, %v776_v39  ;;  %1049 = vrot.lane.b32.xlu1 %v4427_v3, %s3569_s12  ;;  %2344 = vmatpush1.xpose.msra.mxu0 %v1991_v49  ;;  %v4567_v49 = vld [vmem:[%s3665_s9 + $0x111] sm:$0xff] }
 0x178   : > { %1485 = vst.msk [vmem:[#allocation2 + $0x38] sm:$0xff] %vm1482_vm6, %v1391_v56  ;;  %1631 = vrot.lane.b32.xlu0 %v4321_v21, %s3573_s16 }
 0x179   : > { %v1002_v30 = vpop.permute.xlu1 %1001 }
 0x17a   : > { %v1584_v16 = vpop.permute.xlu0 %1583  ;;  %1097 = vst.msk [vmem:[#allocation2 + $0x20] sm:$0xff] %vm1095_vm4, %v1002_v30 }
 0x17b   : > { %1681 = vst.msk [vmem:[#allocation2 + $0x38] sm:$0xff] %vm1675_vm8, %v1584_v16  ;;  %1857 = vrot.lane.b32.xlu1 %v4275_v15, %s3574_s17 }
 0x17c   : > { %1682 = vst.msk [vmem:[#allocation2 + $0x40] sm:$0xff] %vm1677_vm9, %v1584_v16  ;;  %1242 = vrot.lane.b32.xlu0 %v4384_v33, %s3572_s15 }
 0x17d   : > { %v1389_v25 = vpop.permute.xlu1 %1388  ;;  %v1985_v19 = vld [vmem:[#allocation2 + $0x18] sm:$0xff] }
 0x17e   : > { %v1195_v47 = vpop.permute.xlu0 %1194 }
 0x17f   : > { %1290 = vst.msk [vmem:[#allocation2 + $0x20] sm:$0xff] %vm1288_vm5, %v1195_v47  ;;  %1825 = vrot.lane.b32.xlu1 %v3193_v9, %s3574_s17 }
 0x180   : > { %1484 = vst.msk [vmem:[#allocation2 + $0x20] sm:$0xff] %vm1482_vm6, %v1389_v25  ;;  %1436 = vrot.lane.b32.xlu0 %v3887_v53, %s3571_s14  ;;  %v1988_v53 = vld [vmem:[#allocation2 + $0x30] sm:$0xff] }
 0x181   : > { %v1582_v11 = vpop.permute.xlu1 %1581 }
 0x182   : > { %v774_v15 = vpop.permute.xlu0 %773  ;;  %v1989_v37 = vld [vmem:[#allocation2 + $0x38] sm:$0xff]  ;;  %1679 = vst.msk [vmem:[#allocation2 + $0x20] sm:$0xff] %vm1675_vm8, %v1582_v11 }
 0x183   : > { %1680 = vst.msk [vmem:[#allocation2 + $0x28] sm:$0xff] %vm1677_vm9, %v1582_v11  ;;  %2345 = vmatprep.subr.mxu0 %v1989_v37  ;;  %821 = vrot.lane.b32.xlu1 %v3870_v48, %s3570_s13 }
 0x184   : > { %870 = vst.msk [vmem:[#allocation2] sm:$0xff] %vm869_vm7, %v774_v15  ;;  %629 = vrot.lane.b32.xlu0 %v4450_v50, %s3568_s11  ;;  %2346 = vmatpush1.xpose.msra.mxu0 %v1988_v53 }
 0x185   : > { %872 = vst.msk [vmem:[#allocation2 + $0x8] sm:$0xff] %vm871_vm3, %v774_v15  ;;  %v1193_v21 = vpop.permute.xlu1 %1192  ;;  %v3189_v15 = vld [vmem:[%s3665_s9 + $0x7a] sm:$0xff] }
 0x186   : > { %v1000_v34 = vpop.permute.xlu0 %999 }
 0x187   : > { %1096 = vst.msk [vmem:[#allocation2 + $0x8] sm:$0xff] %vm1095_vm4, %v1000_v34  ;;  %1047 = vrot.lane.b32.xlu1 %v4461_v14, %s3569_s12 }
 0x188   : > { %1289 = vst.msk [vmem:[#allocation2 + $0x8] sm:$0xff] %vm1288_vm5, %v1193_v21  ;;  %1629 = vrot.lane.b32.xlu0 %v4358_v24, %s3573_s16  ;;  %v4595_v21 = vld [vmem:[%s3665_s9 + $0xfa] sm:$0xff] }
 0x189   : > { %v836_v48 = vpop.permute.xlu1 %835  ;;  %v1986_v42 = vld [vmem:[#allocation2 + $0x20] sm:$0xff] }
 0x18a   : > { %v1387_v27 = vpop.permute.xlu0 %1386  ;;  %934 = vst.msk [vmem:[#allocation2 + $0x2f0] sm:$0xff] %vm871_vm3, %v836_v48  ;;  %2347 = vmatprep.subr.mxu0 %v1986_v42  ;;  %v4604_v42 = vld [vmem:[%s3665_s9 + $0x109] sm:$0xff] }
 0x18b   : > { %1483 = vst.msk [vmem:[#allocation2 + $0x8] sm:$0xff] %vm1482_vm6, %v1387_v27  ;;  %1855 = vrot.lane.b32.xlu1 %v4312_v6, %s3574_s17  ;;  %2348 = vmatpush1.xpose.msra.mxu0 %v1985_v19  ;;  %v4483_v6 = vld [vmem:[%s3665_s9 + $0x128] sm:$0xff]  ;;  %v1982_v54 = vld [vmem:[#allocation2] sm:$0xff] }
 0x18c   : > { %1240 = vrot.lane.b32.xlu0 %v4418_v40, %s3572_s15 }
 0x18d   : > { %v1062_v7 = vpop.permute.xlu1 %1061 }
 0x18e   : > { %v1580_v4 = vpop.permute.xlu0 %1579  ;;  %1127 = vst.msk [vmem:[#allocation2 + $0x2f0] sm:$0xff] %vm1095_vm4, %v1062_v7 }
 0x18f   : > { %1676 = vst.msk [vmem:[#allocation2 + $0x8] sm:$0xff] %vm1675_vm8, %v1580_v4  ;;  %1823 = vrot.lane.b32.xlu1 %v3192_v2, %s3574_s17 }
 0x190   : > { %1678 = vst.msk [vmem:[#allocation2 + $0x10] sm:$0xff] %vm1677_vm9, %v1580_v4  ;;  %1434 = vrot.lane.b32.xlu0 %v3884_v52, %s3571_s14 }
 0x191   : > { %v1449_v18 = vpop.permute.xlu1 %1448 }
 0x192   : > { %v1255_v22 = vpop.permute.xlu0 %1254 }
 0x193   : > { %1320 = vst.msk [vmem:[#allocation2 + $0x2f0] sm:$0xff] %vm1288_vm5, %v1255_v22  ;;  %819 = vrot.lane.b32.xlu1 %v4483_v6, %s3570_s13  ;;  %v3188_v22 = vld [vmem:[%s3665_s9 + $0x6a] sm:$0xff] }
 0x194   : > { %1514 = vst.msk [vmem:[#allocation2 + $0x2f0] sm:$0xff] %vm1482_vm6, %v1449_v18  ;;  %627 = vrot.lane.b32.xlu0 %v4486_v17, %s3568_s11 }
 0x195   : > { %v834_v43 = vpop.permute.xlu1 %833 }
 0x196   : > { %v642_v52 = vpop.permute.xlu0 %641  ;;  %v1983_v24 = vld [vmem:[#allocation2 + $0x8] sm:$0xff]  ;;  %932 = vst.msk [vmem:[#allocation2 + $0x2d8] sm:$0xff] %vm871_vm3, %v834_v43 }
 0x197   : > { %707 = vst.msk [vmem:[#allocation2 + $0x2e8] sm:$0xff] %vm675_vm2, %v642_v52  ;;  %2349 = vmatprep.subr.mxu0 %v1983_v24  ;;  %1045 = vrot.lane.b32.xlu1 %v4495_v0, %s3569_s12  ;;  %v4629_v52 = vld [vmem:[%s3665_s9 + $0xf8] sm:$0xff] }
 0x198   : > { %933 = vst.msk [vmem:[#allocation2 + $0x2e8] sm:$0xff] %vm869_vm7, %v836_v48  ;;  %1627 = vrot.lane.b32.xlu0 %v4394_v57, %s3573_s16  ;;  %2350 = vmatpush1.xpose.msra.mxu0 %v1982_v54  ;;  %v4530_v57 = vld [vmem:[%s3665_s9 + $0x121] sm:$0xff]  ;;  %v4632_v24 = vld [vmem:[%s3665_s9 + $0xf2] sm:$0xff] }
 0x199   : > { %v1060_v35 = vpop.permute.xlu1 %1059 }
 0x19a   : > { %v1642_v10 = vpop.permute.xlu0 %1641  ;;  %1126 = vst.msk [vmem:[#allocation2 + $0x2d8] sm:$0xff] %vm1095_vm4, %v1060_v35 }
 0x19b   : > { %1739 = vst.msk [vmem:[#allocation2 + $0x2f0] sm:$0xff] %vm1675_vm8, %v1642_v10  ;;  %1853 = vrot.lane.b32.xlu1 %v4348_v51, %s3574_s17  ;;  %v4521_v51 = vld [vmem:[%s3665_s9 + $0x112] sm:$0xff] }
 0x19c   : > { %1740 = vst.msk [vmem:[#allocation2 + $0x2f8] sm:$0xff] %vm1677_vm9, %v1642_v10  ;;  %1238 = vrot.lane.b32.xlu0 %v4450_v50, %s3572_s15 }
 0x19d   : > { %v1868_v20 = vpop.permute.xlu1 %1867 }
 0x19e   : > { %v1253_v59 = vpop.permute.xlu0 %1252  ;;  %1933 = vst.msk [vmem:[#allocation2 + $0x2f8] sm:$0xff] %vm1901_vm10, %v1868_v20 }
 0x19f   : > { %1319 = vst.msk [vmem:[#allocation2 + $0x2d8] sm:$0xff] %vm1288_vm5, %v1253_v59  ;;  %1821 = vrot.lane.b32.xlu1 %v3191_v28, %s3574_s17  ;;  %v2075_v31 = vld [vmem:[#allocation2 + $0x2e8] sm:$0xff]  ;;  %v4641_v28 = vld [vmem:[%s3665_s9 + $0xf9] sm:$0xff] }
 0x1a0   : > { %1432 = vrot.lane.b32.xlu0 %v3142_v5, %s3571_s14 }
 0x1a1   : > { %v1836_v38 = vpop.permute.xlu1 %1835 }
 0x1a2   : > { %v1447_v26 = vpop.permute.xlu0 %1446  ;;  %v2076_v61 = vld [vmem:[#allocation2 + $0x2f0] sm:$0xff]  ;;  %1917 = vst.msk [vmem:[#allocation2 + $0x178] sm:$0xff] %vm1901_vm10, %v1836_v38 }
 0x1a3   : > { %1513 = vst.msk [vmem:[#allocation2 + $0x2d8] sm:$0xff] %vm1482_vm6, %v1447_v26  ;;  %2351 = vmatprep.subr.mxu0 %v2076_v61  ;;  %817 = vrot.lane.b32.xlu1 %v4518_v60, %s3570_s13  ;;  %v3187_v61 = vld [vmem:[%s3665_s9 + $0x62] sm:$0xff] }
 0x1a4   : > { %625 = vrot.lane.b32.xlu0 %v4521_v51, %s3568_s11  ;;  %2352 = vmatpush2.xpose.msra.mxu0 %v2075_v31 }
 0x1a5   : > { %v832_v44 = vpop.permute.xlu1 %831  ;;  %v2077_v12 = vld [vmem:[#allocation2 + $0x2f8] sm:$0xff] }
 0x1a6   : > { %v640_v13 = vpop.permute.xlu0 %639  ;;  %930 = vst.msk [vmem:[#allocation2 + $0x2c0] sm:$0xff] %vm871_vm3, %v832_v44  ;;  %3274 = vmatprep.subr.msk.mxu1 %vm2174_vm11, %v2077_v12 }
 0x1a7   : > { %706 = vst.msk [vmem:[#allocation2 + $0x2d0] sm:$0xff] %vm675_vm2, %v640_v13  ;;  %1043 = vrot.lane.b32.xlu1 %v4530_v57, %s3569_s12 }
 0x1a8   : > { %931 = vst.msk [vmem:[#allocation2 + $0x2d0] sm:$0xff] %vm869_vm7, %v834_v43  ;;  %1625 = vrot.lane.b32.xlu0 %v4427_v3, %s3573_s16  ;;  %v4558_v3 = vld [vmem:[%s3665_s9 + $0x10a] sm:$0xff] }
 0x1a9   : > { %v1058_v62 = vpop.permute.xlu1 %1057  ;;  %v2029_v63 = vld [vmem:[#allocation2 + $0x178] sm:$0xff] }
 0x1aa   : > { %v1640_v32 = vpop.permute.xlu0 %1639  ;;  %1125 = vst.msk [vmem:[#allocation2 + $0x2c0] sm:$0xff] %vm1095_vm4, %v1058_v62  ;;  %3275 = vmatpush3.xpose.msk.msra.mxu1 %vm2174_vm11, %v2029_v63 }
 0x1ab   : > { %1737 = vst.msk [vmem:[#allocation2 + $0x2d8] sm:$0xff] %vm1675_vm8, %v1640_v32  ;;  %1851 = vrot.lane.b32.xlu1 %v4384_v33, %s3574_s17 }
 0x1ac   : > { %1738 = vst.msk [vmem:[#allocation2 + $0x2e0] sm:$0xff] %vm1677_vm9, %v1640_v32  ;;  %1236 = vrot.lane.b32.xlu0 %v4486_v17, %s3572_s15  ;;  %v4675_v32 = vld [vmem:[%s3665_s9 + $0xf1] sm:$0xff] }
 0x1ad   : > { %v1866_v55 = vpop.permute.xlu1 %1865 }
 0x1ae   : > { %v1251_v41 = vpop.permute.xlu0 %1250  ;;  %1932 = vst.msk [vmem:[#allocation2 + $0x2e0] sm:$0xff] %vm1901_vm10, %v1866_v55 }
 0x1af   : > { %1318 = vst.msk [vmem:[#allocation2 + $0x2c0] sm:$0xff] %vm1288_vm5, %v1251_v41  ;;  %1819 = vrot.lane.b32.xlu1 %v3190_v29, %s3574_s17  ;;  %v2072_v46 = vld [vmem:[#allocation2 + $0x2d0] sm:$0xff] }
 0x1b0   : > { %1430 = vrot.lane.b32.xlu0 %v3141_v8, %s3571_s14 }
 0x1b1   : > { %v1834_v33 = vpop.permute.xlu1 %1833 }
 0x1b2   : > { %v1445_v39 = vpop.permute.xlu0 %1444  ;;  %v2073_v56 = vld [vmem:[#allocation2 + $0x2d8] sm:$0xff]  ;;  %1916 = vst.msk [vmem:[#allocation2 + $0x160] sm:$0xff] %vm1901_vm10, %v1834_v33 }
 0x1b3   : > { %1512 = vst.msk [vmem:[#allocation2 + $0x2c0] sm:$0xff] %vm1482_vm6, %v1445_v39  ;;  %2353 = vmatprep.subr.mxu0 %v2073_v56  ;;  %815 = vrot.lane.b32.xlu1 %v4555_v1, %s3570_s13  ;;  %v3040_v56 = vld [vmem:[%s3665_s9 + $0xe0] sm:$0xff] }
 0x1b4   : > { %623 = vrot.lane.b32.xlu0 %v4558_v3, %s3568_s11  ;;  %2354 = vmatpush2.xpose.msra.mxu0 %v2072_v46 }
 0x1b5   : > { %v830_v30 = vpop.permute.xlu1 %829  ;;  %v2074_v9 = vld [vmem:[#allocation2 + $0x2e0] sm:$0xff] }
 0x1b6   : > { %v638_v16 = vpop.permute.xlu0 %637  ;;  %928 = vst.msk [vmem:[#allocation2 + $0x2a8] sm:$0xff] %vm871_vm3, %v830_v30  ;;  %3276 = vmatprep.subr.msk.mxu1 %vm2174_vm11, %v2074_v9 }
 0x1b7   : > { %705 = vst.msk [vmem:[#allocation2 + $0x2b8] sm:$0xff] %vm675_vm2, %v638_v16  ;;  %1041 = vrot.lane.b32.xlu1 %v4567_v49, %s3569_s12  ;;  %v3072_v16 = vld [vmem:[%s3665_s9 + $0xe1] sm:$0xff] }
 0x1b8   : > { %929 = vst.msk [vmem:[#allocation2 + $0x2b8] sm:$0xff] %vm869_vm7, %v832_v44  ;;  %1623 = vrot.lane.b32.xlu0 %v4461_v14, %s3573_s16  ;;  %v4592_v14 = vld [vmem:[%s3665_s9 + $0x108] sm:$0xff]  ;;  %v4666_v44 = vld [vmem:[%s3665_s9 + $0xf0] sm:$0xff] }
 0x1b9   : > { %v1056_v25 = vpop.permute.xlu1 %1055  ;;  %v2026_v11 = vld [vmem:[#allocation2 + $0x160] sm:$0xff] }
 0x1ba   : > { %v1638_v47 = vpop.permute.xlu0 %1637  ;;  %1124 = vst.msk [vmem:[#allocation2 + $0x2a8] sm:$0xff] %vm1095_vm4, %v1056_v25  ;;  %3277 = vmatpush3.xpose.msk.msra.mxu1 %vm2174_vm11, %v2026_v11 }
 0x1bb   : > { %1735 = vst.msk [vmem:[#allocation2 + $0x2c0] sm:$0xff] %vm1675_vm8, %v1638_v47  ;;  %1849 = vrot.lane.b32.xlu1 %v4418_v40, %s3574_s17 }
 0x1bc   : > { %1736 = vst.msk [vmem:[#allocation2 + $0x2c8] sm:$0xff] %vm1677_vm9, %v1638_v47  ;;  %1234 = vrot.lane.b32.xlu0 %v4521_v51, %s3572_s15 }
 0x1bd   : > { %v1864_v37 = vpop.permute.xlu1 %1863 }
 0x1be   : > { %v1249_v53 = vpop.permute.xlu0 %1248  ;;  %1931 = vst.msk [vmem:[#allocation2 + $0x2c8] sm:$0xff] %vm1901_vm10, %v1864_v37 }
 0x1bf   : > { %1317 = vst.msk [vmem:[#allocation2 + $0x2a8] sm:$0xff] %vm1288_vm5, %v1249_v53  ;;  %1817 = vrot.lane.b32.xlu1 %v3189_v15, %s3574_s17  ;;  %v2069_v27 = vld [vmem:[#allocation2 + $0x2b8] sm:$0xff]  ;;  %v3185_v53 = vld [vmem:[%s3665_s9 + $0x4a] sm:$0xff] }
 0x1c0   : > { %1428 = vrot.lane.b32.xlu0 %v4483_v6, %s3571_s14 }
 0x1c1   : > { %v1832_v40 = vpop.permute.xlu1 %1831 }
 0x1c2   : > { %v1443_v34 = vpop.permute.xlu0 %1442  ;;  %v2070_v48 = vld [vmem:[#allocation2 + $0x2c0] sm:$0xff]  ;;  %1915 = vst.msk [vmem:[#allocation2 + $0x148] sm:$0xff] %vm1901_vm10, %v1832_v40 }
 0x1c3   : > { %1511 = vst.msk [vmem:[#allocation2 + $0x2a8] sm:$0xff] %vm1482_vm6, %v1443_v34  ;;  %2355 = vmatprep.subr.mxu0 %v2070_v48  ;;  %813 = vrot.lane.b32.xlu1 %v4592_v14, %s3570_s13  ;;  %v3039_v34 = vld [vmem:[%s3665_s9 + $0xd8] sm:$0xff] }
 0x1c4   : > { %621 = vrot.lane.b32.xlu0 %v4595_v21, %s3568_s11  ;;  %2356 = vmatpush2.xpose.msra.mxu0 %v2069_v27 }
 0x1c5   : > { %v828_v19 = vpop.permute.xlu1 %827  ;;  %v2071_v7 = vld [vmem:[#allocation2 + $0x2c8] sm:$0xff] }
 0x1c6   : > { %v636_v2 = vpop.permute.xlu0 %635  ;;  %926 = vst.msk [vmem:[#allocation2 + $0x290] sm:$0xff] %vm871_vm3, %v828_v19  ;;  %3278 = vmatprep.subr.msk.mxu1 %vm2174_vm11, %v2071_v7 }
 0x1c7   : > { %704 = vst.msk [vmem:[#allocation2 + $0x2a0] sm:$0xff] %vm675_vm2, %v636_v2  ;;  %1039 = vrot.lane.b32.xlu1 %v4604_v42, %s3569_s12 }
 0x1c8   : > { %927 = vst.msk [vmem:[#allocation2 + $0x2a0] sm:$0xff] %vm869_vm7, %v830_v30  ;;  %1621 = vrot.lane.b32.xlu0 %v4495_v0, %s3573_s16 }
 0x1c9   : > { %v1054_v4 = vpop.permute.xlu1 %1053  ;;  %v2023_v18 = vld [vmem:[#allocation2 + $0x148] sm:$0xff] }
 0x1ca   : > { %v1636_v6 = vpop.permute.xlu0 %1635  ;;  %1123 = vst.msk [vmem:[#allocation2 + $0x290] sm:$0xff] %vm1095_vm4, %v1054_v4  ;;  %3279 = vmatpush3.xpose.msk.msra.mxu1 %vm2174_vm11, %v2023_v18 }
 0x1cb   : > { %1733 = vst.msk [vmem:[#allocation2 + $0x2a8] sm:$0xff] %vm1675_vm8, %v1636_v6  ;;  %1847 = vrot.lane.b32.xlu1 %v4450_v50, %s3574_s17 }
 0x1cc   : > { %1734 = vst.msk [vmem:[#allocation2 + $0x2b0] sm:$0xff] %vm1677_vm9, %v1636_v6  ;;  %1232 = vrot.lane.b32.xlu0 %v4558_v3, %s3572_s15 }
 0x1cd   : > { %v1862_v0 = vpop.permute.xlu1 %1861 }
 0x1ce   : > { %v1247_v43 = vpop.permute.xlu0 %1246  ;;  %1930 = vst.msk [vmem:[#allocation2 + $0x2b0] sm:$0xff] %vm1901_vm10, %v1862_v0  ;;  %v3184_v0 = vld [vmem:[%s3665_s9 + $0x3a] sm:$0xff] }
 0x1cf   : > { %1316 = vst.msk [vmem:[#allocation2 + $0x290] sm:$0xff] %vm1288_vm5, %v1247_v43  ;;  %1815 = vrot.lane.b32.xlu1 %v3188_v22, %s3574_s17  ;;  %v2066_v10 = vld [vmem:[#allocation2 + $0x2a0] sm:$0xff] }
 0x1d0   : > { %1426 = vrot.lane.b32.xlu0 %v4518_v60, %s3571_s14 }
 0x1d1   : > { %v1830_v50 = vpop.permute.xlu1 %1829 }
 0x1d2   : > { %v1441_v54 = vpop.permute.xlu0 %1440  ;;  %v2067_v35 = vld [vmem:[#allocation2 + $0x2a8] sm:$0xff]  ;;  %1914 = vst.msk [vmem:[#allocation2 + $0x130] sm:$0xff] %vm1901_vm10, %v1830_v50 }
 0x1d3   : > { %1510 = vst.msk [vmem:[#allocation2 + $0x290] sm:$0xff] %vm1482_vm6, %v1441_v54  ;;  %2357 = vmatprep.subr.mxu0 %v2067_v35  ;;  %811 = vrot.lane.b32.xlu1 %v4629_v52, %s3570_s13  ;;  %v1935_v50 = vld [vmem:[%s5315_s1 + $0x8] sm:$0xff] }
 0x1d4   : > { %619 = vrot.lane.b32.xlu0 %v4632_v24, %s3568_s11  ;;  %2358 = vmatpush2.xpose.msra.mxu0 %v2066_v10 }
 0x1d5   : > { %v826_v5 = vpop.permute.xlu1 %825  ;;  %v2068_v59 = vld [vmem:[#allocation2 + $0x2b0] sm:$0xff]  ;;  %2383 = vmatprep.mubr.f32.mxu0 %v1935_v50 }
 0x1d6   : > { %v634_v20 = vpop.permute.xlu0 %633  ;;  %924 = vst.msk [vmem:[#allocation2 + $0x278] sm:$0xff] %vm871_vm3, %v826_v5  ;;  %3280 = vmatprep.subr.msk.mxu1 %vm2174_vm11, %v2068_v59 }
 0x1d7   : > { %703 = vst.msk [vmem:[#allocation2 + $0x288] sm:$0xff] %vm675_vm2, %v634_v20  ;;  %1037 = vrot.lane.b32.xlu1 %v4641_v28, %s3569_s12 }
 0x1d8   : > { %925 = vst.msk [vmem:[#allocation2 + $0x288] sm:$0xff] %vm869_vm7, %v828_v19  ;;  %1619 = vrot.lane.b32.xlu0 %v4530_v57, %s3573_s16  ;;  %v3071_v19 = vld [vmem:[%s3665_s9 + $0xd9] sm:$0xff] }
 0x1d9   : > { %v1052_v60 = vpop.permute.xlu1 %1051  ;;  %v2020_v26 = vld [vmem:[#allocation2 + $0x130] sm:$0xff] }
 0x1da   : > { %v1634_v38 = vpop.permute.xlu0 %1633  ;;  %1122 = vst.msk [vmem:[#allocation2 + $0x278] sm:$0xff] %vm1095_vm4, %v1052_v60  ;;  %3281 = vmatpush3.xpose.msk.msra.mxu1 %vm2174_vm11, %v2020_v26 }
 0x1db   : > { %1731 = vst.msk [vmem:[#allocation2 + $0x290] sm:$0xff] %vm1675_vm8, %v1634_v38  ;;  %1845 = vrot.lane.b32.xlu1 %v4486_v17, %s3574_s17 }
 0x1dc   : > { %1732 = vst.msk [vmem:[#allocation2 + $0x298] sm:$0xff] %vm1677_vm9, %v1634_v38  ;;  %1230 = vrot.lane.b32.xlu0 %v4595_v21, %s3572_s15 }
 0x1dd   : > { %v1860_v31 = vpop.permute.xlu1 %1859 }
 0x1de   : > { %v1245_v57 = vpop.permute.xlu0 %1244  ;;  %1929 = vst.msk [vmem:[#allocation2 + $0x298] sm:$0xff] %vm1901_vm10, %v1860_v31 }
 0x1df   : > { %1315 = vst.msk [vmem:[#allocation2 + $0x278] sm:$0xff] %vm1288_vm5, %v1245_v57  ;;  %1813 = vrot.lane.b32.xlu1 %v3187_v61, %s3574_s17  ;;  %v2063_v62 = vld [vmem:[#allocation2 + $0x288] sm:$0xff] }
 0x1e0   : > { %1424 = vrot.lane.b32.xlu0 %v4555_v1, %s3571_s14  ;;  %v3186_v1 = vld [vmem:[%s3665_s9 + $0x52] sm:$0xff] }
 0x1e1   : > { %v1828_v13 = vpop.permute.xlu1 %1827 }
 0x1e2   : > { %v1439_v17 = vpop.permute.xlu0 %1438  ;;  %v2064_v12 = vld [vmem:[#allocation2 + $0x290] sm:$0xff]  ;;  %1913 = vst.msk [vmem:[#allocation2 + $0x118] sm:$0xff] %vm1901_vm10, %v1828_v13 }
 0x1e3   : > { %1509 = vst.msk [vmem:[#allocation2 + $0x278] sm:$0xff] %vm1482_vm6, %v1439_v17  ;;  %2359 = vmatprep.subr.mxu0 %v2064_v12  ;;  %809 = vrot.lane.b32.xlu1 %v4666_v44, %s3570_s13 }
 0x1e4   : > { %617 = vrot.lane.b32.xlu0 %v4266_v45, %s3568_s11  ;;  %2360 = vmatpush2.xpose.msra.mxu0 %v2063_v62 }
 0x1e5   : > { %v824_v63 = vpop.permute.xlu1 %823  ;;  %v2065_v8 = vld [vmem:[#allocation2 + $0x298] sm:$0xff] }
 0x1e6   : > { %v632_v29 = vpop.permute.xlu0 %631  ;;  %922 = vst.msk [vmem:[#allocation2 + $0x260] sm:$0xff] %vm871_vm3, %v824_v63  ;;  %3282 = vmatprep.subr.msk.mxu1 %vm2174_vm11, %v2065_v8 }
 0x1e7   : > { %702 = vst.msk [vmem:[#allocation2 + $0x270] sm:$0xff] %vm675_vm2, %v632_v29  ;;  %1035 = vrot.lane.b32.xlu1 %v4675_v32, %s3569_s12 }
 0x1e8   : > { %923 = vst.msk [vmem:[#allocation2 + $0x270] sm:$0xff] %vm869_vm7, %v826_v5  ;;  %1617 = vrot.lane.b32.xlu0 %v4567_v49, %s3573_s16  ;;  %v3183_v5 = vld [vmem:[%s3665_s9 + $0x32] sm:$0xff] }
 0x1e9   : > { %v1050_v45 = vpop.permute.xlu1 %1049  ;;  %v2017_v41 = vld [vmem:[#allocation2 + $0x118] sm:$0xff] }
 0x1ea   : > { %v1632_v55 = vpop.permute.xlu0 %1631  ;;  %1121 = vst.msk [vmem:[#allocation2 + $0x260] sm:$0xff] %vm1095_vm4, %v1050_v45  ;;  %3283 = vmatpush3.xpose.msk.msra.mxu1 %vm2174_vm11, %v2017_v41 }
 0x1eb   : > { %1729 = vst.msk [vmem:[#allocation2 + $0x278] sm:$0xff] %vm1675_vm8, %v1632_v55  ;;  %1843 = vrot.lane.b32.xlu1 %v4521_v51, %s3574_s17 }
 0x1ec   : > { %1730 = vst.msk [vmem:[#allocation2 + $0x280] sm:$0xff] %vm1677_vm9, %v1632_v55  ;;  %1228 = vrot.lane.b32.xlu0 %v4632_v24, %s3572_s15 }
 0x1ed   : > { %v1858_v33 = vpop.permute.xlu1 %1857 }
 0x1ee   : > { %v1243_v39 = vpop.permute.xlu0 %1242  ;;  %1928 = vst.msk [vmem:[#allocation2 + $0x280] sm:$0xff] %vm1901_vm10, %v1858_v33 }
 0x1ef   : > { %1314 = vst.msk [vmem:[#allocation2 + $0x260] sm:$0xff] %vm1288_vm5, %v1243_v39  ;;  %1811 = vrot.lane.b32.xlu1 %v3186_v1, %s3574_s17  ;;  %v2060_v30 = vld [vmem:[#allocation2 + $0x270] sm:$0xff] }
 0x1f0   : > { %1422 = vrot.lane.b32.xlu0 %v4592_v14, %s3571_s14 }
 0x1f1   : > { %v1826_v46 = vpop.permute.xlu1 %1825 }
 0x1f2   : > { %v1437_v49 = vpop.permute.xlu0 %1436  ;;  %v2061_v51 = vld [vmem:[#allocation2 + $0x278] sm:$0xff]  ;;  %1912 = vst.msk [vmem:[#allocation2 + $0x100] sm:$0xff] %vm1901_vm10, %v1826_v46 }
 0x1f3   : > { %1508 = vst.msk [vmem:[#allocation2 + $0x260] sm:$0xff] %vm1482_vm6, %v1437_v49  ;;  %2361 = vmatprep.subr.mxu0 %v2061_v51  ;;  %807 = vrot.lane.b32.xlu1 %v3040_v56, %s3570_s13 }
 0x1f4   : > { %615 = vrot.lane.b32.xlu0 %v4302_v36, %s3568_s11  ;;  %2362 = vmatpush2.xpose.msra.mxu0 %v2060_v30  ;;  %v3104_v36 = vld [vmem:[%s3665_s9 + $0xe2] sm:$0xff] }
 0x1f5   : > { %v822_v9 = vpop.permute.xlu1 %821  ;;  %v2062_v47 = vld [vmem:[#allocation2 + $0x280] sm:$0xff] }
 0x1f6   : > { %v630_v25 = vpop.permute.xlu0 %629  ;;  %920 = vst.msk [vmem:[#allocation2 + $0x248] sm:$0xff] %vm871_vm3, %v822_v9  ;;  %3284 = vmatprep.subr.msk.mxu1 %vm2174_vm11, %v2062_v47 }
 0x1f7   : > { %701 = vst.msk [vmem:[#allocation2 + $0x258] sm:$0xff] %vm675_vm2, %v630_v25  ;;  %1033 = vrot.lane.b32.xlu1 %v3072_v16, %s3569_s12 }
 0x1f8   : > { %921 = vst.msk [vmem:[#allocation2 + $0x258] sm:$0xff] %vm869_vm7, %v824_v63  ;;  %1615 = vrot.lane.b32.xlu0 %v4604_v42, %s3573_s16 }
 0x1f9   : > { %v1048_v11 = vpop.permute.xlu1 %1047  ;;  %v2014_v37 = vld [vmem:[#allocation2 + $0x100] sm:$0xff] }
 0x1fa   : > { %v1630_v15 = vpop.permute.xlu0 %1629  ;;  %1120 = vst.msk [vmem:[#allocation2 + $0x248] sm:$0xff] %vm1095_vm4, %v1048_v11  ;;  %3285 = vmatpush3.xpose.msk.msra.mxu1 %vm2174_vm11, %v2014_v37 }
 0x1fb   : > { %1727 = vst.msk [vmem:[#allocation2 + $0x260] sm:$0xff] %vm1675_vm8, %v1630_v15  ;;  %1841 = vrot.lane.b32.xlu1 %v4558_v3, %s3574_s17 }
 0x1fc   : > { %1728 = vst.msk [vmem:[#allocation2 + $0x268] sm:$0xff] %vm1677_vm9, %v1630_v15  ;;  %1226 = vrot.lane.b32.xlu0 %v3104_v36, %s3572_s15 }
 0x1fd   : > { %v1856_v14 = vpop.permute.xlu1 %1855 }
 0x1fe   : > { %v1241_v40 = vpop.permute.xlu0 %1240  ;;  %1927 = vst.msk [vmem:[#allocation2 + $0x268] sm:$0xff] %vm1901_vm10, %v1856_v14 }
 0x1ff   : > { %1313 = vst.msk [vmem:[#allocation2 + $0x248] sm:$0xff] %vm1288_vm5, %v1241_v40  ;;  %1809 = vrot.lane.b32.xlu1 %v3185_v53, %s3574_s17  ;;  %v2057_v3 = vld [vmem:[#allocation2 + $0x258] sm:$0xff] }
 0x200   : > { %1420 = vrot.lane.b32.xlu0 %v4629_v52, %s3571_s14 }
 0x201   : > { %v1824_v48 = vpop.permute.xlu1 %1823 }
 0x202   : > { %v1435_v27 = vpop.permute.xlu0 %1434  ;;  %v2058_v42 = vld [vmem:[#allocation2 + $0x260] sm:$0xff]  ;;  %1911 = vst.msk [vmem:[#allocation2 + $0xe8] sm:$0xff] %vm1901_vm10, %v1824_v48 }
 0x203   : > { %1507 = vst.msk [vmem:[#allocation2 + $0x248] sm:$0xff] %vm1482_vm6, %v1435_v27  ;;  %2363 = vmatprep.subr.mxu0 %v2058_v42  ;;  %805 = vrot.lane.b32.xlu1 %v3039_v34, %s3570_s13 }
 0x204   : > { %613 = vrot.lane.b32.xlu0 %v4338_v23, %s3568_s11  ;;  %2364 = vmatpush2.xpose.msra.mxu0 %v2057_v3  ;;  %v3103_v23 = vld [vmem:[%s3665_s9 + $0xda] sm:$0xff]  ;;  %s3018_s9 = sshll.u32 %s5177_s8, 6 }
 0x205   : > { %v820_v2 = vpop.permute.xlu1 %819  ;;  %v2059_v4 = vld [vmem:[#allocation2 + $0x268] sm:$0xff]  ;;  %s5195_s10 = scalar_lea.vmem [#allocation6], %s3018_s9 }
 0x206   : > { %v628_v7 = vpop.permute.xlu0 %627  ;;  %918 = vst.msk [vmem:[#allocation2 + $0x230] sm:$0xff] %vm871_vm3, %v820_v2  ;;  %3286 = vmatprep.subr.msk.mxu1 %vm2174_vm11, %v2059_v4  ;;  %v2079_v4 = vld [vmem:[%s5316_s2 + $0x8] sm:$0xff]  ;;  %s2908_s13 = sshll.u32 %s5195_s10, 4  ;;  %s5222_s13 = int_to_ptr.vmem [resolvable:$true] %s2908_s13 }
 0x207   : > { %700 = vst.msk [vmem:[#allocation2 + $0x240] sm:$0xff] %vm675_vm2, %v628_v7  ;;  %1031 = vrot.lane.b32.xlu1 %v3071_v19, %s3569_s12  ;;  %v2078_v7 = vld [vmem:[%s5316_s2] sm:$0xff]  ;;  %s3475_s23 = scalar_lea.vmem %s5222_s13, 1024  ;;  %p3482_p0 = scmp.lt.s32.totalorder %s5222_s13, %s3480_s26 }
 0x208   : > { %919 = vst.msk [vmem:[#allocation2 + $0x240] sm:$0xff] %vm869_vm7, %v822_v9  ;;  %1613 = vrot.lane.b32.xlu0 %v4641_v28, %s3573_s16  ;;  %v4767_v28 = vld [vmem:[%s5315_s1 + $0x10] sm:$0xff]  ;;  %p3476_p11 = scmp.ne.s32.totalorder %s5222_s13, %s3475_s23  ;;  %p3483_p1 = scmp.lt.s32.totalorder %s3481_s30, %s3475_s23 }
 0x209   : > { %v1046_v6 = vpop.permute.xlu1 %1045  ;;  %v2011_v22 = vld [vmem:[#allocation2 + $0xe8] sm:$0xff]  ;;  %3306 = vmatprep.mubr.msk.f32.mxu1 %vm2174_vm11, %v4767_v28 }
 0x20a   : > { %v1628_v18 = vpop.permute.xlu0 %1627  ;;  %1119 = vst.msk [vmem:[#allocation2 + $0x230] sm:$0xff] %vm1095_vm4, %v1046_v6  ;;  %3287 = vmatpush3.xpose.msk.msra.mxu1 %vm2174_vm11, %v2011_v22  ;;  %p3477_p12 = pnand %p3476_p11, %p3647_p5  ;;  %p3484_p2 = por %p3483_p1, %p3482_p0 }
 0x20b   : > { %1725 = vst.msk [vmem:[#allocation2 + $0x248] sm:$0xff] %vm1675_vm8, %v1628_v18  ;;  %1839 = vrot.lane.b32.xlu1 %v4595_v21, %s3574_s17 }
 0x20c   : > { %1726 = vst.msk [vmem:[#allocation2 + $0x250] sm:$0xff] %vm1677_vm9, %v1628_v18  ;;  %1224 = vrot.lane.b32.xlu0 %v3103_v23, %s3572_s15  ;;  %v3575_v23 = vmov 0   ;;  %p3478_p13 = pneg %p3477_p12 }
 0x20d   : > { %v1854_v43 = vpop.permute.xlu1 %1853  ;;  %3393 = vset.pattern.permute.xlu0 %v3575_v23  ;;  %3394 = vset.pattern.permute.xlu1 %v3575_v23  ;;  %v1937_v23 = vld [vmem:[%s5315_s1 + $0x18] sm:$0xff] }
 0x20e   : > { %v1239_v52 = vpop.permute.xlu0 %1238  ;;  %1926 = vst.msk [vmem:[#allocation2 + $0x250] sm:$0xff] %vm1901_vm10, %v1854_v43  ;;  %v2080_v43 = vld [vmem:[%s5316_s2 + $0x10] sm:$0xff]  ;;  %p3485_p3 = pnand %p3484_p2, %p3478_p13 }
 0x20f   : > { %1312 = vst.msk [vmem:[#allocation2 + $0x230] sm:$0xff] %vm1288_vm5, %v1239_v52  ;;  %1807 = vrot.lane.b32.xlu1 %v3184_v0, %s3574_s17  ;;  %v2054_v10 = vld [vmem:[#allocation2 + $0x240] sm:$0xff]  ;;  %v2081_v0 = vld [vmem:[%s5316_s2 + $0x18] sm:$0xff] }
 0x210   : > { %1418 = vrot.lane.b32.xlu0 %v4666_v44, %s3571_s14 }
 0x211   : > { %v1822_v21 = vpop.permute.xlu1 %1821 }
 0x212   : > { %v1433_v54 = vpop.permute.xlu0 %1432  ;;  %v2055_v35 = vld [vmem:[#allocation2 + $0x248] sm:$0xff]  ;;  %1910 = vst.msk [vmem:[#allocation2 + $0xd0] sm:$0xff] %vm1901_vm10, %v1822_v21 }
 0x213   : > { %1506 = vst.msk [vmem:[#allocation2 + $0x230] sm:$0xff] %vm1482_vm6, %v1433_v54  ;;  %2365 = vmatprep.subr.mxu0 %v2055_v35  ;;  %1611 = vrot.lane.b32.xlu1 %v4675_v32, %s3573_s16  ;;  %v2083_v54 = vld [vmem:[%s5316_s2 + $0x28] sm:$0xff]  ;;  %v2082_v35 = vld [vmem:[%s5316_s2 + $0x20] sm:$0xff] }
 0x214   : > { %611 = vrot.lane.b32.xlu0 %v4375_v58, %s3568_s11  ;;  %2366 = vmatpush2.xpose.msra.mxu0 %v2054_v10  ;;  %s3272_s11 = sshll.u32 %s3630_s22, 10 }
 0x215   : > { %v818_v20 = vpop.permute.xlu1 %817  ;;  %v2056_v60 = vld [vmem:[#allocation2 + $0x250] sm:$0xff]  ;;  %s5220_s16 = scalar_lea.hbm %s5319_s5, %s3272_s11 }
 0x216   : > { %v626_v59 = vpop.permute.xlu0 %625  ;;  %916 = vst.msk [vmem:[#allocation2 + $0x218] sm:$0xff] %vm871_vm3, %v818_v20  ;;  %3288 = vmatprep.subr.msk.mxu1 %vm2174_vm11, %v2056_v60 }
 0x217   : > { %699 = vst.msk [vmem:[#allocation2 + $0x228] sm:$0xff] %vm675_vm2, %v626_v59  ;;  %1805 = vrot.lane.b32.xlu1 %v3183_v5, %s3574_s17  ;;  %v2084_v59 = vld [vmem:[%s5316_s2 + $0x30] sm:$0xff] }
 0x218   : > { %917 = vst.msk [vmem:[#allocation2 + $0x228] sm:$0xff] %vm869_vm7, %v820_v2  ;;  %1837 = vrot.lane.b32.xlu0 %v4632_v24, %s3574_s17  ;;  %s2879_s17 = scalar_lea.sflag [#allocation7], %s5177_s8 }
 0x219   : > { %v1044_v58 = vpop.permute.xlu1 %1043  ;;  %v2008_v26 = vld [vmem:[#allocation2 + $0xd0] sm:$0xff] }
 0x21a   : > { %v1626_v38 = vpop.permute.xlu0 %1625  ;;  %1118 = vst.msk [vmem:[#allocation2 + $0x218] sm:$0xff] %vm1095_vm4, %v1044_v58  ;;  %3289 = vmatpush3.xpose.msk.msra.mxu1 %vm2174_vm11, %v2008_v26  ;;  %v2091_v26 = vld [vmem:[%s5316_s2 + $0x68] sm:$0xff] }
 0x21b   : > { %1723 = vst.msk [vmem:[#allocation2 + $0x230] sm:$0xff] %vm1675_vm8, %v1626_v38  ;;  %2101 = vperm.xlu1 %3394, %v2079_v4  }
 0x21c   : > { %1724 = vst.msk [vmem:[#allocation2 + $0x238] sm:$0xff] %vm1677_vm9, %v1626_v38  ;;  %2096 = vperm.xlu0 %3393, %v2078_v7  }
 0x21d   : > { %v1852_v61 = vpop.permute.xlu1 %1851 }
 0x21e   : > { %v1237_v31 = vpop.permute.xlu0 %1236  ;;  %1925 = vst.msk [vmem:[#allocation2 + $0x238] sm:$0xff] %vm1901_vm10, %v1852_v61 }
 0x21f   : > { %1311 = vst.msk [vmem:[#allocation2 + $0x218] sm:$0xff] %vm1288_vm5, %v1237_v31  ;;  %v2051_v13 = vld [vmem:[#allocation2 + $0x228] sm:$0xff]  ;;  %2106 = vperm.xlu1 %3394, %v2080_v43   ;;  %v2090_v31 = vld [vmem:[%s5316_s2 + $0x60] sm:$0xff] }
 0x220   : > { %2111 = vperm.xlu0 %3393, %v2081_v0   ;;  %v1944_v0 = vld [vmem:[%s5315_s1 + $0x50] sm:$0xff]  ;;  %v1942_v43 = vld [vmem:[%s5315_s1 + $0x40] sm:$0xff] }
 0x221   : > { %v1820_v24 = vpop.permute.xlu1 %1819 }
 0x222   : > { %v1431_v57 = vpop.permute.xlu0 %1430  ;;  %v2052_v44 = vld [vmem:[#allocation2 + $0x230] sm:$0xff]  ;;  %1909 = vst.msk [vmem:[#allocation2 + $0xb8] sm:$0xff] %vm1901_vm10, %v1820_v24 }
 0x223   : > { %1505 = vst.msk [vmem:[#allocation2 + $0x218] sm:$0xff] %vm1482_vm6, %v1431_v57  ;;  %2367 = vmatprep.subr.mxu0 %v2052_v44  ;;  %2116 = vperm.xlu1 %3394, %v2082_v35   ;;  %v1948_v35 = vld [vmem:[%s5315_s1 + $0x70] sm:$0xff] }
 0x224   : > { %2368 = vmatpush2.xpose.msra.mxu0 %v2051_v13  ;;  %2121 = vperm.xlu0 %3393, %v2083_v54   ;;  %v2093_v13 = vld [vmem:[%s5316_s2 + $0x78] sm:$0xff]  ;;  %v1950_v54 = vld [vmem:[%s5315_s1 + $0x80] sm:$0xff] }
 0x225   : > { %v816_v17 = vpop.permute.xlu1 %815  ;;  %v2053_v62 = vld [vmem:[#allocation2 + $0x238] sm:$0xff] }
 0x226   : > { %v624_v12 = vpop.permute.xlu0 %623  ;;  %914 = vst.msk [vmem:[#allocation2 + $0x200] sm:$0xff] %vm871_vm3, %v816_v17  ;;  %3290 = vmatprep.subr.msk.mxu1 %vm2174_vm11, %v2053_v62 }
 0x227   : > { %698 = vst.msk [vmem:[#allocation2 + $0x210] sm:$0xff] %vm675_vm2, %v624_v12  ;;  %2126 = vperm.xlu1 %3394, %v2084_v59   ;;  %v1952_v59 = vld [vmem:[%s5315_s1 + $0x90] sm:$0xff] }
 0x228   : > { %915 = vst.msk [vmem:[#allocation2 + $0x210] sm:$0xff] %vm869_vm7, %v818_v20  ;;  %v2085_v20 = vld [vmem:[%s5316_s2 + $0x38] sm:$0xff] }
 0x229   : > { %v1042_v32 = vpop.permute.xlu1 %1041  ;;  %v2005_v29 = vld [vmem:[#allocation2 + $0xb8] sm:$0xff]  ;;  %2131 = vperm.xlu0 %3393, %v2085_v20   ;;  %v1951_v20 = vld [vmem:[%s5315_s1 + $0x88] sm:$0xff] }
 0x22a   : > { %v1624_v63 = vpop.permute.xlu0 %1623  ;;  %1117 = vst.msk [vmem:[#allocation2 + $0x200] sm:$0xff] %vm1095_vm4, %v1042_v32  ;;  %3291 = vmatpush3.xpose.msk.msra.mxu1 %vm2174_vm11, %v2005_v29  ;;  %v2086_v29 = vld [vmem:[%s5316_s2 + $0x40] sm:$0xff] }
 0x22b   : > { %1721 = vst.msk [vmem:[#allocation2 + $0x218] sm:$0xff] %vm1675_vm8, %v1624_v63  ;;  %2156 = vperm.xlu1 %3394, %v2090_v31   ;;  %v1958_v31 = vld [vmem:[%s5315_s1 + $0xc0] sm:$0xff] }
 0x22c   : > { %1722 = vst.msk [vmem:[#allocation2 + $0x220] sm:$0xff] %vm1677_vm9, %v1624_v63  ;;  %v2087_v63 = vld [vmem:[%s5316_s2 + $0x48] sm:$0xff] }
 0x22d   : > { %v1850_v8 = vpop.permute.xlu1 %1849  ;;  %2161 = vperm.xlu0 %3393, %v2091_v26   ;;  %v1959_v26 = vld [vmem:[%s5315_s1 + $0xc8] sm:$0xff] }
 0x22e   : > { %v1235_v45 = vpop.permute.xlu0 %1234  ;;  %1924 = vst.msk [vmem:[#allocation2 + $0x220] sm:$0xff] %vm1901_vm10, %v1850_v8 }
 0x22f   : > { %1310 = vst.msk [vmem:[#allocation2 + $0x200] sm:$0xff] %vm1288_vm5, %v1235_v45  ;;  %v2048_v33 = vld [vmem:[#allocation2 + $0x210] sm:$0xff] }
 0x231   : > { %v1818_v55 = vpop.permute.xlu1 %1817  ;;  %2171 = vperm.xlu0 %3393, %v2093_v13   ;;  %v1965_v13 = vld [vmem:[%s5315_s1 + $0xf8] sm:$0xff] }
 0x232   : > { %v1429_v41 = vpop.permute.xlu0 %1428  ;;  %v2049_v1 = vld [vmem:[#allocation2 + $0x218] sm:$0xff]  ;;  %1908 = vst.msk [vmem:[#allocation2 + $0xa0] sm:$0xff] %vm1901_vm10, %v1818_v55 }
 0x233   : > { %1504 = vst.msk [vmem:[#allocation2 + $0x200] sm:$0xff] %vm1482_vm6, %v1429_v41  ;;  %2369 = vmatprep.subr.mxu0 %v2049_v1  ;;  %v2089_v55 = vld [vmem:[%s5316_s2 + $0x58] sm:$0xff]  ;;  %v2088_v41 = vld [vmem:[%s5316_s2 + $0x50] sm:$0xff] }
 0x234   : > { %2370 = vmatpush2.xpose.msra.mxu0 %v2048_v33 }
 0x235   : > { %v814_v39 = vpop.permute.xlu1 %813  ;;  %v2050_v46 = vld [vmem:[#allocation2 + $0x220] sm:$0xff]  ;;  %2141 = vperm.xlu0 %3393, %v2087_v63   ;;  %v1967_v63 = vld [vmem:[%s5315_s1 + $0x108] sm:$0xff] }
 0x236   : > { %v622_v56 = vpop.permute.xlu0 %621  ;;  %912 = vst.msk [vmem:[#allocation2 + $0x1e8] sm:$0xff] %vm871_vm3, %v814_v39  ;;  %3292 = vmatprep.subr.msk.mxu1 %vm2174_vm11, %v2050_v46 }
 0x237   : > { %697 = vst.msk [vmem:[#allocation2 + $0x1f8] sm:$0xff] %vm675_vm2, %v622_v56 }
 0x238   : > { %913 = vst.msk [vmem:[#allocation2 + $0x1f8] sm:$0xff] %vm869_vm7, %v816_v17  ;;  %v2092_v17 = vld [vmem:[%s5316_s2 + $0x70] sm:$0xff] }
 0x239   : > { %v1040_v49 = vpop.permute.xlu1 %1039  ;;  %v2002_v30 = vld [vmem:[#allocation2 + $0xa0] sm:$0xff]  ;;  %2166 = vperm.xlu1 %3394, %v2092_v17   ;;  %2151 = vperm.xlu0 %3393, %v2089_v55   ;;  %v1963_v17 = vld [vmem:[%s5315_s1 + $0xe8] sm:$0xff] }
 0x23a   : > { %v1622_v51 = vpop.permute.xlu0 %1621  ;;  %1116 = vst.msk [vmem:[#allocation2 + $0x1e8] sm:$0xff] %vm1095_vm4, %v1040_v49  ;;  %3293 = vmatpush3.xpose.msk.msra.mxu1 %vm2174_vm11, %v2002_v30  ;;  %v1974_v55 = vld [vmem:[%s5315_s1 + $0x140] sm:$0xff] }
 0x23b   : > { %1719 = vst.msk [vmem:[#allocation2 + $0x200] sm:$0xff] %vm1675_vm8, %v1622_v51 }
 0x23c   : > { %1720 = vst.msk [vmem:[#allocation2 + $0x208] sm:$0xff] %vm1677_vm9, %v1622_v51 }
 0x23d   : > { %v1848_v16 = vpop.permute.xlu1 %1847  ;;  %2136 = vperm.xlu1 %3394, %v2086_v29   ;;  %v1971_v29 = vld [vmem:[%s5315_s1 + $0x128] sm:$0xff] }
 0x23e   : > { %v1233_v9 = vpop.permute.xlu0 %1232  ;;  %1923 = vst.msk [vmem:[#allocation2 + $0x208] sm:$0xff] %vm1901_vm10, %v1848_v16 }
 0x23f   : > { %1309 = vst.msk [vmem:[#allocation2 + $0x1e8] sm:$0xff] %vm1288_vm5, %v1233_v9  ;;  %v2045_v11 = vld [vmem:[#allocation2 + $0x1f8] sm:$0xff] }
 0x241   : > { %v1816_v25 = vpop.permute.xlu1 %1815  ;;  %2146 = vperm.xlu1 %3394, %v2088_v41   ;;  %v1972_v41 = vld [vmem:[%s5315_s1 + $0x130] sm:$0xff] }
 0x242   : > { %v1427_v47 = vpop.permute.xlu0 %1426  ;;  %v2046_v36 = vld [vmem:[#allocation2 + $0x200] sm:$0xff]  ;;  %1907 = vst.msk [vmem:[#allocation2 + $0x88] sm:$0xff] %vm1901_vm10, %v1816_v25 }
 0x243   : > { %1503 = vst.msk [vmem:[#allocation2 + $0x1e8] sm:$0xff] %vm1482_vm6, %v1427_v47  ;;  %2371 = vmatprep.subr.mxu0 %v2046_v36 }
 0x244   : > { %2372 = vmatpush2.xpose.msra.mxu0 %v2045_v11 }
 0x245   : > { %v812_v15 = vpop.permute.xlu1 %811  ;;  %v2047_v53 = vld [vmem:[#allocation2 + $0x208] sm:$0xff] }
 0x246   : > { %v620_v37 = vpop.permute.xlu0 %619  ;;  %910 = vst.msk [vmem:[#allocation2 + $0x1d0] sm:$0xff] %vm871_vm3, %v812_v15  ;;  %3294 = vmatprep.subr.msk.mxu1 %vm2174_vm11, %v2047_v53 }
 0x247   : > { %696 = vst.msk [vmem:[#allocation2 + $0x1e0] sm:$0xff] %vm675_vm2, %v620_v37 }
 0x248   : > { %911 = vst.msk [vmem:[#allocation2 + $0x1e0] sm:$0xff] %vm869_vm7, %v814_v39 }
 0x249   : > { %v1038_v14 = vpop.permute.xlu1 %1037  ;;  %v1999_v34 = vld [vmem:[#allocation2 + $0x88] sm:$0xff] }
 0x24a   : > { %v1620_v40 = vpop.permute.xlu0 %1619  ;;  %1115 = vst.msk [vmem:[#allocation2 + $0x1d0] sm:$0xff] %vm1095_vm4, %v1038_v14  ;;  %3295 = vmatpush3.xpose.msk.msra.mxu1 %vm2174_vm11, %v1999_v34 }
 0x24b   : > { %1717 = vst.msk [vmem:[#allocation2 + $0x1e8] sm:$0xff] %vm1675_vm8, %v1620_v40 }
 0x24c   : > { %1718 = vst.msk [vmem:[#allocation2 + $0x1f0] sm:$0xff] %vm1677_vm9, %v1620_v40 }
 0x24d   : > { %v1846_v48 = vpop.permute.xlu1 %1845 }
 0x24e   : > { %v1231_v27 = vpop.permute.xlu0 %1230  ;;  %1922 = vst.msk [vmem:[#allocation2 + $0x1f0] sm:$0xff] %vm1901_vm10, %v1846_v48 }
 0x24f   : > { %1308 = vst.msk [vmem:[#allocation2 + $0x1d0] sm:$0xff] %vm1288_vm5, %v1231_v27  ;;  %v2042_v2 = vld [vmem:[#allocation2 + $0x1e0] sm:$0xff] }
 0x251   : > { %v1814_v42 = vpop.permute.xlu1 %1813 }
 0x252   : > { %v1425_v3 = vpop.permute.xlu0 %1424  ;;  %v2043_v19 = vld [vmem:[#allocation2 + $0x1e8] sm:$0xff]  ;;  %1906 = vst.msk [vmem:[#allocation2 + $0x70] sm:$0xff] %vm1901_vm10, %v1814_v42 }
 0x253   : > { %1502 = vst.msk [vmem:[#allocation2 + $0x1d0] sm:$0xff] %vm1482_vm6, %v1425_v3  ;;  %2373 = vmatprep.subr.mxu0 %v2043_v19  ;;  %v1934_v19 = vld [vmem:[%s5315_s1] sm:$0xff] }
 0x254   : > { %2374 = vmatpush2.xpose.msra.mxu0 %v2042_v2  ;;  %v1938_v2 = vld [vmem:[%s5315_s1 + $0x20] sm:$0xff] }
 0x255   : > { %v810_v6 = vpop.permute.xlu1 %809  ;;  %v2044_v22 = vld [vmem:[#allocation2 + $0x1f0] sm:$0xff] }
 0x256   : > { %v618_v18 = vpop.permute.xlu0 %617  ;;  %908 = vst.msk [vmem:[#allocation2 + $0x1b8] sm:$0xff] %vm871_vm3, %v810_v6  ;;  %3296 = vmatprep.subr.msk.mxu1 %vm2174_vm11, %v2044_v22  ;;  %v1940_v22 = vld [vmem:[%s5315_s1 + $0x30] sm:$0xff] }
 0x257   : > { %695 = vst.msk [vmem:[#allocation2 + $0x1c8] sm:$0xff] %vm675_vm2, %v618_v18  ;;  %v1939_v18 = vld [vmem:[%s5315_s1 + $0x28] sm:$0xff] }
 0x258   : > { %909 = vst.msk [vmem:[#allocation2 + $0x1c8] sm:$0xff] %vm869_vm7, %v812_v15 }
 0x259   : > { %v1036_v52 = vpop.permute.xlu1 %1035  ;;  %v1996_v21 = vld [vmem:[#allocation2 + $0x70] sm:$0xff] }
 0x25a   : > { %v1618_v50 = vpop.permute.xlu0 %1617  ;;  %1114 = vst.msk [vmem:[#allocation2 + $0x1b8] sm:$0xff] %vm1095_vm4, %v1036_v52  ;;  %3297 = vmatpush3.xpose.msk.msra.mxu1 %vm2174_vm11, %v1996_v21  ;;  %v1947_v52 = vld [vmem:[%s5315_s1 + $0x68] sm:$0xff]  ;;  %v1946_v21 = vld [vmem:[%s5315_s1 + $0x60] sm:$0xff] }
 0x25b   : > { %1715 = vst.msk [vmem:[#allocation2 + $0x1d0] sm:$0xff] %vm1675_vm8, %v1618_v50 }
 0x25c   : > { %1716 = vst.msk [vmem:[#allocation2 + $0x1d8] sm:$0xff] %vm1677_vm9, %v1618_v50  ;;  %v1945_v50 = vld [vmem:[%s5315_s1 + $0x58] sm:$0xff] }
 0x25d   : > { %v1844_v10 = vpop.permute.xlu1 %1843 }
 0x25e   : > { %v1229_v5 = vpop.permute.xlu0 %1228  ;;  %1921 = vst.msk [vmem:[#allocation2 + $0x1d8] sm:$0xff] %vm1901_vm10, %v1844_v10  ;;  %v1949_v10 = vld [vmem:[%s5315_s1 + $0x78] sm:$0xff] }
 0x25f   : > { %1307 = vst.msk [vmem:[#allocation2 + $0x1b8] sm:$0xff] %vm1288_vm5, %v1229_v5  ;;  %v2039_v61 = vld [vmem:[#allocation2 + $0x1c8] sm:$0xff]  ;;  %v1953_v5 = vld [vmem:[%s5315_s1 + $0x98] sm:$0xff] }
 0x261   : > { %v1812_v60 = vpop.permute.xlu1 %1811 }
 0x262   : > { %v1423_v58 = vpop.permute.xlu0 %1422  ;;  %v2040_v38 = vld [vmem:[#allocation2 + $0x1d0] sm:$0xff]  ;;  %1905 = vst.msk [vmem:[#allocation2 + $0x58] sm:$0xff] %vm1901_vm10, %v1812_v60 }
 0x263   : > { %1501 = vst.msk [vmem:[#allocation2 + $0x1b8] sm:$0xff] %vm1482_vm6, %v1423_v58  ;;  %2375 = vmatprep.subr.mxu0 %v2040_v38  ;;  %v1956_v60 = vld [vmem:[%s5315_s1 + $0xb0] sm:$0xff]  ;;  %v1954_v58 = vld [vmem:[%s5315_s1 + $0xa0] sm:$0xff]  ;;  %v1955_v38 = vld [vmem:[%s5315_s1 + $0xa8] sm:$0xff] }
 0x264   : > { %2376 = vmatpush2.xpose.msra.mxu0 %v2039_v61  ;;  %v1957_v61 = vld [vmem:[%s5315_s1 + $0xb8] sm:$0xff] }
 0x265   : > { %v808_v24 = vpop.permute.xlu1 %807  ;;  %v2041_v44 = vld [vmem:[#allocation2 + $0x1d8] sm:$0xff] }
 0x266   : > { %v616_v57 = vpop.permute.xlu0 %615  ;;  %906 = vst.msk [vmem:[#allocation2 + $0x1a0] sm:$0xff] %vm871_vm3, %v808_v24  ;;  %3298 = vmatprep.subr.msk.mxu1 %vm2174_vm11, %v2041_v44  ;;  %v1961_v44 = vld [vmem:[%s5315_s1 + $0xd8] sm:$0xff] }
 0x267   : > { %694 = vst.msk [vmem:[#allocation2 + $0x1b0] sm:$0xff] %vm675_vm2, %v616_v57  ;;  %v1960_v57 = vld [vmem:[%s5315_s1 + $0xd0] sm:$0xff] }
 0x268   : > { %907 = vst.msk [vmem:[#allocation2 + $0x1b0] sm:$0xff] %vm869_vm7, %v810_v6  ;;  %v1941_v6 = vld [vmem:[%s5315_s1 + $0x38] sm:$0xff] }
 0x269   : > { %v1034_v12 = vpop.permute.xlu1 %1033  ;;  %v1993_v32 = vld [vmem:[#allocation2 + $0x58] sm:$0xff] }
 0x26a   : > { %v1616_v62 = vpop.permute.xlu0 %1615  ;;  %1113 = vst.msk [vmem:[#allocation2 + $0x1a0] sm:$0xff] %vm1095_vm4, %v1034_v12  ;;  %3299 = vmatpush3.xpose.msk.msra.mxu1 %vm2174_vm11, %v1993_v32  ;;  %v1964_v12 = vld [vmem:[%s5315_s1 + $0xf0] sm:$0xff]  ;;  %v1966_v32 = vld [vmem:[%s5315_s1 + $0x100] sm:$0xff] }
 0x26b   : > { %1713 = vst.msk [vmem:[#allocation2 + $0x1b8] sm:$0xff] %vm1675_vm8, %v1616_v62 }
 0x26c   : > { %1714 = vst.msk [vmem:[#allocation2 + $0x1c0] sm:$0xff] %vm1677_vm9, %v1616_v62  ;;  %v1968_v62 = vld [vmem:[%s5315_s1 + $0x110] sm:$0xff] }
 0x26d   : > { %v1842_v8 = vpop.permute.xlu1 %1841 }
 0x26e   : > { %v1227_v45 = vpop.permute.xlu0 %1226  ;;  %1920 = vst.msk [vmem:[#allocation2 + $0x1c0] sm:$0xff] %vm1901_vm10, %v1842_v8  ;;  %v1969_v8 = vld [vmem:[%s5315_s1 + $0x118] sm:$0xff] }
 0x26f   : > { %1306 = vst.msk [vmem:[#allocation2 + $0x1a0] sm:$0xff] %vm1288_vm5, %v1227_v45  ;;  %v2036_v56 = vld [vmem:[#allocation2 + $0x1b0] sm:$0xff]  ;;  %v1970_v45 = vld [vmem:[%s5315_s1 + $0x120] sm:$0xff] }
 0x271   : > { %v1810_v1 = vpop.permute.xlu1 %1809 }
 0x272   : > { %v1421_v33 = vpop.permute.xlu0 %1420  ;;  %v2037_v39 = vld [vmem:[#allocation2 + $0x1b8] sm:$0xff]  ;;  %1904 = vst.msk [vmem:[#allocation2 + $0x40] sm:$0xff] %vm1901_vm10, %v1810_v1 }
 0x273   : > { %1500 = vst.msk [vmem:[#allocation2 + $0x1a0] sm:$0xff] %vm1482_vm6, %v1421_v33  ;;  %2377 = vmatprep.subr.mxu0 %v2037_v39  ;;  %v1973_v1 = vld [vmem:[%s5315_s1 + $0x138] sm:$0xff]  ;;  %v1975_v39 = vld [vmem:[%s5315_s1 + $0x148] sm:$0xff] }
 0x274   : > { %2378 = vmatpush2.xpose.msra.mxu0 %v2036_v56  ;;  %v1977_v33 = vld [vmem:[%s5315_s1 + $0x158] sm:$0xff]  ;;  %v1976_v56 = vld [vmem:[%s5315_s1 + $0x150] sm:$0xff] }
 0x275   : > { %v806_v46 = vpop.permute.xlu1 %805  ;;  %v2038_v51 = vld [vmem:[#allocation2 + $0x1c0] sm:$0xff] }
 0x276   : > { %v614_v49 = vpop.permute.xlu0 %613  ;;  %904 = vst.msk [vmem:[#allocation2 + $0x188] sm:$0xff] %vm871_vm3, %v806_v46  ;;  %3300 = vmatprep.subr.msk.mxu1 %vm2174_vm11, %v2038_v51  ;;  %v1979_v51 = vld [vmem:[%s5315_s1 + $0x168] sm:$0xff] }
 0x277   : > { %693 = vst.msk [vmem:[#allocation2 + $0x198] sm:$0xff] %vm675_vm2, %v614_v49  ;;  %v1978_v49 = vld [vmem:[%s5315_s1 + $0x160] sm:$0xff] }
 0x278   : > { %905 = vst.msk [vmem:[#allocation2 + $0x198] sm:$0xff] %vm869_vm7, %v808_v24  ;;  %v1962_v24 = vld [vmem:[%s5315_s1 + $0xe0] sm:$0xff] }
 0x279   : > { %v1032_v30 = vpop.permute.xlu1 %1031  ;;  %v1990_v9 = vld [vmem:[#allocation2 + $0x40] sm:$0xff] }
 0x27a   : > { %v1614_v16 = vpop.permute.xlu0 %1613  ;;  %1112 = vst.msk [vmem:[#allocation2 + $0x188] sm:$0xff] %vm1095_vm4, %v1032_v30  ;;  %3301 = vmatpush3.xpose.msk.msra.mxu1 %vm2174_vm11, %v1990_v9  ;;  %v1981_v30 = vld [vmem:[%s5315_s1 + $0x178] sm:$0xff] }
 0x27b   : > { %1711 = vst.msk [vmem:[#allocation2 + $0x1a0] sm:$0xff] %vm1675_vm8, %v1614_v16 }
 0x27c   : > { %1712 = vst.msk [vmem:[#allocation2 + $0x1a8] sm:$0xff] %vm1677_vm9, %v1614_v16 }
 0x27d   : > { %v1840_v25 = vpop.permute.xlu1 %1839 }
 0x27e   : > { %v1225_v47 = vpop.permute.xlu0 %1224  ;;  %1919 = vst.msk [vmem:[#allocation2 + $0x1a8] sm:$0xff] %vm1901_vm10, %v1840_v25 }
 0x27f   : > { %1305 = vst.msk [vmem:[#allocation2 + $0x188] sm:$0xff] %vm1288_vm5, %v1225_v47  ;;  %v2033_v37 = vld [vmem:[#allocation2 + $0x198] sm:$0xff] }
 0x281   : > { %v1808_v36 = vpop.permute.xlu1 %1807 }
 0x282   : > { %v1419_v11 = vpop.permute.xlu0 %1418  ;;  %v2034_v15 = vld [vmem:[#allocation2 + $0x1a0] sm:$0xff]  ;;  %1903 = vst.msk [vmem:[#allocation2 + $0x28] sm:$0xff] %vm1901_vm10, %v1808_v36 }
 0x283   : > { %1499 = vst.msk [vmem:[#allocation2 + $0x188] sm:$0xff] %vm1482_vm6, %v1419_v11  ;;  %2379 = vmatprep.subr.mxu0 %v2034_v15 }
 0x284   : > { %2380 = vmatpush2.xpose.msra.mxu0 %v2033_v37 }
 0x285   : > { %v1612_v53 = vpop.permute.xlu1 %1611  ;;  %v2035_v40 = vld [vmem:[#allocation2 + $0x1a8] sm:$0xff] }
 0x286   : > { %v612_v14 = vpop.permute.xlu0 %611  ;;  %1709 = vst.msk [vmem:[#allocation2 + $0x188] sm:$0xff] %vm1675_vm8, %v1612_v53  ;;  %3302 = vmatprep.subr.msk.mxu1 %vm2174_vm11, %v2035_v40 }
 0x287   : > { %1710 = vst.msk [vmem:[#allocation2 + $0x190] sm:$0xff] %vm1677_vm9, %v1612_v53 }
 0x288   : > { %692 = vst.msk [vmem:[#allocation2 + $0x180] sm:$0xff] %vm675_vm2, %v612_v14 }
 0x289   : > { %903 = vst.msk [vmem:[#allocation2 + $0x180] sm:$0xff] %vm869_vm7, %v806_v46  ;;  %v1806_v48 = vpop.permute.xlu1 %1805  ;;  %v1987_v27 = vld [vmem:[#allocation2 + $0x28] sm:$0xff]  ;;  %v1980_v46 = vld [vmem:[%s5315_s1 + $0x170] sm:$0xff] }
 0x28a   : > { %v1838_v34 = vpop.permute.xlu0 %1837  ;;  %1902 = vst.msk [vmem:[#allocation2 + $0x10] sm:$0xff] %vm1901_vm10, %v1806_v48  ;;  %3303 = vmatpush3.xpose.msk.msra.mxu1 %vm2174_vm11, %v1987_v27 }
 0x28b   : > { %1918 = vst.msk [vmem:[#allocation2 + $0x190] sm:$0xff] %vm1901_vm10, %v1838_v34 }
 0x28d   : > { %v2031_v42 = vld [vmem:[#allocation2 + $0x188] sm:$0xff] }
 0x28e   : > { %2381 = vmatprep.subr.mxu0 %v2031_v42 }
 0x290   : > { %v2030_v3 = vld [vmem:[#allocation2 + $0x180] sm:$0xff] }
 0x291   : > { %2382 = vmatpush2.xpose.msra.mxu0 %v2030_v3  ;;  %v1984_v4 = vld [vmem:[#allocation2 + $0x10] sm:$0xff] }
 0x292   : > { %v2032_v7 = vld [vmem:[#allocation2 + $0x190] sm:$0xff] }
 0x293   : > { %3304 = vmatprep.subr.msk.mxu1 %vm2174_vm11, %v2032_v7 }
 0x294   : > { %2384 = vmatmul.mubr.f32.vlgmr.msra.gmra.mxu0 %v1934_v19  ;;  %3305 = vmatpush3.xpose.msk.msra.mxu1 %vm2174_vm11, %v1984_v4 }
 0x295   : > { %2389 = vmatprep.mubr.f32.mxu0 %v1938_v2 }
 0x296   : > { %v2102_v48 = vpop.permute.xlu1 %2101 }
 0x297   : > { %3307 = vmatmul.mubr.msk.f32.vlgmr.msra.gmra.mxu1 %vm2174_vm11, %v4767_v28  ;;  %v1943_v28 = vld [vmem:[%s5315_s1 + $0x48] sm:$0xff]  ;;  %v2097_v2 = vpop.permute.xlu0 %2096 }
 0x298   : > { %2390 = vmatmul.mubr.f32.gmra.mxu0 %v1937_v23  ;;  %3308 = vmatprep.mubr.msk.f32.mxu1 %vm2174_vm11, %v1939_v18 }
 0x299   : > { %2395 = vmatprep.mubr.f32.mxu0 %v1941_v6 }
 0x29a   : > { %v2107_v23 = vpop.permute.xlu1 %2106 }
 0x29b   : > { %3309 = vmatmul.mubr.msk.f32.gmra.mxu1 %vm2174_vm11, %v1939_v18 }
 0x29c   : > { %2396 = vmatmul.mubr.f32.gmra.mxu0 %v1940_v22  ;;  %3310 = vmatprep.mubr.msk.f32.mxu1 %vm2174_vm11, %v1942_v43 }
 0x29d   : > { %2401 = vmatprep.mubr.f32.mxu0 %v1944_v0 }
 0x29f   : > { %3311 = vmatmul.mubr.msk.f32.gmra.mxu1 %vm2174_vm11, %v1942_v43 }
 0x2a0   : > { %2402 = vmatmul.mubr.f32.gmra.mxu0 %v1943_v28  ;;  %3312 = vmatprep.mubr.msk.f32.mxu1 %vm2174_vm11, %v1945_v50 }
 0x2a1   : > { %2407 = vmatprep.mubr.f32.mxu0 %v1947_v52 }
 0x2a3   : > { %3313 = vmatmul.mubr.msk.f32.gmra.mxu1 %vm2174_vm11, %v1945_v50  ;;  %v2117_v50 = vpop.permute.xlu1 %2116 }
 0x2a4   : > { %2408 = vmatmul.mubr.f32.gmra.mxu0 %v1946_v21  ;;  %3314 = vmatprep.mubr.msk.f32.mxu1 %vm2174_vm11, %v1948_v35 }
 0x2a5   : > { %2413 = vmatprep.mubr.f32.mxu0 %v1950_v54 }
 0x2a7   : > { %3315 = vmatmul.mubr.msk.f32.gmra.mxu1 %vm2174_vm11, %v1948_v35 }
 0x2a8   : > { %2414 = vmatmul.mubr.f32.gmra.mxu0 %v1949_v10  ;;  %3316 = vmatprep.mubr.msk.f32.mxu1 %vm2174_vm11, %v1951_v20 }
 0x2a9   : > { %2419 = vmatprep.mubr.f32.mxu0 %v1953_v5  ;;  %v2112_v5 = vpop.permute.xlu0 %2111 }
 0x2ab   : > { %3317 = vmatmul.mubr.msk.f32.gmra.mxu1 %vm2174_vm11, %v1951_v20 }
 0x2ac   : > { %2420 = vmatmul.mubr.f32.gmra.mxu0 %v1952_v59  ;;  %3318 = vmatprep.mubr.msk.f32.mxu1 %vm2174_vm11, %v1954_v58 }
 0x2ad   : > { %2425 = vmatprep.mubr.f32.mxu0 %v1956_v60 }
 0x2af   : > { %3319 = vmatmul.mubr.msk.f32.gmra.mxu1 %vm2174_vm11, %v1954_v58 }
 0x2b0   : > { %2426 = vmatmul.mubr.f32.gmra.mxu0 %v1955_v38  ;;  %3320 = vmatprep.mubr.msk.f32.mxu1 %vm2174_vm11, %v1957_v61 }
 0x2b1   : > { %2431 = vmatprep.mubr.f32.mxu0 %v1959_v26 }
 0x2b3   : > { %3321 = vmatmul.mubr.msk.f32.gmra.mxu1 %vm2174_vm11, %v1957_v61 }
 0x2b4   : > { %2432 = vmatmul.mubr.f32.gmra.mxu0 %v1958_v31  ;;  %3322 = vmatprep.mubr.msk.f32.mxu1 %vm2174_vm11, %v1960_v57 }
 0x2b5   : > { %2437 = vmatprep.mubr.f32.mxu0 %v1962_v24 }
 0x2b7   : > { %3323 = vmatmul.mubr.msk.f32.gmra.mxu1 %vm2174_vm11, %v1960_v57 }
 0x2b8   : > { %2438 = vmatmul.mubr.f32.gmra.mxu0 %v1961_v44  ;;  %3324 = vmatprep.mubr.msk.f32.mxu1 %vm2174_vm11, %v1963_v17  ;;  %v2127_v44 = vpop.permute.xlu1 %2126 }
 0x2b9   : > { %2443 = vmatprep.mubr.f32.mxu0 %v1965_v13  ;;  %v2122_v13 = vpop.permute.xlu0 %2121 }
 0x2bb   : > { %3325 = vmatmul.mubr.msk.f32.gmra.mxu1 %vm2174_vm11, %v1963_v17 }
 0x2bc   : > { %2444 = vmatmul.mubr.f32.gmra.mxu0 %v1964_v12  ;;  %3326 = vmatprep.mubr.msk.f32.mxu1 %vm2174_vm11, %v1966_v32 }
 0x2bd   : > { %2449 = vmatprep.mubr.f32.mxu0 %v1968_v62 }
 0x2bf   : > { %3327 = vmatmul.mubr.msk.f32.gmra.mxu1 %vm2174_vm11, %v1966_v32 }
 0x2c0   : > { %2450 = vmatmul.mubr.f32.gmra.mxu0 %v1967_v63  ;;  %3328 = vmatprep.mubr.msk.f32.mxu1 %vm2174_vm11, %v1969_v8 }
 0x2c1   : > { %2455 = vmatprep.mubr.f32.mxu0 %v1971_v29 }
 0x2c3   : > { %3329 = vmatmul.mubr.msk.f32.gmra.mxu1 %vm2174_vm11, %v1969_v8 }
 0x2c4   : > { %2456 = vmatmul.mubr.f32.gmra.mxu0 %v1970_v45  ;;  %3330 = vmatprep.mubr.msk.f32.mxu1 %vm2174_vm11, %v1972_v41 }
 0x2c5   : > { %2461 = vmatprep.mubr.f32.mxu0 %v1974_v55 }
 0x2c7   : > { %3331 = vmatmul.mubr.msk.f32.gmra.mxu1 %vm2174_vm11, %v1972_v41 }
 0x2c8   : > { %2462 = vmatmul.mubr.f32.gmra.mxu0 %v1973_v1  ;;  %3332 = vmatprep.mubr.msk.f32.mxu1 %vm2174_vm11, %v1975_v39 }
 0x2c9   : > { %2467 = vmatprep.mubr.f32.mxu0 %v1977_v33 }
 0x2cb   : > { %3333 = vmatmul.mubr.msk.f32.gmra.mxu1 %vm2174_vm11, %v1975_v39 }
 0x2cc   : > { %2468 = vmatmul.mubr.f32.gmra.mxu0 %v1976_v56  ;;  %3334 = vmatprep.mubr.msk.f32.mxu1 %vm2174_vm11, %v1978_v49 }
 0x2cd   : > { %2473 = vmatprep.mubr.f32.mxu0 %v1980_v46 }
 0x2cf   : > { %3335 = vmatmul.mubr.msk.f32.gmra.mxu1 %vm2174_vm11, %v1978_v49  ;;  %v5099_v49 = vpop.permute.xlu1 %2156 }
 0x2d0   : > { %2474 = vmatmul.mubr.f32.gmra.mxu0 %v1979_v51  ;;  %3336 = vmatprep.mubr.msk.f32.mxu1 %vm2174_vm11, %v1981_v30  ;;  %v2132_v51 = vpop.permute.xlu0 %2131 }
 0x2d3   : > { %3337 = vmatmul.mubr.msk.f32.gmra.mxu1 %vm2174_vm11, %v1981_v30 }
 0x354   : > { %v2385_v16 = vpop.f32.mrf.mxu0 }
 0x355   : > { %v2386_v6 = vadd.f32 %v2385_v16, %v2097_v2 }
 0x356   : > { %v2387_v9 = vpop.f32.mrf.mxu0 }
 0x357   : > { %v2546_v47 = vpop.f32.mrf.mxu1  ;;  %v2388_v28 = vadd.f32 %v2387_v9, %v2097_v2  ;;  %v5114_v2 = vpop.permute.xlu1 %2166 }
 0x358   : > { %v2391_v25 = vpop.f32.mrf.mxu0  ;;  %v2547_v21 = vadd.f32 %v2546_v47, %v2386_v6 }
 0x359   : > { %v2548_v11 = vpop.f32.mrf.mxu1  ;;  %v2392_v52 = vadd.f32 %v2391_v25, %v2102_v48 }
 0x35a   : > { %v2393_v36 = vpop.f32.mrf.mxu0  ;;  %v2549_v10 = vadd.f32 %v2548_v11, %v2388_v28  ;;  %v2697_v38 = vmul.f32 0.5, %v2547_v21 }
 0x35b   : > { %v2552_v37 = vpop.f32.mrf.mxu1  ;;  %v2394_v26 = vadd.f32 %v2393_v36, %v2102_v48 }
 0x35c   : > { %v2397_v15 = vpop.f32.mrf.mxu0  ;;  %v2553_v60 = vadd.f32 %v2552_v37, %v2392_v52  ;;  %v2698_v24 = vmul.f32 0.5, %v2549_v10  ;;  %3395 = vtanh.f32 %v2697_v38 }
 0x35d   : > { %v2554_v14 = vpop.f32.mrf.mxu1  ;;  %v2398_v58 = vadd.f32 %v2397_v15, %v2107_v23 }
 0x35e   : > { %v2399_v53 = vpop.f32.mrf.mxu0  ;;  %v2555_v17 = vadd.f32 %v2554_v14, %v2394_v26  ;;  %v2699_v32 = vmul.f32 0.5, %v2553_v60  ;;  %3397 = vtanh.f32 %v2698_v24 }
 0x35f   : > { %v2558_v34 = vpop.f32.mrf.mxu1  ;;  %v2400_v45 = vadd.f32 %v2399_v53, %v2107_v23 }
 0x360   : > { %v5087_v40 = vpop.f32.mrf.mxu0  ;;  %v2559_v63 = vadd.f32 %v2558_v34, %v2398_v58  ;;  %v2700_v41 = vmul.f32 0.5, %v2555_v17  ;;  %3399 = vtanh.f32 %v2699_v32 }
 0x361   : > { %v2560_v27 = vpop.f32.mrf.mxu1  ;;  %v2404_v53 = vadd.f32 %v5087_v40, %v2112_v5 }
 0x362   : > { %v5089_v42 = vpop.f32.mrf.mxu0  ;;  %v2701_v39 = vmul.f32 0.5, %v2559_v63  ;;  %v2561_v56 = vadd.f32 %v2560_v27, %v2400_v45  ;;  %3401 = vtanh.f32 %v2700_v41 }
 0x363   : > { %v5091_v19 = vpop.f32.mrf.mxu1  ;;  %v2406_v23 = vadd.f32 %v5089_v42, %v2112_v5 }
 0x364   : > { %v2409_v3 = vpop.f32.mrf.mxu0  ;;  %3403 = vtanh.f32 %v2701_v39  ;;  %v2702_v37 = vmul.f32 0.5, %v2561_v56  ;;  %v2565_v40 = vadd.f32 %v5091_v19, %v2404_v53 }
 0x365   : > { %v5093_v4 = vpop.f32.mrf.mxu1  ;;  %v2410_v57 = vadd.f32 %v2409_v3, %v2117_v50 }
 0x366   : > { %v2411_v7 = vpop.f32.mrf.mxu0  ;;  %v2703_v19 = vmul.f32 0.5, %v2565_v40 }
 0x367   : > { %v2570_v22 = vpop.f32.mrf.mxu1  ;;  %v2412_v30 = vadd.f32 %v2411_v7, %v2117_v50  ;;  %v5116_v7 = vpop.permute.xlu0 %2161 }
 0x368   : > { %v2415_v18 = vpop.f32.mrf.mxu0  ;;  %v2571_v55 = vadd.f32 %v2570_v22, %v2410_v57 }
 0x369   : > { %v2572_v0 = vpop.f32.mrf.mxu1  ;;  %v2416_v46 = vadd.f32 %v2415_v18, %v2122_v13 }
 0x36a   : > { %v2417_v43 = vpop.f32.mrf.mxu0  ;;  %v2705_v25 = vmul.f32 0.5, %v2571_v55  ;;  %v2573_v47 = vadd.f32 %v2572_v0, %v2412_v30 }
 0x36b   : > { %v2576_v35 = vpop.f32.mrf.mxu1  ;;  %v2418_v36 = vadd.f32 %v2417_v43, %v2122_v13  ;;  %v2567_v43 = vadd.f32 %v5093_v4, %v2406_v23  ;;  %v2137_v4 = vpop.permute.xlu1 %2136 }
 0x36c   : > { %v2421_v54 = vpop.f32.mrf.mxu0  ;;  %v2577_v14 = vadd.f32 %v2576_v35, %v2416_v46  ;;  %3405 = vtanh.f32 %v2705_v25  ;;  %v2706_v6 = vmul.f32 0.5, %v2573_v47  ;;  %v3396_v35 = vpop.eup %3395 }
 0x36d   : > { %v2578_v20 = vpop.f32.mrf.mxu1  ;;  %v2422_v3 = vadd.f32 %v2421_v54, %v2127_v44  ;;  %3407 = vtanh.f32 %v2702_v37  ;;  %v3398_v10 = vpop.eup %3397  ;;  %v2745_v26 = vmul.f32 0.5, %v3396_v35 }
 0x36e   : > { %v2423_v59 = vpop.f32.mrf.mxu0  ;;  %v2579_v34 = vadd.f32 %v2578_v20, %v2418_v36  ;;  %v2707_v0 = vmul.f32 0.5, %v2577_v14  ;;  %3409 = vtanh.f32 %v2706_v6  ;;  %v5133_v38 = vpop.permute.xlu0 %2171 }
 0x36f   : > { %v2582_v31 = vpop.f32.mrf.mxu1  ;;  %v2424_v52 = vadd.f32 %v2423_v59, %v2127_v44  ;;  %v3400_v59 = vpop.eup %3399  ;;  %v2746_v44 = vmul.f32 0.5, %v3398_v10  ;;  %v5141_v56 = vadd.f32 0.5, %v2745_v26 }
 0x370   : > { %v2427_v61 = vpop.f32.mrf.mxu0  ;;  %v2708_v28 = vmul.f32 0.5, %v2579_v34  ;;  %v2583_v42 = vadd.f32 %v2582_v31, %v2422_v3  ;;  %3411 = vtanh.f32 %v2707_v0  ;;  %v2747_v55 = vmul.f32 0.5, %v3400_v59 }
 0x371   : > { %v2584_v12 = vpop.f32.mrf.mxu1  ;;  %v2428_v50 = vadd.f32 %v2427_v61, %v2132_v51  ;;  %v2704_v61 = vmul.f32 0.5, %v2567_v43  ;;  %v5143_v30 = vadd.f32 0.5, %v2746_v44 }
 0x372   : > { %v2429_v62 = vpop.f32.mrf.mxu0  ;;  %v2585_v5 = vadd.f32 %v2584_v12, %v2424_v52  ;;  %3413 = vtanh.f32 %v2708_v28  ;;  %v2709_v13 = vmul.f32 0.5, %v2583_v42  ;;  %v5147_v3 = vadd.f32 0.5, %v2747_v55 }
 0x373   : > { %v2588_v8 = vpop.f32.mrf.mxu1  ;;  %v2430_v58 = vadd.f32 %v2429_v62, %v2132_v51  ;;  %v3402_v62 = vpop.eup %3401  ;;  %3415 = vtanh.f32 %v2703_v19 }
 0x374   : > { %v5095_v29 = vpop.f32.mrf.mxu0  ;;  %v2589_v24 = vadd.f32 %v2588_v8, %v2428_v50  ;;  %v2710_v12 = vmul.f32 0.5, %v2585_v5  ;;  %v3404_v39 = vpop.eup %3403  ;;  %3417 = vtanh.f32 %v2704_v61  ;;  %v2748_v36 = vmul.f32 0.5, %v3402_v62 }
 0x375   : > { %v2590_v1 = vpop.f32.mrf.mxu1  ;;  %v2434_v32 = vadd.f32 %v5095_v29, %v2137_v4  ;;  %3419 = vtanh.f32 %v2709_v13  ;;  %v2142_v29 = vpop.permute.xlu0 %2141  ;;  %v2749_v23 = vmul.f32 0.5, %v3404_v39 }
 0x376   : > { %v5097_v33 = vpop.f32.mrf.mxu0  ;;  %v2591_v17 = vadd.f32 %v2590_v1, %v2430_v58  ;;  %v2711_v8 = vmul.f32 0.5, %v2589_v24  ;;  %3421 = vtanh.f32 %v2710_v12  ;;  %v5154_v10 = vadd.f32 0.5, %v2748_v36 }
 0x377   : > { %v5103_v9 = vpop.f32.mrf.mxu1  ;;  %v2436_v0 = vadd.f32 %v5097_v33, %v2137_v4 }
 0x378   : > { %v5101_v16 = vpop.f32.mrf.mxu0  ;;  %v2712_v1 = vmul.f32 0.5, %v2591_v17  ;;  %v2595_v37 = vadd.f32 %v5103_v9, %v2434_v32 }
 0x379   : > { %v5105_v11 = vpop.f32.mrf.mxu1  ;;  %v3406_v47 = vpop.eup %3405  ;;  %v2440_v43 = vadd.f32 %v5101_v16, %v2142_v29  ;;  %v5157_v16 = vadd.f32 0.5, %v2749_v23 }
 0x37a   : > { %v5107_v15 = vpop.f32.mrf.mxu0  ;;  %v3408_v40 = vpop.eup %3407  ;;  %v2753_v9 = vmul.f32 0.5, %v3406_v47  ;;  %v2713_v5 = vmul.f32 0.5, %v2595_v37  ;;  %v2597_v19 = vadd.f32 %v5105_v11, %v2436_v0 }
 0x37b   : > { %v5112_v27 = vpop.f32.mrf.mxu1  ;;  %v3410_v4 = vpop.eup %3409  ;;  %v5160_v24 = vmul.f32 0.5, %v3408_v40  ;;  %v2442_v11 = vadd.f32 %v5107_v15, %v2142_v29 }
 0x37c   : > { %v5110_v48 = vpop.f32.mrf.mxu0  ;;  %v2777_v12 = vadd.f32 0.5, %v2753_v9  ;;  %v2152_v32 = vpop.permute.xlu0 %2151  ;;  %v2754_v55 = vmul.f32 0.5, %v3410_v4 }
 0x37d   : > { %v5121_v22 = vpop.f32.mrf.mxu1  ;;  %v3412_v61 = vpop.eup %3411 }
 0x37e   : > { %v5119_v18 = vpop.f32.mrf.mxu0  ;;  %v2755_v29 = vmul.f32 0.5, %v3412_v61  ;;  %v2778_v23 = vadd.f32 0.5, %v2754_v55 }
 0x37f   : > { %v5125_v21 = vpop.f32.mrf.mxu1  ;;  %v3414_v17 = vpop.eup %3413 }
 0x380   : > { %v5127_v54 = vpop.f32.mrf.mxu0 }
 0x381   : > { %v5131_v60 = vpop.f32.mrf.mxu1  ;;  %v2452_v37 = vadd.f32 %v5127_v54, %v2152_v32 }
 0x382   : > { %v5129_v20 = vpop.f32.mrf.mxu0 }
 0x383   : > { %v5135_v31 = vpop.f32.mrf.mxu1  ;;  %v2454_v9 = vadd.f32 %v5129_v20, %v2152_v32  ;;  %v2813_v32 = vld [vmem:[%s5165_s7 + $0x20] sm:$0xff] }
 0x384   : > { %v2457_v57 = vpop.f32.mrf.mxu0 }
 0x385   : > { %v5138_v45 = vpop.f32.mrf.mxu1  ;;  %v2458_v41 = vadd.f32 %v2457_v57, %v5099_v49 }
 0x386   : > { %v2459_v63 = vpop.f32.mrf.mxu0 }
 0x387   : > { %v2618_v51 = vpop.f32.mrf.mxu1  ;;  %v2460_v53 = vadd.f32 %v2459_v63, %v5099_v49  ;;  %v2147_v49 = vpop.permute.xlu1 %2146 }
 0x388   : > { %v2463_v46 = vpop.f32.mrf.mxu0  ;;  %v2619_v25 = vadd.f32 %v2618_v51, %v2458_v41  ;;  %v2446_v57 = vadd.f32 %v5110_v48, %v2147_v49  ;;  %v2714_v41 = vmul.f32 0.5, %v2597_v19  ;;  %v2448_v15 = vadd.f32 %v5119_v18, %v2147_v49 }
 0x389   : > { %v2620_v34 = vpop.f32.mrf.mxu1  ;;  %v2464_v6 = vadd.f32 %v2463_v46, %v5116_v7  ;;  %v2603_v48 = vadd.f32 %v5121_v22, %v2442_v11 }
 0x38a   : > { %v2465_v14 = vpop.f32.mrf.mxu0  ;;  %3423 = vtanh.f32 %v2619_v25  ;;  %v2621_v28 = vadd.f32 %v2620_v34, %v2460_v53  ;;  %v2607_v47 = vadd.f32 %v5125_v21, %v2446_v57  ;;  %v2609_v21 = vadd.f32 %v5131_v60, %v2448_v15 }
 0x38b   : > { %3425 = vtanh.f32 %v2711_v8  ;;  %v2624_v50 = vpop.f32.mrf.mxu1  ;;  %v2466_v35 = vadd.f32 %v2465_v14, %v5116_v7  ;;  %v2601_v7 = vadd.f32 %v5112_v27, %v2440_v43  ;;  %v2809_v8 = vld [vmem:[%s5165_s7] sm:$0xff]  ;;  %v2716_v0 = vmul.f32 0.5, %v2603_v48 }
 0x38c   : > { %v2469_v52 = vpop.f32.mrf.mxu0  ;;  %3427 = vtanh.f32 %v2712_v1  ;;  %v2625_v42 = vadd.f32 %v2624_v50, %v2464_v6  ;;  %v3416_v1 = vpop.eup %3415  ;;  %v2817_v34 = vmul.f32 %v2809_v8, %v2777_v12  ;;  %v2613_v43 = vadd.f32 %v5135_v31, %v2452_v37 }
 0x38d   : > { %3429 = vtanh.f32 %v2621_v28  ;;  %v2626_v33 = vpop.f32.mrf.mxu1  ;;  %v2470_v59 = vadd.f32 %v2469_v52, %v5114_v2  ;;  %v2715_v25 = vmul.f32 0.5, %v2601_v7  ;;  %v5179_v18 = vpop.eup %3417  ;;  %v2810_v28 = vld [vmem:[%s5165_s7 + $0x8] sm:$0xff]  ;;  %v2779_v52 = vadd.f32 0.5, %v2755_v29 }
 0x38e   : > { %v2471_v58 = vpop.f32.mrf.mxu0  ;;  %3431 = vtanh.f32 %v2625_v42  ;;  %v2627_v26 = vadd.f32 %v2626_v33, %v2466_v35  ;;  %v3420_v14 = vpop.eup %3419  ;;  %v2717_v50 = vmul.f32 0.5, %v2607_v47  ;;  %v2811_v35 = vld [vmem:[%s5165_s7 + $0x10] sm:$0xff]  ;;  %v2751_v31 = vmul.f32 0.5, %v3416_v1 }
 0x38f   : > { %v2630_v13 = vpop.f32.mrf.mxu1  ;;  %v2472_v63 = vadd.f32 %v2471_v58, %v5114_v2  ;;  %v2756_v2 = vmul.f32 0.5, %v3414_v17  ;;  %v3422_v40 = vpop.eup %3421  ;;  %v2757_v60 = vmul.f32 0.5, %v3420_v14  ;;  %v2812_v58 = vld [vmem:[%s5165_s7 + $0x18] sm:$0xff]  ;;  %v2718_v4 = vmul.f32 0.5, %v2609_v21  ;;  %v2815_v1 = vld [vmem:[%s5165_s7 + $0x30] sm:$0xff] }
 0x390   : > { %v2475_v44 = vpop.f32.mrf.mxu0  ;;  %3433 = vtanh.f32 %v2627_v26  ;;  %v2631_v62 = vadd.f32 %v2630_v13, %v2470_v59  ;;  %v2758_v33 = vmul.f32 0.5, %v3422_v40  ;;  %v2615_v59 = vadd.f32 %v5138_v45, %v2454_v9 }
 0x391   : > { %3435 = vtanh.f32 %v2713_v5  ;;  %v2632_v27 = vpop.f32.mrf.mxu1  ;;  %v2476_v46 = vadd.f32 %v2475_v44, %v5133_v38  ;;  %v2780_v42 = vadd.f32 0.5, %v2756_v2  ;;  %v2818_v61 = vmul.f32 %v2810_v28, %v2778_v23 }
 0x392   : > { %v2477_v39 = vpop.f32.mrf.mxu0  ;;  %3437 = vtanh.f32 %v2631_v62  ;;  %v2633_v51 = vadd.f32 %v2632_v27, %v2472_v63  ;;  %v2719_v20 = vmul.f32 0.5, %v2613_v43  ;;  %v2819_v57 = vmul.f32 %v2811_v35, %v2779_v52 }
 0x393   : > { %v2636_v36 = vpop.f32.mrf.mxu1  ;;  %v2478_v22 = vadd.f32 %v2477_v39, %v5133_v38  ;;  %v2820_v13 = vmul.f32 %v2812_v58, %v2780_v42  ;;  %v2781_v17 = vadd.f32 0.5, %v2757_v60  ;;  %v2782_v63 = vadd.f32 0.5, %v2758_v33 }
 0x394   : > { %3439 = vtanh.f32 %v2633_v51  ;;  %v2637_v53 = vadd.f32 %v2636_v36, %v2476_v46  ;;  %v2720_v62 = vmul.f32 0.5, %v2615_v59  ;;  %v2774_v48 = vadd.f32 0.5, %v5160_v24 }
 0x395   : > { %3441 = vtanh.f32 %v2714_v41  ;;  %v2638_v6 = vpop.f32.mrf.mxu1  ;;  %v2814_v41 = vld [vmem:[%s5165_s7 + $0x28] sm:$0xff]  ;;  %v2821_v51 = vmul.f32 %v2813_v32, %v2781_v17  ;;  %v2775_v47 = vadd.f32 0.5, %v2751_v31 }
 0x396   : > { %3443 = vtanh.f32 %v2637_v53  ;;  %v2639_v54 = vadd.f32 %v2638_v6, %v2478_v22 }
 0x397   : > { %v3424_v38 = vpop.eup %3423  ;;  %3445 = vtanh.f32 %v2715_v25 }
 0x398   : > { %v3426_v49 = vpop.eup %3425  ;;  %v2825_v5 = vmul.f32 %v3424_v38, %v5141_v56  ;;  %3447 = vtanh.f32 %v2639_v54 }
 0x399   : > { %v3428_v19 = vpop.eup %3427  ;;  %3449 = vtanh.f32 %v2716_v0  ;;  %v2759_v44 = vmul.f32 0.5, %v3426_v49 }
 0x39a   : > { %v3430_v26 = vpop.eup %3429  ;;  %v2833_v11 = vadd.f32 %v2825_v5, %v2817_v34  ;;  %3451 = vtanh.f32 %v2717_v50  ;;  %v2760_v15 = vmul.f32 0.5, %v3428_v19  ;;  %v2816_v34 = vld [vmem:[%s5165_s7 + $0x38] sm:$0xff] }
 0x39b   : > { %v3432_v7 = vpop.eup %3431  ;;  %v2826_v56 = vmul.f32 %v3430_v26, %v5143_v30  ;;  %v2783_v46 = vadd.f32 0.5, %v2759_v44 }
 0x39c   : > { %3453 = vtanh.f32 %v2833_v11  ;;  %2857 = vst [vmem:[%s5195_s10] sm:$0xff] %v2833_v11  ;;  %v2827_v45 = vmul.f32 %v3432_v7, %v5147_v3  ;;  %v2752_v3 = vmul.f32 0.5, %v5179_v18  ;;  %v2784_v36 = vadd.f32 0.5, %v2760_v15 }
 0x39d   : > { %v3434_v12 = vpop.eup %3433  ;;  %3455 = vtanh.f32 %v2718_v4  ;;  %v2834_v55 = vadd.f32 %v2826_v56, %v2818_v61  ;;  %v2823_v14 = vmul.f32 %v2815_v1, %v2783_v46 }
 0x39e   : > { %v3436_v30 = vpop.eup %3435  ;;  %3457 = vtanh.f32 %v2719_v20  ;;  %v2835_v39 = vadd.f32 %v2827_v45, %v2819_v57  ;;  %v2828_v27 = vmul.f32 %v3434_v12, %v5154_v10  ;;  %v2822_v10 = vmul.f32 %v2814_v41, %v2782_v63 }
 0x39f   : > { %v3438_v8 = vpop.eup %3437  ;;  %3459 = vtanh.f32 %v2834_v55  ;;  %2858 = vst [vmem:[%s5195_s10 + $0x8] sm:$0xff] %v2834_v55  ;;  %v2776_v53 = vadd.f32 0.5, %v2752_v3  ;;  %v2824_v0 = vmul.f32 %v2816_v34, %v2784_v36 }
 0x3a0   : > { %3461 = vtanh.f32 %v2835_v39  ;;  %2859 = vst [vmem:[%s5195_s10 + $0x10] sm:$0xff] %v2835_v39  ;;  %v2836_v29 = vadd.f32 %v2828_v27, %v2820_v13  ;;  %v2829_v2 = vmul.f32 %v3438_v8, %v5157_v16  ;;  %v2761_v16 = vmul.f32 0.5, %v3436_v30 }
 0x3a1   : > { %v3440_v25 = vpop.eup %3439  ;;  %3463 = vtanh.f32 %v2720_v62 }
 0x3a2   : > { %v3442_v24 = vpop.eup %3441  ;;  %3465 = vtanh.f32 %v2836_v29  ;;  %2860 = vst [vmem:[%s5195_s10 + $0x18] sm:$0xff] %v2836_v29  ;;  %v2837_v18 = vadd.f32 %v2829_v2, %v2821_v51  ;;  %v2830_v37 = vmul.f32 %v3440_v25, %v2774_v48  ;;  %v2785_v50 = vadd.f32 0.5, %v2761_v16 }
 0x3a3   : > { %v3444_v22 = vpop.eup %3443  ;;  %v2762_v28 = vmul.f32 0.5, %v3442_v24 }
 0x3a4   : > { %v3446_v23 = vpop.eup %3445  ;;  %3467 = vtanh.f32 %v2837_v18  ;;  %2861 = vst [vmem:[%s5195_s10 + $0x20] sm:$0xff] %v2837_v18  ;;  %v2838_v21 = vadd.f32 %v2830_v37, %v2822_v10  ;;  %v2831_v6 = vmul.f32 %v3444_v22, %v2775_v47 }
 0x3a5   : > { %v3448_v40 = vpop.eup %3447  ;;  %v2763_v9 = vmul.f32 0.5, %v3446_v23  ;;  %v2786_v31 = vadd.f32 0.5, %v2762_v28 }
 0x3a6   : > { %3469 = vtanh.f32 %v2838_v21  ;;  %2862 = vst [vmem:[%s5195_s10 + $0x28] sm:$0xff] %v2838_v21  ;;  %v2839_v43 = vadd.f32 %v2831_v6, %v2823_v14  ;;  %v2832_v54 = vmul.f32 %v3448_v40, %v2776_v53  ;;  %v3450_v38 = vpop.eup %3449 }
 0x3a7   : > { %v3452_v52 = vpop.eup %3451  ;;  %v2764_v60 = vmul.f32 0.5, %v3450_v38 }
 0x3a8   : > { %3471 = vtanh.f32 %v2839_v43  ;;  %2863 = vst [vmem:[%s5195_s10 + $0x30] sm:$0xff] %v2839_v43  ;;  %v2840_v49 = vadd.f32 %v2832_v54, %v2824_v0 }
 0x3a9   : > { %v3454_v35 = vpop.eup %3453 }
 0x3aa   : > { %v3456_v42 = vpop.eup %3455  ;;  %v2849_v5 = vmul.f32 %v3454_v35, %v2785_v50  ;;  %3473 = vtanh.f32 %v2840_v49  ;;  %2864 = vst [vmem:[%s5195_s10 + $0x38] sm:$0xff] %v2840_v49 }
 0x3ab   : > { %v3458_v19 = vpop.eup %3457 }
 0x3ac   : > { %3488 = shalt.err (!%p3485_p3)
}
 0x3ad   : > { %s3489_s6 = scalar_lea.hbm %s5220_s16, 1024  ;;  %s3493_s14 = scalar_lea.hbm %s5319_s5, 2048 }
 0x3ae   : > { %p3490_p4 = scmp.ne.s32.totalorder %s5220_s16, %s3489_s6  ;;  %p3494_p9 = scmp.lt.s32.totalorder %s5220_s16, %s5319_s5 }
 0x3af   : > { %p3495_p10 = scmp.lt.s32.totalorder %s3493_s14, %s3489_s6 }
 0x3b0   : > { %p3491_p7 = pnand %p3490_p4, %p3647_p5 }
 0x3b1   : > { %p3496_p11 = por %p3495_p10, %p3494_p9 }
 0x3b2   : > { %p3492_p8 = pneg %p3491_p7 }
 0x3b4   : > { %p3497_p12 = pnand %p3496_p11, %p3492_p8 }
 0x3b6   : > { %3500 = shalt.err (!%p3497_p12)
}
 0x3b7   : > { %s3577_s23 = smov 256   ;;  %v3460_v58 = vpop.eup %3459  ;;  %v2787_v33 = vadd.f32 0.5, %v2763_v9  ;;  %v2765_v4 = vmul.f32 0.5, %v3452_v52  ;;  %s5253_s26 = scalar_lea.vmem [#allocation4], %s3018_s9  ;;  %v2788_v20 = vadd.f32 0.5, %v2764_v60  ;;  %v2766_v11 = vmul.f32 0.5, %v3456_v42 }
 0x3b8   : > { %3340 = dma.vmem_to_hbm [thread:$0]  (%p3647_p5), %s5222_s13, 1024, %s5220_s16, %s2879_s17, %s3577_s23, %s3577_s23, %s3569_s12   ;;  %v3462_v59 = vpop.eup %3461  ;;  %v2850_v26 = vmul.f32 %v3460_v58, %v2786_v31  ;;  %v2767_v56 = vmul.f32 0.5, %v3458_v19 }
 0x3b9   : > { %2865 = vst [vmem:[%s5253_s26] sm:$0xff] %v2849_v5  ;;  %v3464_v61 = vpop.eup %3463  ;;  %v2851_v7 = vmul.f32 %v3462_v59, %v2787_v33  ;;  %v2789_v44 = vadd.f32 0.5, %v2765_v4  ;;  %v2790_v45 = vadd.f32 0.5, %v2766_v11  ;;  %s2892_s9 = sshll.u32 %s5253_s26, 4  ;;  %s5268_s17 = scalar_lea.hbm %s5318_s4, %s3272_s11  ;;  %s5270_s9 = int_to_ptr.vmem [resolvable:$true] %s2892_s9 }
 0x3ba   : > { %v3466_v57 = vpop.eup %3465  ;;  %2866 = vst [vmem:[%s5253_s26 + $0x8] sm:$0xff] %v2850_v26  ;;  %v2768_v12 = vmul.f32 0.5, %v3464_v61  ;;  %v2791_v62 = vadd.f32 0.5, %v2767_v56  ;;  %s2874_s30 = scalar_lea.sflag [#allocation5], %s5177_s8  ;;  %s3501_s6 = scalar_lea.vmem %s5270_s9, 1024 }
 0x3bb   : > { %2867 = vst [vmem:[%s5253_s26 + $0x10] sm:$0xff] %v2851_v7  ;;  %v2852_v13 = vmul.f32 %v3466_v57, %v2788_v20  ;;  %v3468_v17 = vpop.eup %3467  ;;  %p3502_p13 = scmp.ne.s32.totalorder %s5270_s9, %s3501_s6  ;;  %s3578_s7 = smov [#allocation4]  }
 0x3bc   : > { %v2853_v32 = vmul.f32 %v3468_v17, %v2789_v44  ;;  %v3470_v63 = vpop.eup %3469  ;;  %v2792_v41 = vadd.f32 0.5, %v2768_v12  ;;  %s3505_s10 = sshll.u32 %s3578_s7, 4  ;;  %s3506_s10 = int_to_ptr.vmem [resolvable:$false] %s3505_s10 }
 0x3bd   : > { %2868 = vst [vmem:[%s5253_s26 + $0x18] sm:$0xff] %v2852_v13  ;;  %v2854_v55 = vmul.f32 %v3470_v63, %v2790_v45  ;;  %v3472_v30 = vpop.eup %3471  ;;  %p3503_p0 = pnand %p3502_p13, %p3647_p5  ;;  %s3507_s22 = scalar_lea.vmem %s3506_s10, 2048 }
 0x3be   : > { %2869 = vst [vmem:[%s5253_s26 + $0x20] sm:$0xff] %v2853_v32  ;;  %v2855_v15 = vmul.f32 %v3472_v30, %v2791_v62  ;;  %v3474_v39 = vpop.eup %3473  ;;  %p3508_p2 = scmp.lt.s32.totalorder %s5270_s9, %s3506_s10  ;;  %p3509_p3 = scmp.lt.s32.totalorder %s3507_s22, %s3501_s6 }
 0x3bf   : > { %2870 = vst [vmem:[%s5253_s26 + $0x28] sm:$0xff] %v2854_v55  ;;  %v2856_v27 = vmul.f32 %v3474_v39, %v2792_v41  ;;  %p3504_p1 = pneg %p3503_p0 }
 0x3c0   : > { %2871 = vst [vmem:[%s5253_s26 + $0x30] sm:$0xff] %v2855_v15  ;;  %p3510_p4 = por %p3509_p3, %p3508_p2 }
 0x3c1   : > { %2872 = vst [vmem:[%s5253_s26 + $0x38] sm:$0xff] %v2856_v27 }
 0x3c2   : > { %p3511_p7 = pnand %p3510_p4, %p3504_p1 }
 0x3c4   : > { %3514 = shalt.err (!%p3511_p7)
}
 0x3c5   : > { %s3515_s11 = scalar_lea.hbm %s5268_s17, 1024  ;;  %s3519_s15 = scalar_lea.hbm %s5318_s4, 2048 }
 0x3c6   : > { %p3516_p8 = scmp.ne.s32.totalorder %s5268_s17, %s3515_s11  ;;  %p3520_p11 = scmp.lt.s32.totalorder %s5268_s17, %s5318_s4 }
 0x3c7   : > { %p3521_p12 = scmp.lt.s32.totalorder %s3519_s15, %s3515_s11 }
 0x3c8   : > { %p3517_p9 = pnand %p3516_p8, %p3647_p5 }
 0x3c9   : > { %p3522_p13 = por %p3521_p12, %p3520_p11 }
 0x3ca   : > { %p3518_p10 = pneg %p3517_p9 }
 0x3cc   : > { %p3523_p0 = pnand %p3522_p13, %p3518_p10 }
 0x3ce   : > { %3526 = shalt.err (!%p3523_p0)
}
 0x3cf   : > { %3339 = dma.vmem_to_hbm [thread:$0]  (%p3647_p5), %s5270_s9, 1024, %s5268_s17, %s2874_s30, %s3577_s23, %s3577_s23, %s3569_s12  }
 0x3d0 PF: > { %p3350_p1 = scmp.ge.s32.totalorder %s3565_s21, 2  ;;  %s2923_s13 = sand.u32 1, %s3553_s18  }
 0x3d1   : > { %s2924_s16 = scalar_lea.sflag [#allocation5], %s2923_s13 }
 0x3d2   : > { %p3344_p2 = pnand %p3350_p1, %p3651_p6 }
 0x3d4   : > { %p3345_p3 = pneg %p3344_p2 }
 0x3d6   : > { %3544 = dma.done.wait (%p3345_p3), %s2924_s16, 1024  }
 0x3d7   : > { %3546 = vsyncadd (%p3345_p3), %s2924_s16, 4294966272  ;;  %s2933_s6 = scalar_lea.sflag [#allocation7], %s2923_s13 }
 0x3d8   : > { %3548 = dma.done.wait (%p3345_p3), %s2933_s6, 1024  }
 0x3d9   : > { %3550 = vsyncadd (%p3345_p3), %s2933_s6, 4294966272  ;;  %p19_p5 = scmp.ge.s32.totalorder %s3634_s24, 4   ;;  %s5322_s18 = smov %s3557_s19 }
 0x3da   : > { %s5323_s19 = smov %s3561_s20  ;;  %s5324_s20 = smov %s3645_s27 }
 0x3db   : > { %s5325_s21 = smov %s3634_s24  ;;  %21 = sbr.rel (!%p19_p5) target bundleno = 5 (0x5), region = 94 }
 0x3e0   :  { %2938 = vsyncpa [#allocation5], 1 }
 0x3e1   :  { %2940 = vsyncpa [#allocation5 + $0x1], 1 }
 0x3e2   :  { %2941 = vsyncpa [#allocation7], 1 }
 0x3e3   :  { %2943 = vsyncpa [#allocation7 + $0x1], 1 }

</bundles_post_ra>
